<compile_context>
chip_gen: v6e
topology: v6e:2x2x1
jax: 0.10.0
libtpu: 0.0.40
codegen_flags: <defaults>
</compile_context>

<pallas_src>
import numpy as np
import jax
import jax.numpy as jnp
from jax.experimental import pallas as pl
from jax.experimental.pallas import tpu as pltpu


# ----------------------------------------------------------------------------
# Host-side packing: conv weights -> merged-parity banded (Toeplitz) matmul form
# ----------------------------------------------------------------------------
def _conv_toeplitz_merged(w_hwio, in_w, out_w, in_lanes):
    """Banded matmul form of a 'valid' 5x5 conv with both width parities merged.

    Input rows are image rows, input lanes are ci*in_w + iw.  Returns W of shape
    (k, in_lanes, 256) such that for every output row oh:
        conv(x)[oh, 2*pw + par, co] ==
            sum_kh (x[oh + kh, :] @ W[kh])[par*128 + co*(out_w//2) + pw]
    """
    w = np.asarray(w_hwio, np.float32)                     # (k, k, cin, cout)
    k, _, cin, cout = w.shape
    half = out_w // 2
    out = np.zeros((k, in_lanes, 256), np.float32)
    pw = np.arange(half)
    for par in range(2):
        base = par * 128
        for kh in range(k):
            for kw in range(k):
                for ci in range(cin):
                    for co in range(cout):
                        rows = ci * in_w + 2 * pw + par + kw
                        out[kh, rows, base + co * half + pw] = w[kh, kw, ci, co]
    return out


def _fc1_permuted(fw1):
    """fc1 (400, 120) reordered to the kernel's pooled layout, padded to (5, 128, 128).

    Slice h, row co*5 + w holds the fc1 weights of pooled feature (co, h, w)
    (torch (C, H, W) flatten order)."""
    f = np.asarray(fw1, np.float32).reshape(16, 5, 5, 120)
    out = np.zeros((5, 128, 128), np.float32)
    for h in range(5):
        for co in range(16):
            out[h, co * 5:(co + 1) * 5, :120] = f[co, h, :, :]
    return out


def _pad2d(m, rows, cols):
    m = np.asarray(m, np.float32)
    out = np.zeros((rows, cols), np.float32)
    out[:m.shape[0], :m.shape[1]] = m
    return out


def _bias_row(b, repeat):
    b = np.repeat(np.asarray(b, np.float32), repeat)
    row = np.zeros((1, 128), np.float32)
    row[0, :b.size] = b
    return row


def pack_params(params):
    bf16, f32 = jnp.bfloat16, jnp.float32
    return {
        "w1":  jnp.asarray(_conv_toeplitz_merged(params["w1"], 32, 28, 96), bf16),
        "b1":  jnp.asarray(_bias_row(params["b1"], 14), f32),
        "w2":  jnp.asarray(_conv_toeplitz_merged(params["w2"], 14, 10, 128), bf16),
        "b2":  jnp.asarray(_bias_row(params["b2"], 5), f32),
        "wf1": jnp.asarray(_fc1_permuted(params["fw1"]), bf16),
        "bf1": jnp.asarray(_bias_row(params["fb1"], 1), f32),
        "wf2": jnp.asarray(_pad2d(params["fw2"], 128, 128), bf16),
        "bf2": jnp.asarray(_bias_row(params["fb2"], 1), f32),
        "wf3": jnp.asarray(_pad2d(params["fw3"], 128, 128), bf16),
        "bf3": jnp.asarray(_bias_row(params["fb3"], 1), f32),
    }


# ----------------------------------------------------------------------------
# Fused Pallas kernel: B images per grid step, everything stays in VMEM
# ----------------------------------------------------------------------------
def lenet_kernel(x_ref, w1_ref, b1_ref, w2_ref, b2_ref,
                 wf1_ref, bf1_ref, wf2_ref, bf2_ref, wf3_ref, bf3_ref,
                 out_ref, c1_ref, p1_ref, c2_ref):
    f32, bf16 = jnp.float32, jnp.bfloat16
    B = out_ref.shape[0]
    M1 = c1_ref.shape[0]          # 32*B - 4 : conv1 output rows (row stride 32 / image)
    P1 = p1_ref.shape[0]          # 16*B - 2 : pooled conv1 rows (row stride 16 / image)
    M2 = c2_ref.shape[0]          # 16*B - 6 : conv2 output rows (row stride 16 / image)

    # ---- conv1 (5x5, 3->6): 5 accumulated MXU matmuls, both width parities at once ----
    acc1 = jnp.dot(x_ref[pl.ds(0, M1), :], w1_ref[0], preferred_element_type=f32)
    for kh in range(1, 5):
        acc1 = acc1 + jnp.dot(x_ref[pl.ds(kh, M1), :], w1_ref[kh],
                              preferred_element_type=f32)
    # 2x2 pool, width half: lane-aligned max of the two parity halves.
    c1_ref[...] = jnp.maximum(acc1[:, :128], acc1[:, 128:])
    # 2x2 pool, height half: stride-2 sublane reads; bias + relu (commute with max-pool).
    pooled1 = jnp.maximum(c1_ref[pl.ds(0, P1, stride=2), :],
                          c1_ref[pl.ds(1, P1, stride=2), :])
    p1_ref[...] = jnp.maximum(pooled1 + b1_ref[...], 0.0).astype(bf16)

    # ---- conv2 (5x5, 6->16) ------------------------------------------------------------
    acc2 = jnp.dot(p1_ref[pl.ds(0, M2), :], w2_ref[0], preferred_element_type=f32)
    for kh in range(1, 5):
        acc2 = acc2 + jnp.dot(p1_ref[pl.ds(kh, M2), :], w2_ref[kh],
                              preferred_element_type=f32)
    c2_ref[...] = jnp.maximum(acc2[:, :128], acc2[:, 128:])

    # ---- 2x2 pool + bias + relu folded with fc1 (400->120): 5 matmuls with M = B --------
    f1 = jnp.zeros((B, 128), f32)
    for h in range(5):
        ev = c2_ref[pl.ds(2 * h, B, stride=16), :]          # conv2 rows oh = 2h  (per image)
        od = c2_ref[pl.ds(2 * h + 1, B, stride=16), :]      # conv2 rows oh = 2h+1
        act = jnp.maximum(jnp.maximum(ev, od) + b2_ref[...], 0.0)
        f1 = f1 + jnp.dot(act.astype(bf16), wf1_ref[h], preferred_element_type=f32)
    f1 = jnp.maximum(f1 + bf1_ref[...], 0.0)

    # ---- fc2 (120->84) + relu, fc3 (84->10) ----------------------------------------------
    f2 = jnp.dot(f1.astype(bf16), wf2_ref[...], preferred_element_type=f32)
    f2 = jnp.maximum(f2 + bf2_ref[...], 0.0)
    f3 = jnp.dot(f2.astype(bf16), wf3_ref[...], preferred_element_type=f32)
    out_ref[...] = (f3 + bf3_ref[...]).astype(out_ref.dtype)


def _batch_tile(n):
    # Multiple of 8 (sublane constraint on the (B, 128) output block), capped at 64 for
    # VMEM headroom, and >= 2 grid steps for n >= 16 so both v7x TensorCores get work.
    return int(min(64, max(8, (n // 2) // 8 * 8)))


@jax.jit
def my_custom_net_forward(x_nchw, packed):
    n = x_nchw.shape[0]
    B = _batch_tile(n)
    npad = -(-n // B) * B
    # (N, C, 32, 32) -> (N*32, 96): row = img*32 + h, lane = c*32 + w; bf16 once here.
    x2 = jnp.transpose(x_nchw, (0, 2, 1, 3)).reshape(n, 32, 96)
    if npad != n:
        x2 = jnp.concatenate([x2, jnp.zeros((npad - n, 32, 96), x2.dtype)], axis=0)
    x2 = x2.reshape(npad * 32, 96).astype(jnp.bfloat16)

    out = pl.pallas_call(
        lenet_kernel,
        out_shape=jax.ShapeDtypeStruct((npad, 128), jnp.float32),
        grid=(npad // B,),
        in_specs=[
            pl.BlockSpec((B * 32, 96), lambda i: (i, 0)),        # images (bf16)
            pl.BlockSpec((5, 96, 256), lambda i: (0, 0, 0)),     # conv1 merged Toeplitz
            pl.BlockSpec((1, 128), lambda i: (0, 0)),            # conv1 bias row
            pl.BlockSpec((5, 128, 256), lambda i: (0, 0, 0)),    # conv2 merged Toeplitz
            pl.BlockSpec((1, 128), lambda i: (0, 0)),            # conv2 bias row
            pl.BlockSpec((5, 128, 128), lambda i: (0, 0, 0)),    # fc1 (permuted, padded)
            pl.BlockSpec((1, 128), lambda i: (0, 0)),            # fc1 bias
            pl.BlockSpec((128, 128), lambda i: (0, 0)),          # fc2 (padded)
            pl.BlockSpec((1, 128), lambda i: (0, 0)),            # fc2 bias
            pl.BlockSpec((128, 128), lambda i: (0, 0)),          # fc3 (padded)
            pl.BlockSpec((1, 128), lambda i: (0, 0)),            # fc3 bias
        ],
        out_specs=pl.BlockSpec((B, 128), lambda i: (i, 0)),      # lane-dense logits slab
        scratch_shapes=[
            pltpu.VMEM((32 * B - 4, 128), jnp.float32),          # width-pooled conv1
            pltpu.VMEM((16 * B - 2, 128), jnp.bfloat16),         # pooled conv1 activations
            pltpu.VMEM((16 * B - 6, 128), jnp.float32),          # width-pooled conv2
        ],
        compiler_params=pltpu.CompilerParams(
            dimension_semantics=("parallel",),
            vmem_limit_bytes=32 * 1024 * 1024),
    )(x2, packed["w1"], packed["b1"], packed["w2"], packed["b2"],
      packed["wf1"], packed["bf1"], packed["wf2"], packed["bf2"],
      packed["wf3"], packed["bf3"])
    return out[:n, :10]


# ----------------------------------------------------------------------------
# Parameters (same distributions as torch defaults) and a pure-JAX reference
# ----------------------------------------------------------------------------
def init_params(key):
    ks = jax.random.split(key, 10)

    def u(k, shape, fan_in):
        bound = 1.0 / jnp.sqrt(fan_in)
        return jax.random.uniform(k, shape, jnp.float32, -bound, bound)

    return {
        # conv weights stored HWIO (kh, kw, cin, cout) == torch OIHW transposed
        "w1": u(ks[0], (5, 5, 3, 6), 3 * 5 * 5),
        "b1": u(ks[1], (6,), 3 * 5 * 5),
        "w2": u(ks[2], (5, 5, 6, 16), 6 * 5 * 5),
        "b2": u(ks[3], (16,), 6 * 5 * 5),
        # linear weights stored (in, out) == torch (out, in).T
        "fw1": u(ks[4], (16 * 5 * 5, 120), 16 * 5 * 5),
        "fb1": u(ks[5], (120,), 16 * 5 * 5),
        "fw2": u(ks[6], (120, 84), 120),
        "fb2": u(ks[7], (84,), 120),
        "fw3": u(ks[8], (84, 10), 84),
        "fb3": u(ks[9], (10,), 84),
    }


def reference_forward(x_nchw, params):
    x = jnp.transpose(x_nchw, (0, 2, 3, 1))
    dn = ("NHWC", "HWIO", "NHWC")
    y = jax.lax.conv_general_dilated(x, params["w1"], (1, 1), "VALID", dimension_numbers=dn)
    y = jax.nn.relu(y + params["b1"])
    y = jax.lax.reduce_window(y, -jnp.inf, jax.lax.max, (1, 2, 2, 1), (1, 2, 2, 1), "VALID")
    y = jax.lax.conv_general_dilated(y, params["w2"], (1, 1), "VALID", dimension_numbers=dn)
    y = jax.nn.relu(y + params["b2"])
    y = jax.lax.reduce_window(y, -jnp.inf, jax.lax.max, (1, 2, 2, 1), (1, 2, 2, 1), "VALID")
    y = jnp.transpose(y, (0, 3, 1, 2)).reshape(y.shape[0], -1)   # torch (C,H,W) flatten
    y = jax.nn.relu(y @ params["fw1"] + params["fb1"])
    y = jax.nn.relu(y @ params["fw2"] + params["fb2"])
    return y @ params["fw3"] + params["fb3"]


if __name__ == "__main__":
    key = jax.random.PRNGKey(0)
    pkey, xkey = jax.random.split(key)
    params = init_params(pkey)
    packed = pack_params(params)
    # fc1 expects 16*5*5 features, pinning the spatial size to 32x32 (CIFAR10).
    # Batch 16 -> two grid steps of 8 images each (keeps both v7x TensorCores busy).
    x = jax.random.normal(xkey, (16, 3, 32, 32), jnp.float32)

    out = my_custom_net_forward(x, packed)
    jax.block_until_ready(out)
    assert out.shape == (16, 10)

    # Sanity check vs a plain-XLA reference (tolerance accounts for bf16 matmul operands).
    ref = reference_forward(x, params)
    err = float(jnp.max(jnp.abs(out - ref)))
    assert err < 8e-2, f"max abs error vs reference: {err}"
    print("KERNEL_OK")
</pallas_src>

<mosaic_0001>
module attributes {stable_mosaic.version = 11 : i64} {
  func.func @lenet_kernel(%arg0: i32, %arg1: memref<256x96xbf16, #tpu.memory_space<vmem>>, %arg2: memref<5x96x256xbf16, #tpu.memory_space<vmem>>, %arg3: memref<1x128xf32, #tpu.memory_space<vmem>>, %arg4: memref<5x128x256xbf16, #tpu.memory_space<vmem>>, %arg5: memref<1x128xf32, #tpu.memory_space<vmem>>, %arg6: memref<5x128x128xbf16, #tpu.memory_space<vmem>>, %arg7: memref<1x128xf32, #tpu.memory_space<vmem>>, %arg8: memref<128x128xbf16, #tpu.memory_space<vmem>>, %arg9: memref<1x128xf32, #tpu.memory_space<vmem>>, %arg10: memref<128x128xbf16, #tpu.memory_space<vmem>>, %arg11: memref<1x128xf32, #tpu.memory_space<vmem>>, %arg12: memref<8x128xf32, #tpu.memory_space<vmem>>, %arg13: memref<252x128xf32, #tpu.memory_space<vmem>>, %arg14: memref<126x128xbf16, #tpu.memory_space<vmem>>, %arg15: memref<122x128xf32, #tpu.memory_space<vmem>>) attributes {dimension_semantics = [#tpu.dimension_semantics<parallel>], iteration_bounds = array<i64: 2>, scalar_prefetch = 0 : i64, scratch_operands = 3 : i64, tpu.core_type = #tpu.core_type<tc>, window_params = [{transform_indices = @transform_0, window_bounds = array<i64: 256, 96>}, {pipeline_mode = #tpu.pipeline_mode<synchronous>, transform_indices = @transform_1, window_bounds = array<i64: 5, 96, 256>}, {pipeline_mode = #tpu.pipeline_mode<synchronous>, transform_indices = @transform_2, window_bounds = array<i64: 1, 128>}, {pipeline_mode = #tpu.pipeline_mode<synchronous>, transform_indices = @transform_3, window_bounds = array<i64: 5, 128, 256>}, {pipeline_mode = #tpu.pipeline_mode<synchronous>, transform_indices = @transform_4, window_bounds = array<i64: 1, 128>}, {pipeline_mode = #tpu.pipeline_mode<synchronous>, transform_indices = @transform_5, window_bounds = array<i64: 5, 128, 128>}, {pipeline_mode = #tpu.pipeline_mode<synchronous>, transform_indices = @transform_6, window_bounds = array<i64: 1, 128>}, {pipeline_mode = #tpu.pipeline_mode<synchronous>, transform_indices = @transform_7, window_bounds = array<i64: 128, 128>}, {pipeline_mode = #tpu.pipeline_mode<synchronous>, transform_indices = @transform_8, window_bounds = array<i64: 1, 128>}, {pipeline_mode = #tpu.pipeline_mode<synchronous>, transform_indices = @transform_9, window_bounds = array<i64: 128, 128>}, {pipeline_mode = #tpu.pipeline_mode<synchronous>, transform_indices = @transform_10, window_bounds = array<i64: 1, 128>}, {transform_indices = @transform_11, window_bounds = array<i64: 8, 128>}]} {
    %c0 = arith.constant 0 : index
    %c0_0 = arith.constant 0 : index
    %0 = vector.load %arg1[%c0, %c0_0] : memref<256x96xbf16, #tpu.memory_space<vmem>>, vector<252x96xbf16>
    %c0_1 = arith.constant 0 : index
    %c0_2 = arith.constant 0 : index
    %c0_3 = arith.constant 0 : index
    %1 = vector.load %arg2[%c0_1, %c0_2, %c0_3] : memref<5x96x256xbf16, #tpu.memory_space<vmem>>, vector<1x96x256xbf16>
    %2 = vector.shape_cast %1 : vector<1x96x256xbf16> to vector<96x256xbf16>
    %cst = arith.constant dense<0.000000e+00> : vector<252x256xf32>
    %3 = tpu.matmul %0, %2, %cst {dimension_numbers = #tpu.dot_dimension_numbers<[1], [0], [0], [1], [0, 0, 1, 1], [], []>} : vector<252x96xbf16>, vector<96x256xbf16>, vector<252x256xf32> -> vector<252x256xf32>
    %c1 = arith.constant 1 : index
    %c0_4 = arith.constant 0 : index
    %4 = vector.load %arg1[%c1, %c0_4] : memref<256x96xbf16, #tpu.memory_space<vmem>>, vector<252x96xbf16>
    %c1_5 = arith.constant 1 : index
    %c0_6 = arith.constant 0 : index
    %c0_7 = arith.constant 0 : index
    %5 = vector.load %arg2[%c1_5, %c0_6, %c0_7] : memref<5x96x256xbf16, #tpu.memory_space<vmem>>, vector<1x96x256xbf16>
    %6 = vector.shape_cast %5 : vector<1x96x256xbf16> to vector<96x256xbf16>
    %cst_8 = arith.constant dense<0.000000e+00> : vector<252x256xf32>
    %7 = tpu.matmul %4, %6, %cst_8 {dimension_numbers = #tpu.dot_dimension_numbers<[1], [0], [0], [1], [0, 0, 1, 1], [], []>} : vector<252x96xbf16>, vector<96x256xbf16>, vector<252x256xf32> -> vector<252x256xf32>
    %8 = arith.addf %3, %7 : vector<252x256xf32>
    %c2 = arith.constant 2 : index
    %c0_9 = arith.constant 0 : index
    %9 = vector.load %arg1[%c2, %c0_9] : memref<256x96xbf16, #tpu.memory_space<vmem>>, vector<252x96xbf16>
    %c2_10 = arith.constant 2 : index
    %c0_11 = arith.constant 0 : index
    %c0_12 = arith.constant 0 : index
    %10 = vector.load %arg2[%c2_10, %c0_11, %c0_12] : memref<5x96x256xbf16, #tpu.memory_space<vmem>>, vector<1x96x256xbf16>
    %11 = vector.shape_cast %10 : vector<1x96x256xbf16> to vector<96x256xbf16>
    %cst_13 = arith.constant dense<0.000000e+00> : vector<252x256xf32>
    %12 = tpu.matmul %9, %11, %cst_13 {dimension_numbers = #tpu.dot_dimension_numbers<[1], [0], [0], [1], [0, 0, 1, 1], [], []>} : vector<252x96xbf16>, vector<96x256xbf16>, vector<252x256xf32> -> vector<252x256xf32>
    %13 = arith.addf %8, %12 : vector<252x256xf32>
    %c3 = arith.constant 3 : index
    %c0_14 = arith.constant 0 : index
    %14 = vector.load %arg1[%c3, %c0_14] : memref<256x96xbf16, #tpu.memory_space<vmem>>, vector<252x96xbf16>
    %c3_15 = arith.constant 3 : index
    %c0_16 = arith.constant 0 : index
    %c0_17 = arith.constant 0 : index
    %15 = vector.load %arg2[%c3_15, %c0_16, %c0_17] : memref<5x96x256xbf16, #tpu.memory_space<vmem>>, vector<1x96x256xbf16>
    %16 = vector.shape_cast %15 : vector<1x96x256xbf16> to vector<96x256xbf16>
    %cst_18 = arith.constant dense<0.000000e+00> : vector<252x256xf32>
    %17 = tpu.matmul %14, %16, %cst_18 {dimension_numbers = #tpu.dot_dimension_numbers<[1], [0], [0], [1], [0, 0, 1, 1], [], []>} : vector<252x96xbf16>, vector<96x256xbf16>, vector<252x256xf32> -> vector<252x256xf32>
    %18 = arith.addf %13, %17 : vector<252x256xf32>
    %c4 = arith.constant 4 : index
    %c0_19 = arith.constant 0 : index
    %19 = vector.load %arg1[%c4, %c0_19] : memref<256x96xbf16, #tpu.memory_space<vmem>>, vector<252x96xbf16>
    %c4_20 = arith.constant 4 : index
    %c0_21 = arith.constant 0 : index
    %c0_22 = arith.constant 0 : index
    %20 = vector.load %arg2[%c4_20, %c0_21, %c0_22] : memref<5x96x256xbf16, #tpu.memory_space<vmem>>, vector<1x96x256xbf16>
    %21 = vector.shape_cast %20 : vector<1x96x256xbf16> to vector<96x256xbf16>
    %cst_23 = arith.constant dense<0.000000e+00> : vector<252x256xf32>
    %22 = tpu.matmul %19, %21, %cst_23 {dimension_numbers = #tpu.dot_dimension_numbers<[1], [0], [0], [1], [0, 0, 1, 1], [], []>} : vector<252x96xbf16>, vector<96x256xbf16>, vector<252x256xf32> -> vector<252x256xf32>
    %23 = arith.addf %18, %22 : vector<252x256xf32>
    %24 = vector.extract_strided_slice %23 {offsets = [0, 0], sizes = [252, 128], strides = [1, 1]} : vector<252x256xf32> to vector<252x128xf32>
    %25 = vector.extract_strided_slice %23 {offsets = [0, 128], sizes = [252, 128], strides = [1, 1]} : vector<252x256xf32> to vector<252x128xf32>
    %26 = arith.maximumf %24, %25 : vector<252x128xf32>
    %c0_24 = arith.constant 0 : index
    %c0_25 = arith.constant 0 : index
    %27 = vector.load %arg13[%c0_24, %c0_25] : memref<252x128xf32, #tpu.memory_space<vmem>>, vector<252x128xf32>
    tpu.vector_store %arg13[%c0_24, %c0_25], %26 {strides = array<i32>} : memref<252x128xf32, #tpu.memory_space<vmem>>, vector<252x128xf32>,
    %c0_26 = arith.constant 0 : index
    %c0_27 = arith.constant 0 : index
    %28 = tpu.strided_load %arg13[%c0_26, %c0_27] {strides = array<i32: 2, 1>} : memref<252x128xf32, #tpu.memory_space<vmem>>, vector<126x128xf32>
    %c1_28 = arith.constant 1 : index
    %c0_29 = arith.constant 0 : index
    %29 = tpu.strided_load %arg13[%c1_28, %c0_29] {strides = array<i32: 2, 1>} : memref<252x128xf32, #tpu.memory_space<vmem>>, vector<126x128xf32>
    %30 = arith.maximumf %28, %29 : vector<126x128xf32>
    %c0_30 = arith.constant 0 : index
    %c0_31 = arith.constant 0 : index
    %31 = vector.load %arg3[%c0_30, %c0_31] : memref<1x128xf32, #tpu.memory_space<vmem>>, vector<1x128xf32>
    %32 = vector.broadcast %31 : vector<1x128xf32> to vector<126x128xf32>
    %33 = arith.addf %30, %32 : vector<126x128xf32>
    %cst_32 = arith.constant 0.000000e+00 : f32
    %34 = vector.broadcast %cst_32 : f32 to vector<126x128xf32>
    %35 = arith.maximumf %33, %34 : vector<126x128xf32>
    %36 = arith.truncf %35 : vector<126x128xf32> to vector<126x128xbf16>
    %c0_33 = arith.constant 0 : index
    %c0_34 = arith.constant 0 : index
    %37 = vector.load %arg14[%c0_33, %c0_34] : memref<126x128xbf16, #tpu.memory_space<vmem>>, vector<126x128xbf16>
    tpu.vector_store %arg14[%c0_33, %c0_34], %36 {strides = array<i32>} : memref<126x128xbf16, #tpu.memory_space<vmem>>, vector<126x128xbf16>,
    %c0_35 = arith.constant 0 : index
    %c0_36 = arith.constant 0 : index
    %38 = vector.load %arg14[%c0_35, %c0_36] : memref<126x128xbf16, #tpu.memory_space<vmem>>, vector<122x128xbf16>
    %c0_37 = arith.constant 0 : index
    %c0_38 = arith.constant 0 : index
    %c0_39 = arith.constant 0 : index
    %39 = vector.load %arg4[%c0_37, %c0_38, %c0_39] : memref<5x128x256xbf16, #tpu.memory_space<vmem>>, vector<1x128x256xbf16>
    %40 = vector.shape_cast %39 : vector<1x128x256xbf16> to vector<128x256xbf16>
    %cst_40 = arith.constant dense<0.000000e+00> : vector<122x256xf32>
    %41 = tpu.matmul %38, %40, %cst_40 {dimension_numbers = #tpu.dot_dimension_numbers<[1], [0], [0], [1], [0, 0, 1, 1], [], []>} : vector<122x128xbf16>, vector<128x256xbf16>, vector<122x256xf32> -> vector<122x256xf32>
    %c1_41 = arith.constant 1 : index
    %c0_42 = arith.constant 0 : index
    %42 = vector.load %arg14[%c1_41, %c0_42] : memref<126x128xbf16, #tpu.memory_space<vmem>>, vector<122x128xbf16>
    %c1_43 = arith.constant 1 : index
    %c0_44 = arith.constant 0 : index
    %c0_45 = arith.constant 0 : index
    %43 = vector.load %arg4[%c1_43, %c0_44, %c0_45] : memref<5x128x256xbf16, #tpu.memory_space<vmem>>, vector<1x128x256xbf16>
    %44 = vector.shape_cast %43 : vector<1x128x256xbf16> to vector<128x256xbf16>
    %cst_46 = arith.constant dense<0.000000e+00> : vector<122x256xf32>
    %45 = tpu.matmul %42, %44, %cst_46 {dimension_numbers = #tpu.dot_dimension_numbers<[1], [0], [0], [1], [0, 0, 1, 1], [], []>} : vector<122x128xbf16>, vector<128x256xbf16>, vector<122x256xf32> -> vector<122x256xf32>
    %46 = arith.addf %41, %45 : vector<122x256xf32>
    %c2_47 = arith.constant 2 : index
    %c0_48 = arith.constant 0 : index
    %47 = vector.load %arg14[%c2_47, %c0_48] : memref<126x128xbf16, #tpu.memory_space<vmem>>, vector<122x128xbf16>
    %c2_49 = arith.constant 2 : index
    %c0_50 = arith.constant 0 : index
    %c0_51 = arith.constant 0 : index
    %48 = vector.load %arg4[%c2_49, %c0_50, %c0_51] : memref<5x128x256xbf16, #tpu.memory_space<vmem>>, vector<1x128x256xbf16>
    %49 = vector.shape_cast %48 : vector<1x128x256xbf16> to vector<128x256xbf16>
    %cst_52 = arith.constant dense<0.000000e+00> : vector<122x256xf32>
    %50 = tpu.matmul %47, %49, %cst_52 {dimension_numbers = #tpu.dot_dimension_numbers<[1], [0], [0], [1], [0, 0, 1, 1], [], []>} : vector<122x128xbf16>, vector<128x256xbf16>, vector<122x256xf32> -> vector<122x256xf32>
    %51 = arith.addf %46, %50 : vector<122x256xf32>
    %c3_53 = arith.constant 3 : index
    %c0_54 = arith.constant 0 : index
    %52 = vector.load %arg14[%c3_53, %c0_54] : memref<126x128xbf16, #tpu.memory_space<vmem>>, vector<122x128xbf16>
    %c3_55 = arith.constant 3 : index
    %c0_56 = arith.constant 0 : index
    %c0_57 = arith.constant 0 : index
    %53 = vector.load %arg4[%c3_55, %c0_56, %c0_57] : memref<5x128x256xbf16, #tpu.memory_space<vmem>>, vector<1x128x256xbf16>
    %54 = vector.shape_cast %53 : vector<1x128x256xbf16> to vector<128x256xbf16>
    %cst_58 = arith.constant dense<0.000000e+00> : vector<122x256xf32>
    %55 = tpu.matmul %52, %54, %cst_58 {dimension_numbers = #tpu.dot_dimension_numbers<[1], [0], [0], [1], [0, 0, 1, 1], [], []>} : vector<122x128xbf16>, vector<128x256xbf16>, vector<122x256xf32> -> vector<122x256xf32>
    %56 = arith.addf %51, %55 : vector<122x256xf32>
    %c4_59 = arith.constant 4 : index
    %c0_60 = arith.constant 0 : index
    %57 = vector.load %arg14[%c4_59, %c0_60] : memref<126x128xbf16, #tpu.memory_space<vmem>>, vector<122x128xbf16>
    %c4_61 = arith.constant 4 : index
    %c0_62 = arith.constant 0 : index
    %c0_63 = arith.constant 0 : index
    %58 = vector.load %arg4[%c4_61, %c0_62, %c0_63] : memref<5x128x256xbf16, #tpu.memory_space<vmem>>, vector<1x128x256xbf16>
    %59 = vector.shape_cast %58 : vector<1x128x256xbf16> to vector<128x256xbf16>
    %cst_64 = arith.constant dense<0.000000e+00> : vector<122x256xf32>
    %60 = tpu.matmul %57, %59, %cst_64 {dimension_numbers = #tpu.dot_dimension_numbers<[1], [0], [0], [1], [0, 0, 1, 1], [], []>} : vector<122x128xbf16>, vector<128x256xbf16>, vector<122x256xf32> -> vector<122x256xf32>
    %61 = arith.addf %56, %60 : vector<122x256xf32>
    %62 = vector.extract_strided_slice %61 {offsets = [0, 0], sizes = [122, 128], strides = [1, 1]} : vector<122x256xf32> to vector<122x128xf32>
    %63 = vector.extract_strided_slice %61 {offsets = [0, 128], sizes = [122, 128], strides = [1, 1]} : vector<122x256xf32> to vector<122x128xf32>
    %64 = arith.maximumf %62, %63 : vector<122x128xf32>
    %c0_65 = arith.constant 0 : index
    %c0_66 = arith.constant 0 : index
    %65 = vector.load %arg15[%c0_65, %c0_66] : memref<122x128xf32, #tpu.memory_space<vmem>>, vector<122x128xf32>
    tpu.vector_store %arg15[%c0_65, %c0_66], %64 {strides = array<i32>} : memref<122x128xf32, #tpu.memory_space<vmem>>, vector<122x128xf32>,
    %cst_67 = arith.constant 0.000000e+00 : f32
    %66 = vector.broadcast %cst_67 : f32 to vector<8x128xf32>
    %c0_68 = arith.constant 0 : index
    %c0_69 = arith.constant 0 : index
    %67 = tpu.strided_load %arg15[%c0_68, %c0_69] {strides = array<i32: 16, 1>} : memref<122x128xf32, #tpu.memory_space<vmem>>, vector<8x128xf32>
    %c1_70 = arith.constant 1 : index
    %c0_71 = arith.constant 0 : index
    %68 = tpu.strided_load %arg15[%c1_70, %c0_71] {strides = array<i32: 16, 1>} : memref<122x128xf32, #tpu.memory_space<vmem>>, vector<8x128xf32>
    %69 = arith.maximumf %67, %68 : vector<8x128xf32>
    %c0_72 = arith.constant 0 : index
    %c0_73 = arith.constant 0 : index
    %70 = vector.load %arg5[%c0_72, %c0_73] : memref<1x128xf32, #tpu.memory_space<vmem>>, vector<1x128xf32>
    %71 = vector.broadcast %70 : vector<1x128xf32> to vector<8x128xf32>
    %72 = arith.addf %69, %71 : vector<8x128xf32>
    %cst_74 = arith.constant 0.000000e+00 : f32
    %73 = vector.broadcast %cst_74 : f32 to vector<8x128xf32>
    %74 = arith.maximumf %72, %73 : vector<8x128xf32>
    %75 = arith.truncf %74 : vector<8x128xf32> to vector<8x128xbf16>
    %c0_75 = arith.constant 0 : index
    %c0_76 = arith.constant 0 : index
    %c0_77 = arith.constant 0 : index
    %76 = vector.load %arg6[%c0_75, %c0_76, %c0_77] : memref<5x128x128xbf16, #tpu.memory_space<vmem>>, vector<1x128x128xbf16>
    %77 = vector.shape_cast %76 : vector<1x128x128xbf16> to vector<128x128xbf16>
    %cst_78 = arith.constant dense<0.000000e+00> : vector<8x128xf32>
    %78 = tpu.matmul %75, %77, %cst_78 {dimension_numbers = #tpu.dot_dimension_numbers<[1], [0], [0], [1], [0, 0, 1, 1], [], []>} : vector<8x128xbf16>, vector<128x128xbf16>, vector<8x128xf32> -> vector<8x128xf32>
    %79 = arith.addf %66, %78 : vector<8x128xf32>
    %c2_79 = arith.constant 2 : index
    %c0_80 = arith.constant 0 : index
    %80 = tpu.strided_load %arg15[%c2_79, %c0_80] {strides = array<i32: 16, 1>} : memref<122x128xf32, #tpu.memory_space<vmem>>, vector<8x128xf32>
    %c3_81 = arith.constant 3 : index
    %c0_82 = arith.constant 0 : index
    %81 = tpu.strided_load %arg15[%c3_81, %c0_82] {strides = array<i32: 16, 1>} : memref<122x128xf32, #tpu.memory_space<vmem>>, vector<8x128xf32>
    %82 = arith.maximumf %80, %81 : vector<8x128xf32>
    %c0_83 = arith.constant 0 : index
    %c0_84 = arith.constant 0 : index
    %83 = vector.load %arg5[%c0_83, %c0_84] : memref<1x128xf32, #tpu.memory_space<vmem>>, vector<1x128xf32>
    %84 = vector.broadcast %83 : vector<1x128xf32> to vector<8x128xf32>
    %85 = arith.addf %82, %84 : vector<8x128xf32>
    %cst_85 = arith.constant 0.000000e+00 : f32
    %86 = vector.broadcast %cst_85 : f32 to vector<8x128xf32>
    %87 = arith.maximumf %85, %86 : vector<8x128xf32>
    %88 = arith.truncf %87 : vector<8x128xf32> to vector<8x128xbf16>
    %c1_86 = arith.constant 1 : index
    %c0_87 = arith.constant 0 : index
    %c0_88 = arith.constant 0 : index
    %89 = vector.load %arg6[%c1_86, %c0_87, %c0_88] : memref<5x128x128xbf16, #tpu.memory_space<vmem>>, vector<1x128x128xbf16>
    %90 = vector.shape_cast %89 : vector<1x128x128xbf16> to vector<128x128xbf16>
    %cst_89 = arith.constant dense<0.000000e+00> : vector<8x128xf32>
    %91 = tpu.matmul %88, %90, %cst_89 {dimension_numbers = #tpu.dot_dimension_numbers<[1], [0], [0], [1], [0, 0, 1, 1], [], []>} : vector<8x128xbf16>, vector<128x128xbf16>, vector<8x128xf32> -> vector<8x128xf32>
    %92 = arith.addf %79, %91 : vector<8x128xf32>
    %c4_90 = arith.constant 4 : index
    %c0_91 = arith.constant 0 : index
    %93 = tpu.strided_load %arg15[%c4_90, %c0_91] {strides = array<i32: 16, 1>} : memref<122x128xf32, #tpu.memory_space<vmem>>, vector<8x128xf32>
    %c5 = arith.constant 5 : index
    %c0_92 = arith.constant 0 : index
    %94 = tpu.strided_load %arg15[%c5, %c0_92] {strides = array<i32: 16, 1>} : memref<122x128xf32, #tpu.memory_space<vmem>>, vector<8x128xf32>
    %95 = arith.maximumf %93, %94 : vector<8x128xf32>
    %c0_93 = arith.constant 0 : index
    %c0_94 = arith.constant 0 : index
    %96 = vector.load %arg5[%c0_93, %c0_94] : memref<1x128xf32, #tpu.memory_space<vmem>>, vector<1x128xf32>
    %97 = vector.broadcast %96 : vector<1x128xf32> to vector<8x128xf32>
    %98 = arith.addf %95, %97 : vector<8x128xf32>
    %cst_95 = arith.constant 0.000000e+00 : f32
    %99 = vector.broadcast %cst_95 : f32 to vector<8x128xf32>
    %100 = arith.maximumf %98, %99 : vector<8x128xf32>
    %101 = arith.truncf %100 : vector<8x128xf32> to vector<8x128xbf16>
    %c2_96 = arith.constant 2 : index
    %c0_97 = arith.constant 0 : index
    %c0_98 = arith.constant 0 : index
    %102 = vector.load %arg6[%c2_96, %c0_97, %c0_98] : memref<5x128x128xbf16, #tpu.memory_space<vmem>>, vector<1x128x128xbf16>
    %103 = vector.shape_cast %102 : vector<1x128x128xbf16> to vector<128x128xbf16>
    %cst_99 = arith.constant dense<0.000000e+00> : vector<8x128xf32>
    %104 = tpu.matmul %101, %103, %cst_99 {dimension_numbers = #tpu.dot_dimension_numbers<[1], [0], [0], [1], [0, 0, 1, 1], [], []>} : vector<8x128xbf16>, vector<128x128xbf16>, vector<8x128xf32> -> vector<8x128xf32>
    %105 = arith.addf %92, %104 : vector<8x128xf32>
    %c6 = arith.constant 6 : index
    %c0_100 = arith.constant 0 : index
    %106 = tpu.strided_load %arg15[%c6, %c0_100] {strides = array<i32: 16, 1>} : memref<122x128xf32, #tpu.memory_space<vmem>>, vector<8x128xf32>
    %c7 = arith.constant 7 : index
    %c0_101 = arith.constant 0 : index
    %107 = tpu.strided_load %arg15[%c7, %c0_101] {strides = array<i32: 16, 1>} : memref<122x128xf32, #tpu.memory_space<vmem>>, vector<8x128xf32>
    %108 = arith.maximumf %106, %107 : vector<8x128xf32>
    %c0_102 = arith.constant 0 : index
    %c0_103 = arith.constant 0 : index
    %109 = vector.load %arg5[%c0_102, %c0_103] : memref<1x128xf32, #tpu.memory_space<vmem>>, vector<1x128xf32>
    %110 = vector.broadcast %109 : vector<1x128xf32> to vector<8x128xf32>
    %111 = arith.addf %108, %110 : vector<8x128xf32>
    %cst_104 = arith.constant 0.000000e+00 : f32
    %112 = vector.broadcast %cst_104 : f32 to vector<8x128xf32>
    %113 = arith.maximumf %111, %112 : vector<8x128xf32>
    %114 = arith.truncf %113 : vector<8x128xf32> to vector<8x128xbf16>
    %c3_105 = arith.constant 3 : index
    %c0_106 = arith.constant 0 : index
    %c0_107 = arith.constant 0 : index
    %115 = vector.load %arg6[%c3_105, %c0_106, %c0_107] : memref<5x128x128xbf16, #tpu.memory_space<vmem>>, vector<1x128x128xbf16>
    %116 = vector.shape_cast %115 : vector<1x128x128xbf16> to vector<128x128xbf16>
    %cst_108 = arith.constant dense<0.000000e+00> : vector<8x128xf32>
    %117 = tpu.matmul %114, %116, %cst_108 {dimension_numbers = #tpu.dot_dimension_numbers<[1], [0], [0], [1], [0, 0, 1, 1], [], []>} : vector<8x128xbf16>, vector<128x128xbf16>, vector<8x128xf32> -> vector<8x128xf32>
    %118 = arith.addf %105, %117 : vector<8x128xf32>
    %c8 = arith.constant 8 : index
    %c0_109 = arith.constant 0 : index
    %119 = tpu.strided_load %arg15[%c8, %c0_109] {strides = array<i32: 16, 1>} : memref<122x128xf32, #tpu.memory_space<vmem>>, vector<8x128xf32>
    %c9 = arith.constant 9 : index
    %c0_110 = arith.constant 0 : index
    %120 = tpu.strided_load %arg15[%c9, %c0_110] {strides = array<i32: 16, 1>} : memref<122x128xf32, #tpu.memory_space<vmem>>, vector<8x128xf32>
    %121 = arith.maximumf %119, %120 : vector<8x128xf32>
    %c0_111 = arith.constant 0 : index
    %c0_112 = arith.constant 0 : index
    %122 = vector.load %arg5[%c0_111, %c0_112] : memref<1x128xf32, #tpu.memory_space<vmem>>, vector<1x128xf32>
    %123 = vector.broadcast %122 : vector<1x128xf32> to vector<8x128xf32>
    %124 = arith.addf %121, %123 : vector<8x128xf32>
    %cst_113 = arith.constant 0.000000e+00 : f32
    %125 = vector.broadcast %cst_113 : f32 to vector<8x128xf32>
    %126 = arith.maximumf %124, %125 : vector<8x128xf32>
    %127 = arith.truncf %126 : vector<8x128xf32> to vector<8x128xbf16>
    %c4_114 = arith.constant 4 : index
    %c0_115 = arith.constant 0 : index
    %c0_116 = arith.constant 0 : index
    %128 = vector.load %arg6[%c4_114, %c0_115, %c0_116] : memref<5x128x128xbf16, #tpu.memory_space<vmem>>, vector<1x128x128xbf16>
    %129 = vector.shape_cast %128 : vector<1x128x128xbf16> to vector<128x128xbf16>
    %cst_117 = arith.constant dense<0.000000e+00> : vector<8x128xf32>
    %130 = tpu.matmul %127, %129, %cst_117 {dimension_numbers = #tpu.dot_dimension_numbers<[1], [0], [0], [1], [0, 0, 1, 1], [], []>} : vector<8x128xbf16>, vector<128x128xbf16>, vector<8x128xf32> -> vector<8x128xf32>
    %131 = arith.addf %118, %130 : vector<8x128xf32>
    %c0_118 = arith.constant 0 : index
    %c0_119 = arith.constant 0 : index
    %132 = vector.load %arg7[%c0_118, %c0_119] : memref<1x128xf32, #tpu.memory_space<vmem>>, vector<1x128xf32>
    %133 = vector.broadcast %132 : vector<1x128xf32> to vector<8x128xf32>
    %134 = arith.addf %131, %133 : vector<8x128xf32>
    %cst_120 = arith.constant 0.000000e+00 : f32
    %135 = vector.broadcast %cst_120 : f32 to vector<8x128xf32>
    %136 = arith.maximumf %134, %135 : vector<8x128xf32>
    %137 = arith.truncf %136 : vector<8x128xf32> to vector<8x128xbf16>
    %c0_121 = arith.constant 0 : index
    %c0_122 = arith.constant 0 : index
    %138 = vector.load %arg8[%c0_121, %c0_122] : memref<128x128xbf16, #tpu.memory_space<vmem>>, vector<128x128xbf16>
    %cst_123 = arith.constant dense<0.000000e+00> : vector<8x128xf32>
    %139 = tpu.matmul %137, %138, %cst_123 {dimension_numbers = #tpu.dot_dimension_numbers<[1], [0], [0], [1], [0, 0, 1, 1], [], []>} : vector<8x128xbf16>, vector<128x128xbf16>, vector<8x128xf32> -> vector<8x128xf32>
    %c0_124 = arith.constant 0 : index
    %c0_125 = arith.constant 0 : index
    %140 = vector.load %arg9[%c0_124, %c0_125] : memref<1x128xf32, #tpu.memory_space<vmem>>, vector<1x128xf32>
    %141 = vector.broadcast %140 : vector<1x128xf32> to vector<8x128xf32>
    %142 = arith.addf %139, %141 : vector<8x128xf32>
    %cst_126 = arith.constant 0.000000e+00 : f32
    %143 = vector.broadcast %cst_126 : f32 to vector<8x128xf32>
    %144 = arith.maximumf %142, %143 : vector<8x128xf32>
    %145 = arith.truncf %144 : vector<8x128xf32> to vector<8x128xbf16>
    %c0_127 = arith.constant 0 : index
    %c0_128 = arith.constant 0 : index
    %146 = vector.load %arg10[%c0_127, %c0_128] : memref<128x128xbf16, #tpu.memory_space<vmem>>, vector<128x128xbf16>
    %cst_129 = arith.constant dense<0.000000e+00> : vector<8x128xf32>
    %147 = tpu.matmul %145, %146, %cst_129 {dimension_numbers = #tpu.dot_dimension_numbers<[1], [0], [0], [1], [0, 0, 1, 1], [], []>} : vector<8x128xbf16>, vector<128x128xbf16>, vector<8x128xf32> -> vector<8x128xf32>
    %c0_130 = arith.constant 0 : index
    %c0_131 = arith.constant 0 : index
    %148 = vector.load %arg11[%c0_130, %c0_131] : memref<1x128xf32, #tpu.memory_space<vmem>>, vector<1x128xf32>
    %149 = vector.broadcast %148 : vector<1x128xf32> to vector<8x128xf32>
    %150 = arith.addf %147, %149 : vector<8x128xf32>
    %c0_132 = arith.constant 0 : index
    %c0_133 = arith.constant 0 : index
    %151 = vector.load %arg12[%c0_132, %c0_133] : memref<8x128xf32, #tpu.memory_space<vmem>>, vector<8x128xf32>
    tpu.vector_store %arg12[%c0_132, %c0_133], %150 {strides = array<i32>} : memref<8x128xf32, #tpu.memory_space<vmem>>, vector<8x128xf32>,
    return
  }
  func.func @transform_0(%arg0: i32) -> (i32, i32) {
    %c0_i32 = arith.constant 0 : i32
    %c0_i32_0 = arith.constant 0 : i32
    return %arg0, %c0_i32 : i32, i32
  }
  func.func @transform_1(%arg0: i32) -> (i32, i32, i32) {
    %c0_i32 = arith.constant 0 : i32
    %c0_i32_0 = arith.constant 0 : i32
    %c0_i32_1 = arith.constant 0 : i32
    %c0_i32_2 = arith.constant 0 : i32
    return %c0_i32, %c0_i32_0, %c0_i32_1 : i32, i32, i32
  }
  func.func @transform_2(%arg0: i32) -> (i32, i32) {
    %c0_i32 = arith.constant 0 : i32
    %c0_i32_0 = arith.constant 0 : i32
    %c0_i32_1 = arith.constant 0 : i32
    return %c0_i32, %c0_i32_0 : i32, i32
  }
  func.func @transform_3(%arg0: i32) -> (i32, i32, i32) {
    %c0_i32 = arith.constant 0 : i32
    %c0_i32_0 = arith.constant 0 : i32
    %c0_i32_1 = arith.constant 0 : i32
    %c0_i32_2 = arith.constant 0 : i32
    return %c0_i32, %c0_i32_0, %c0_i32_1 : i32, i32, i32
  }
  func.func @transform_4(%arg0: i32) -> (i32, i32) {
    %c0_i32 = arith.constant 0 : i32
    %c0_i32_0 = arith.constant 0 : i32
    %c0_i32_1 = arith.constant 0 : i32
    return %c0_i32, %c0_i32_0 : i32, i32
  }
  func.func @transform_5(%arg0: i32) -> (i32, i32, i32) {
    %c0_i32 = arith.constant 0 : i32
    %c0_i32_0 = arith.constant 0 : i32
    %c0_i32_1 = arith.constant 0 : i32
    %c0_i32_2 = arith.constant 0 : i32
    return %c0_i32, %c0_i32_0, %c0_i32_1 : i32, i32, i32
  }
  func.func @transform_6(%arg0: i32) -> (i32, i32) {
    %c0_i32 = arith.constant 0 : i32
    %c0_i32_0 = arith.constant 0 : i32
    %c0_i32_1 = arith.constant 0 : i32
    return %c0_i32, %c0_i32_0 : i32, i32
  }
  func.func @transform_7(%arg0: i32) -> (i32, i32) {
    %c0_i32 = arith.constant 0 : i32
    %c0_i32_0 = arith.constant 0 : i32
    %c0_i32_1 = arith.constant 0 : i32
    return %c0_i32, %c0_i32_0 : i32, i32
  }
  func.func @transform_8(%arg0: i32) -> (i32, i32) {
    %c0_i32 = arith.constant 0 : i32
    %c0_i32_0 = arith.constant 0 : i32
    %c0_i32_1 = arith.constant 0 : i32
    return %c0_i32, %c0_i32_0 : i32, i32
  }
  func.func @transform_9(%arg0: i32) -> (i32, i32) {
    %c0_i32 = arith.constant 0 : i32
    %c0_i32_0 = arith.constant 0 : i32
    %c0_i32_1 = arith.constant 0 : i32
    return %c0_i32, %c0_i32_0 : i32, i32
  }
  func.func @transform_10(%arg0: i32) -> (i32, i32) {
    %c0_i32 = arith.constant 0 : i32
    %c0_i32_0 = arith.constant 0 : i32
    %c0_i32_1 = arith.constant 0 : i32
    return %c0_i32, %c0_i32_0 : i32, i32
  }
  func.func @transform_11(%arg0: i32) -> (i32, i32) {
    %c0_i32 = arith.constant 0 : i32
    %c0_i32_0 = arith.constant 0 : i32
    return %arg0, %c0_i32 : i32, i32
  }
}

</mosaic_0001>

<bundles_post_ra>
// kernel: my_custom_net_forward.1
= control target key start
LH: loop header
LB: loop body
LE: loop exit
PB: predicated region body
PF: predicated region fallthrough
CT: control target
= control target key end

     0   :  { %16 = vsyncpa [#allocation6], 0  ;;  %s8808_s0 = inlined_call_operand.vmem [shape: bf16[512,96], index: 0, kind: input, shape index: {}]   ;;  %s8809_s1 = inlined_call_operand.vmem [shape: bf16[5,96,256], index: 1, kind: input, shape index: {}]   ;;  %s8810_s2 = inlined_call_operand.vmem [shape: f32[1,128], index: 2, kind: input, shape index: {}]   ;;  %s8811_s3 = inlined_call_operand.vmem [shape: bf16[5,128,256], index: 3, kind: input, shape index: {}]   ;;  %s8812_s4 = inlined_call_operand.vmem [shape: f32[1,128], index: 4, kind: input, shape index: {}]   ;;  %s8813_s5 = inlined_call_operand.vmem [shape: bf16[5,128,128], index: 5, kind: input, shape index: {}]   ;;  %s8814_s6 = inlined_call_operand.vmem [shape: f32[1,128], index: 6, kind: input, shape index: {}]   ;;  %s8815_s7 = inlined_call_operand.vmem [shape: bf16[128,128], index: 7, kind: input, shape index: {}]   ;;  %s8816_s8 = inlined_call_operand.vmem [shape: f32[1,128], index: 8, kind: input, shape index: {}]   ;;  %s8817_s9 = inlined_call_operand.vmem [shape: bf16[128,128], index: 9, kind: input, shape index: {}]   ;;  %s8818_s10 = inlined_call_operand.vmem [shape: f32[1,128], index: 10, kind: input, shape index: {}]   ;;  %s8819_s11 = inlined_call_operand.hbm [shape: f32[16,128], index: 11, kind: output, shape index: {}]  }
   0x1   :  { %18 = vsyncpa [#allocation6 + $0x1], 0  ;;  %s6413_s17 = smov 0   ;;  %s6415_s18 = smov 0  }
   0x2   :  { %s6417_s19 = smov 0   ;;  %s6419_s20 = smov 0  }
   0x3 LB: > { %8826 = sst [smem:[#allocation8_spill]] %s6343_s19  ;;  %s6434_s21 = sadd.s32 4294967295, %s6347_s20   ;;  %s6347_s20 = sphi %s6419_s20, %s9099_s20   ;;  %s6343_s19 = sphi %s6417_s19, %s9096_s19   ;;  %s6339_s18 = sphi %s6415_s18, %s9098_s18   ;;  %s6335_s17 = sphi %s6413_s17, %s9097_s17  }
   0x4   : > { %s5155_s22 = sadd.s32 4294967294, %s6347_s20   ;;  %s6438_s23 = sadd.s32 1, %s6347_s20  }
   0x5   : > { %s267_s24 = sadd.s32 1, %s6343_s19  ;;  %s264_s25 = ssub.s32 %s6347_s20, %s6438_s23 }
   0x6   : > { %p277_p0 = scmp.ne.s32.totalorder %s6343_s19, %s6339_s18  ;;  %p265_p1 = scmp.eq.s32.totalorder %s264_s25, 0 }
   0x7   : > { %p278_p2 = scmp.eq.s32.totalorder %s6434_s21, 1  ;;  %p283_p3 = scmp.ne.s32.totalorder %s6339_s18, %s6335_s17 }
   0x8   : > { %p284_p4 = scmp.eq.s32.totalorder %s5155_s22, 1  ;;  %p5158_p7 = scmp.ge.s32.totalorder %s6347_s20, 1 }
   0x9   : > { %s6449_s26 = scalar_select %p265_p1, %s6343_s19, %s267_s24  }
   0xa   : > { %p6451_p5 = por %p278_p2, %p277_p0  ;;  %p6455_p6 = por %p284_p4, %p283_p3 }
   0xb   : > { %8827 = sst [smem:[#allocation9_spill]] %s6449_s26  ;;  %p341_p8 = scmp.lt.s32.totalorder %s6347_s20, 3 }
   0xd   : > { %p342_p9 = pnand %p5158_p7, %p341_p8 }
   0xf   : > { %345 = sbr.rel (%p342_p9) target bundleno = 1686 (0x696), region = 64 }
  0x14   : > { %v5973_v0 = vld [vmem:[%s8809_s1 + $0xb4] ss:$8 sps:$4 sm:$0xff]   ;;  %s5160_s12 = sshll.u32 %s6434_s21, 5  ;;  %v8821_v2 = vmov 0   ;;  %v5977_v3 = vld [vmem:[%s8809_s1 + $0xb0] ss:$8 sps:$4 sm:$0xff]  }
  0x15   : > { %v5975_v1 = vld [vmem:[%s8809_s1 + $0x54] ss:$8 sps:$4 sm:$0xff]   ;;  %795 = vmatprep.mubr.bf16.mxu0 %v8821_v2  ;;  %1084 = vmatprep.mubr.bf16.mxu1 %v8821_v2  ;;  %v5978_v4 = vld [vmem:[%s8809_s1 + $0x50] ss:$8 sps:$4 sm:$0xff]   ;;  %p382_p10 = scmp.lt.s32.totalorder %s5160_s12, 63  ;;  %vm714_vm1 = vcmask 785408  }
  0x16   : > { %767 = vmatprep.subr.bf16.mxu0 %v5973_v0  ;;  %1056 = vmatprep.subr.bf16.mxu1 %v5975_v1  ;;  %v5979_v5 = vld [vmem:[%s8809_s1 + $0xa4] ss:$8 sps:$4 sm:$0xff]   ;;  %v5983_v7 = vld [vmem:[%s8809_s1 + $0xa0] ss:$8 sps:$4 sm:$0xff]   ;;  %v5985_v9 = vld [vmem:[%s8809_s1 + $0x94] ss:$8 sps:$4 sm:$0xff]  }
  0x17   : > { %768 = vmatpush1.bf16.msra.mxu0 %v5977_v3  ;;  %1057 = vmatpush1.bf16.msra.mxu1 %v5978_v4  ;;  %v5981_v6 = vld [vmem:[%s8809_s1 + $0x44] ss:$8 sps:$4 sm:$0xff]   ;;  %v5984_v8 = vld [vmem:[%s8809_s1 + $0x40] ss:$8 sps:$4 sm:$0xff]   ;;  %s9101_s12 = smov (!%p382_p10, %s5160_s12), 63  ;;  %vm1262_vm3 = vcmask 1046528  }
  0x18   : > { %769 = vmatprep.subr.bf16.mxu0 %v5979_v5  ;;  %1058 = vmatprep.subr.bf16.mxu1 %v5981_v6  ;;  %v5987_v10 = vld [vmem:[%s8809_s1 + $0x34] ss:$8 sps:$4 sm:$0xff]   ;;  %v5989_v11 = vld [vmem:[%s8809_s1 + $0x90] ss:$8 sps:$4 sm:$0xff]   ;;  %v5991_v13 = vld [vmem:[%s8809_s1 + $0x84] ss:$8 sps:$4 sm:$0xff]  }
  0x19   : > { %v5990_v12 = vld [vmem:[%s8809_s1 + $0x30] ss:$8 sps:$4 sm:$0xff]   ;;  %v5993_v14 = vld [vmem:[%s8809_s1 + $0x24] ss:$8 sps:$4 sm:$0xff]   ;;  %s5161_s25 = sshll.u32 %s9101_s12, 2  ;;  %vm2132_vm4 = vcmask 1045504  }
  0x1a   : > { %v5995_v15 = vld [vmem:[%s8809_s1 + $0x80] ss:$8 sps:$4 sm:$0xff]   ;;  %v5997_v17 = vld [vmem:[%s8809_s1 + $0x74] ss:$8 sps:$4 sm:$0xff]   ;;  %s6521_s29 = scalar_lea.vmem %s8808_s0, %s5161_s25  ;;  %v6001_v19 = vld [vmem:[%s8809_s1 + $0x70] ss:$8 sps:$4 sm:$0xff]  }
  0x1b   : > { %770 = vmatpush1.bf16.msra.mxu0 %v5983_v7  ;;  %1059 = vmatpush1.bf16.msra.mxu1 %v5984_v8  ;;  %v5996_v16 = vld [vmem:[%s8809_s1 + $0x20] ss:$8 sps:$4 sm:$0xff]   ;;  %v5999_v18 = vld [vmem:[%s8809_s1 + $0x14] ss:$8 sps:$4 sm:$0xff]   ;;  %v6002_v20 = vld [vmem:[%s8809_s1 + $0x10] ss:$8 sps:$4 sm:$0xff]  }
  0x1c   : > { %771 = vmatprep.subr.bf16.mxu0 %v5985_v9  ;;  %1060 = vmatprep.subr.bf16.mxu1 %v5987_v10  ;;  %v6003_v21 = vld [vmem:[%s8809_s1 + $0x64] ss:$8 sps:$4 sm:$0xff]   ;;  %v388_v23 = vld [vmem:[%s6521_s29] sm:$0xf]  ;;  %v6545_v32 = vld [vmem:[%s6521_s29 + $0x10] sm:$0xff]   ;;  %vm6351_vm5 = vmmov 0  }
  0x1d   : > { %v6005_v22 = vld [vmem:[%s8809_s1 + $0x4] ss:$8 sps:$4 sm:$0xff]   ;;  %v6007_v27 = vld [vmem:[%s8809_s1 + $0x60] ss:$8 sps:$4 sm:$0xff]   ;;  %v6013_v36 = vld [vmem:[%s8809_s1 + $0x114] ss:$8 sps:$4 sm:$0xff]  }
  0x1e   : > { %v389_v24 = vld [vmem:[%s6521_s29 + $0x4] sm:$0xf]  ;;  %v6010_v26 = vld [vmem:[%s6521_s29 + $0x8] sm:$0xff]   ;;  %vm526_vm0 = vsmask.f32 7424  ;;  %v543_v41 = vshll.u32 %v6545_v32, 16 }
  0x1f   : > { %772 = vmatpush1.bf16.msra.mxu0 %v5989_v11  ;;  %1061 = vmatpush1.bf16.msra.mxu1 %v5990_v12  ;;  %v5174_v25 = vcombine.low %v388_v23, %v389_v24  ;;  %v6008_v28 = vld [vmem:[%s8809_s1] ss:$8 sps:$4 sm:$0xff]   ;;  %v535_v31 = vshll.u32 %v6010_v26, 16  ;;  %v539_v33 = vshrl.u32 %v6010_v26, 16  ;;  %v6011_v40 = vld [vmem:[%s8809_s1 + $0x110] ss:$8 sps:$4 sm:$0xff]  }
  0x20   : > { %773 = vmatprep.subr.bf16.mxu0 %v5991_v13  ;;  %1062 = vmatprep.subr.bf16.mxu1 %v5993_v14  ;;  %v6018_v43 = vld [vmem:[%s8809_s1 + $0x104] ss:$8 sps:$4 sm:$0xff]   ;;  %v545_v46 = vrot.slane %v543_v41, 1  ;;  %v6566_v47 = vld [vmem:[%s6521_s29 + $0x18] sm:$0xff]   ;;  %v6016_v48 = vld [vmem:[%s8809_s1 + $0x100] ss:$8 sps:$4 sm:$0xff]  }
  0x21   : > { %v528_v29 = vshrl.u32 %v5174_v25, 16  ;;  %v530_v30 = vshll.u32 %v5174_v25, 16  ;;  %v537_v35 = vrot.slane %v535_v31, 1  ;;  %v1686_v37 = vrot.slane %v535_v31, 2  ;;  %v6024_v49 = vld [vmem:[%s8809_s1 + $0xf4] ss:$8 sps:$4 sm:$0xff]  }
  0x22   : > { %v1685_v38 = vrot.slane %v539_v33, 1  ;;  %v547_v51 = vshrl.u32 %v6545_v32, 16  ;;  %v551_v52 = vshll.u32 %v6566_v47, 16  ;;  %v6022_v53 = vld [vmem:[%s8809_s1 + $0xf0] ss:$8 sps:$4 sm:$0xff]   ;;  %v6589_v57 = vld [vmem:[%s6521_s29 + $0x20] sm:$0xff]  }
  0x23   : > { %774 = vmatpush1.bf16.msra.mxu0 %v5995_v15  ;;  %1063 = vmatpush1.bf16.msra.mxu1 %v5996_v16  ;;  %v532_v34 = vrot.slane %v530_v30, 1  ;;  %v541_v45 = vor.u32 %v539_v33, %v537_v35  ;;  %v6030_v54 = vld [vmem:[%s8809_s1 + $0xe4] ss:$8 sps:$4 sm:$0xff]   ;;  %v6028_v58 = vld [vmem:[%s8809_s1 + $0xe0] ss:$8 sps:$4 sm:$0xff]   ;;  %v555_v61 = vshrl.u32 %v6566_v47, 16 }
  0x24   : > { %775 = vmatprep.subr.bf16.mxu0 %v5997_v17  ;;  %1064 = vmatprep.subr.bf16.mxu1 %v5999_v18  ;;  %v6558_v44 = vor.u32 %v1686_v37, %v1685_v38  ;;  %v549_v55 = vor.u32 %v547_v51, %v545_v46  ;;  %v553_v56 = vrot.slane %v551_v52, 1  ;;  %v6035_v59 = vld [vmem:[%s8809_s1 + $0xd4] ss:$8 sps:$4 sm:$0xff]   ;;  %v559_v62 = vshll.u32 %v6589_v57, 16  ;;  %v6033_v63 = vld [vmem:[%s8809_s1 + $0xd0] ss:$8 sps:$4 sm:$0xff]  }
  0x25   : > { %v533_v39 = vor.u32 %v532_v34, %v528_v29  ;;  %v546_v50 = vsel %vm526_vm0, %v541_v45, %v545_v46  ;;  %v6039_v0 = vld [vmem:[%s8809_s1 + $0x170] ss:$8 sps:$4 sm:$0xff]   ;;  %v6041_v1 = vld [vmem:[%s8809_s1 + $0x174] ss:$8 sps:$4 sm:$0xff]   ;;  %v6615_v5 = vld [vmem:[%s6521_s29 + $0x28] sm:$0xff]   ;;  %v563_v11 = vshrl.u32 %v6589_v57, 16 }
  0x26   : > { %v554_v60 = vsel %vm526_vm0, %v549_v55, %v553_v56  ;;  %v557_v3 = vor.u32 %v555_v61, %v553_v56  ;;  %v561_v4 = vrot.slane %v559_v62, 1  ;;  %v6044_v6 = vld [vmem:[%s8809_s1 + $0xc4] ss:$8 sps:$4 sm:$0xff]   ;;  %v6042_v7 = vld [vmem:[%s8809_s1 + $0xc0] ss:$8 sps:$4 sm:$0xff]   ;;  %v567_v12 = vshll.u32 %v6615_v5, 16 }
  0x27   : > { %776 = vmatpush1.bf16.msra.mxu0 %v6001_v19  ;;  %1065 = vmatpush1.bf16.msra.mxu1 %v6002_v20  ;;  %v538_v42 = vsel %vm526_vm0, %v533_v39, %v537_v35  ;;  %v6047_v8 = vld [vmem:[%s8809_s1 + $0x164] ss:$8 sps:$4 sm:$0xff]   ;;  %v6045_v9 = vld [vmem:[%s8809_s1 + $0x160] ss:$8 sps:$4 sm:$0xff]   ;;  %v6051_v13 = vld [vmem:[%s8809_s1 + $0x154] ss:$8 sps:$4 sm:$0xff]  }
  0x28   : > { %777 = vmatprep.subr.bf16.mxu0 %v6003_v21  ;;  %1066 = vmatprep.subr.bf16.mxu1 %v6005_v22  ;;  %v562_v10 = vsel %vm526_vm0, %v557_v3, %v561_v4  ;;  %v6049_v14 = vld [vmem:[%s8809_s1 + $0x150] ss:$8 sps:$4 sm:$0xff]   ;;  %v6054_v15 = vld [vmem:[%s8809_s1 + $0x144] ss:$8 sps:$4 sm:$0xff]   ;;  %v1689_v16 = vrot.slane %v547_v51, 1  ;;  %v565_v17 = vor.u32 %v563_v11, %v561_v4  ;;  %v569_v18 = vrot.slane %v567_v12, 1 }
  0x29   : > { %v6647_v19 = vld [vmem:[%s6521_s29 + $0x30] sm:$0xff]   ;;  %v1690_v20 = vrot.slane %v543_v41, 2  ;;  %v1693_v22 = vrot.slane %v555_v61, 1  ;;  %v1694_v23 = vrot.slane %v551_v52, 2  ;;  %v6052_v24 = vld [vmem:[%s8809_s1 + $0x140] ss:$8 sps:$4 sm:$0xff]  }
  0x2a   : > { %v6065_v21 = vld [vmem:[%s8809_s1 + $0x1d4] ss:$8 sps:$4 sm:$0xff]   ;;  %vm1676_vm2 = vsmask.f32 6400  ;;  %v570_v30 = vsel %vm526_vm0, %v565_v17, %v569_v18  ;;  %v575_v31 = vshll.u32 %v6647_v19, 16  ;;  %v1698_v34 = vrot.slane %v559_v62, 2 }
  0x2b   : > { %778 = vmatpush1.bf16.msra.mxu0 %v6007_v27  ;;  %1067 = vmatpush1.bf16.msra.mxu1 %v6008_v28  ;;  %v571_v27 = vshrl.u32 %v6615_v5, 16  ;;  %v6058_v28 = vld [vmem:[%s8809_s1 + $0x134] ss:$8 sps:$4 sm:$0xff]   ;;  %v1695_v29 = vor.u32 %v1694_v23, %v1693_v22  ;;  %v6061_v35 = vld [vmem:[%s8809_s1 + $0x124] ss:$8 sps:$4 sm:$0xff]   ;;  %s5668_s16 = sshll.u32 %s6434_s21, 7 }
  0x2c   : > { %1406 = vmatprep.subr.bf16.mxu0 %v6013_v36  ;;  %1862 = vmatprep.subr.bf16.mxu1 %v6041_v1  ;;  %v6677_v37 = vld [vmem:[%s6521_s29 + $0x38] sm:$0xff]   ;;  %v6700_v55 = vld [vmem:[%s6521_s29 + $0x40] sm:$0xff]   ;;  %v6711_v1 = vld [vmem:[%s6521_s29 + $0x48] sm:$0xff]   ;;  %s8767_s24 = scalar_lea.hbm %s8819_s11, %s5668_s16  ;;  %s6352_s21 = smov [#allocation5]  }
  0x2d   : > { %v1701_v39 = vrot.slane %v571_v27, 1  ;;  %v573_v41 = vor.u32 %v571_v27, %v569_v18  ;;  %v583_v51 = vshll.u32 %v6677_v37, 16  ;;  %v591_v62 = vshll.u32 %v6700_v55, 16  ;;  %v6717_v4 = vld [vmem:[%s6521_s29 + $0x50] sm:$0xff]  }
  0x2e   : > { %5202 = vmatmul.mubr.msk.bf16.vlgmr.msra.gmra.mxu0 %vm714_vm1, %v538_v42  ;;  %5231 = vmatmul.mubr.msk.bf16.vlgmr.msra.gmra.mxu1 %vm714_vm1, %v5174_v25  ;;  %v1691_v25 = vor.u32 %v1690_v20, %v1689_v16  ;;  %v577_v42 = vrot.slane %v575_v31, 1  ;;  %v603_v20 = vshrl.u32 %v6711_v1, 16  ;;  %v611_v23 = vshrl.u32 %v6717_v4, 16 }
  0x2f   : > { %1407 = vmatpush1.bf16.msra.mxu0 %v6011_v40  ;;  %805 = vmatprep.mubr.bf16.mxu0 %v8821_v2  ;;  %v1702_v40 = vrot.slane %v567_v12, 2 }
  0x30   : > { %1094 = vmatprep.mubr.bf16.mxu1 %v8821_v2  ;;  %1408 = vmatprep.subr.bf16.mxu0 %v6018_v43  ;;  %v6668_v33 = vsel %vm1676_vm2, %v6558_v44, %v1691_v25  ;;  %v6674_v36 = vsel %vm1676_vm2, %v1691_v25, %v1695_v29  ;;  %v6059_v43 = vld [vmem:[%s8809_s1 + $0x120] ss:$8 sps:$4 sm:$0xff]  }
  0x31   : > { %1863 = vmatpush1.bf16.msra.mxu1 %v6039_v0  ;;  %v1703_v46 = vor.u32 %v1702_v40, %v1701_v39  ;;  %v1710_v0 = vrot.slane %v583_v51, 2 }
  0x32   : > { %1864 = vmatprep.subr.bf16.mxu1 %v6047_v8 }
  0x33   : > { %1409 = vmatpush1.bf16.msra.mxu0 %v6016_v48  ;;  %v579_v48 = vshrl.u32 %v6647_v19, 16 }
  0x34   : > { %1410 = vmatprep.subr.bf16.mxu0 %v6024_v49 }
  0x35   : > { %1865 = vmatpush1.bf16.msra.mxu1 %v6045_v9  ;;  %v1705_v52 = vrot.slane %v579_v48, 1  ;;  %v581_v56 = vor.u32 %v579_v48, %v577_v42  ;;  %v595_v9 = vshrl.u32 %v6700_v55, 16 }
  0x36   : > { %5203 = vmatmul.mubr.msk.bf16.gmra.mxu0 %vm714_vm1, %v546_v50  ;;  %5232 = vmatmul.mubr.msk.bf16.gmra.mxu1 %vm714_vm1, %v6010_v26  ;;  %v1697_v26 = vrot.slane %v563_v11, 1  ;;  %v578_v50 = vsel %vm526_vm0, %v573_v41, %v577_v42  ;;  %v599_v11 = vshll.u32 %v6711_v1, 16  ;;  %v1721_v41 = vrot.slane %v611_v23, 1 }
  0x37   : > { %815 = vmatprep.mubr.bf16.mxu0 %v8821_v2  ;;  %1104 = vmatprep.mubr.bf16.mxu1 %v8821_v2  ;;  %v1713_v12 = vrot.slane %v595_v9, 1 }
  0x38   : > { %1411 = vmatpush1.bf16.msra.mxu0 %v6022_v53  ;;  %1866 = vmatprep.subr.bf16.mxu1 %v6051_v13  ;;  %v1699_v38 = vor.u32 %v1698_v34, %v1697_v26  ;;  %v1706_v53 = vrot.slane %v575_v31, 2  ;;  %v1714_v13 = vrot.slane %v591_v62, 2  ;;  %v601_v18 = vrot.slane %v599_v11, 1  ;;  %v6749_v31 = vld [vmem:[%s6521_s29 + $0x60] sm:$0xff]   ;;  %v6753_v34 = vld [vmem:[%s6521_s29 + $0x68] sm:$0xff]  }
  0x39   : > { %1412 = vmatprep.subr.bf16.mxu0 %v6030_v54  ;;  %1867 = vmatpush1.bf16.msra.mxu1 %v6049_v14  ;;  %v607_v14 = vshll.u32 %v6717_v4, 16  ;;  %v1717_v26 = vrot.slane %v603_v20, 1  ;;  %v1718_v27 = vrot.slane %v599_v11, 2  ;;  %v623_v39 = vshll.u32 %v6749_v31, 16 }
  0x3a   : > { %1868 = vmatprep.subr.bf16.mxu1 %v6054_v15  ;;  %v6688_v45 = vsel %vm1676_vm2, %v1695_v29, %v1699_v38  ;;  %v6692_v49 = vsel %vm1676_vm2, %v1699_v38, %v1703_v46  ;;  %v1707_v54 = vor.u32 %v1706_v53, %v1705_v52  ;;  %v6729_v15 = vld [vmem:[%s6521_s29 + $0x58] sm:$0xff]   ;;  %v1715_v16 = vor.u32 %v1714_v13, %v1713_v12 }
  0x3b   : > { %v609_v22 = vrot.slane %v607_v14, 1  ;;  %v615_v25 = vshll.u32 %v6729_v15, 16  ;;  %v605_v29 = vor.u32 %v603_v20, %v601_v18  ;;  %v631_v40 = vshll.u32 %v6753_v34, 16  ;;  %v6799_v12 = vld [vmem:[%s6521_s29 + $0x78] sm:$0xf] }
  0x3c   : > { %1413 = vmatpush1.bf16.msra.mxu0 %v6028_v58  ;;  %v585_v58 = vrot.slane %v583_v51, 1  ;;  %v1722_v42 = vrot.slane %v607_v14, 2  ;;  %v625_v52 = vrot.slane %v623_v39, 1  ;;  %v432_v13 = vld [vmem:[%s6521_s29 + $0x7c] sm:$0x7] }
  0x3d   : > { %1414 = vmatprep.subr.bf16.mxu0 %v6035_v59  ;;  %1869 = vmatpush1.bf16.msra.mxu1 %v6052_v24  ;;  %v6705_v59 = vsel %vm1676_vm2, %v1703_v46, %v1707_v54  ;;  %v610_v38 = vsel %vm526_vm0, %v605_v29, %v609_v22  ;;  %v613_v48 = vor.u32 %v611_v23, %v609_v22  ;;  %v1245_v29 = vld [vmem:[%s6521_s29] sm:$0xe] }
  0x3e   : > { %5204 = vmatmul.mubr.msk.bf16.gmra.mxu0 %vm714_vm1, %v554_v60  ;;  %5233 = vmatmul.mubr.msk.bf16.gmra.mxu1 %vm714_vm1, %v6545_v32  ;;  %v6056_v32 = vld [vmem:[%s8809_s1 + $0x130] ss:$8 sps:$4 sm:$0xff]   ;;  %v587_v60 = vshrl.u32 %v6677_v37, 16  ;;  %v586_v61 = vsel %vm526_vm0, %v581_v56, %v585_v58  ;;  %v1723_v46 = vor.u32 %v1722_v42, %v1721_v41  ;;  %v1726_v56 = vrot.slane %v615_v25, 2  ;;  %v419_v41 = vld [vmem:[%s6521_s29 + $0x7c] sm:$0x3] }
  0x3f   : > { %825 = vmatprep.mubr.bf16.mxu0 %v8821_v2  ;;  %1114 = vmatprep.mubr.bf16.mxu1 %v8821_v2  ;;  %v6811_v22 = vcombine.low %v6799_v12, %v432_v13 }
  0x40   : > { %1415 = vmatpush1.bf16.msra.mxu0 %v6033_v63  ;;  %1870 = vmatprep.subr.bf16.mxu1 %v6058_v28  ;;  %v1709_v63 = vrot.slane %v587_v60, 1  ;;  %v1719_v28 = vor.u32 %v1718_v27, %v1717_v26 }
  0x41   : > { %1416 = vmatprep.subr.bf16.mxu0 %v6044_v6  ;;  %1871 = vmatpush1.bf16.msra.mxu1 %v6056_v32  ;;  %v589_v6 = vor.u32 %v587_v60, %v585_v58  ;;  %v619_v32 = vshrl.u32 %v6729_v15, 16 }
  0x42   : > { %1872 = vmatprep.subr.bf16.mxu1 %v6061_v35  ;;  %v1711_v3 = vor.u32 %v1710_v0, %v1709_v63  ;;  %v6756_v35 = vsel %vm1676_vm2, %v1715_v16, %v1719_v28  ;;  %v627_v63 = vshrl.u32 %v6749_v31, 16  ;;  %v633_v0 = vrot.slane %v631_v40, 1 }
  0x44   : > { %1417 = vmatpush1.bf16.msra.mxu0 %v6042_v7  ;;  %v593_v7 = vrot.slane %v591_v62, 1  ;;  %v6722_v8 = vsel %vm1676_vm2, %v1707_v54, %v1711_v3  ;;  %v1725_v54 = vrot.slane %v619_v32, 1  ;;  %v629_v11 = vor.u32 %v627_v63, %v625_v52 }
  0x45   : > { %2276 = vmatprep.subr.bf16.mxu0 %v6065_v21  ;;  %1873 = vmatpush1.bf16.msra.mxu1 %v6059_v43  ;;  %v6738_v21 = vsel %vm1676_vm2, %v1711_v3, %v1715_v16  ;;  %v6762_v43 = vld [vmem:[%s6521_s29 + $0x70] sm:$0xff]   ;;  %v635_v3 = vshrl.u32 %v6753_v34, 16 }
  0x46   : > { %5205 = vmatmul.mubr.msk.bf16.gmra.mxu0 %vm714_vm1, %v562_v10  ;;  %5234 = vmatmul.mubr.msk.bf16.gmra.mxu1 %vm714_vm1, %v6566_v47  ;;  %v594_v10 = vsel %vm526_vm0, %v589_v6, %v593_v7  ;;  %v597_v17 = vor.u32 %v595_v9, %v593_v7  ;;  %v639_v53 = vshll.u32 %v6762_v43, 16  ;;  %v6776_v58 = vor.u32 %v1726_v56, %v1725_v54  ;;  %v6845_v56 = vld [vmem:[%s6521_s29 + $0x8] sm:$0xff]  }
  0x47   : > { %835 = vmatprep.mubr.bf16.mxu0 %v8821_v2  ;;  %1124 = vmatprep.mubr.bf16.mxu1 %v8821_v2  ;;  %v1734_v6 = vrot.slane %v631_v40, 2  ;;  %v1733_v9 = vrot.slane %v635_v3, 1  ;;  %v634_v14 = vsel %vm526_vm0, %v629_v11, %v633_v0  ;;  %v637_v20 = vor.u32 %v635_v3, %v633_v0  ;;  %v6063_v3 = vld [vmem:[%s8809_s1 + $0x1d0] ss:$8 sps:$4 sm:$0xff]   ;;  %v6066_v11 = vld [vmem:[%s8809_s1 + $0x1c0] ss:$8 sps:$4 sm:$0xff]  }
  0x48   : > { %v602_v24 = vsel %vm526_vm0, %v597_v17, %v601_v18  ;;  %v641_v7 = vrot.slane %v639_v53, 1  ;;  %v1738_v16 = vrot.slane %v639_v53, 2  ;;  %v651_v40 = vshrl.u32 %v6811_v22, 16 }
  0x49   : > { %v6803_v18 = vor.u32 %v1734_v6, %v1733_v9  ;;  %v6862_v9 = vld [vmem:[%s6521_s29 + $0x10] sm:$0xff]  }
  0x4a   : > { %v642_v23 = vsel %vm526_vm0, %v637_v20, %v641_v7  ;;  %v6072_v20 = vld [vmem:[%s8809_s1 + $0x1a0] ss:$8 sps:$4 sm:$0xff]  }
  0x4e   : > { %5206 = vmatmul.mubr.msk.bf16.gmra.mxu0 %vm714_vm1, %v570_v30  ;;  %5235 = vmatmul.mubr.msk.bf16.gmra.mxu1 %vm714_vm1, %v6589_v57  ;;  %v617_v30 = vrot.slane %v615_v25, 1 }
  0x4f   : > { %845 = vmatprep.mubr.bf16.mxu0 %v8821_v2  ;;  %1134 = vmatprep.mubr.bf16.mxu1 %v8821_v2 }
  0x50   : > { %v618_v51 = vsel %vm526_vm0, %v613_v48, %v617_v30  ;;  %v621_v60 = vor.u32 %v619_v32, %v617_v30  ;;  %v6830_v32 = vld [vmem:[%s6521_s29 + $0x4] sm:$0xf] }
  0x52   : > { %v626_v62 = vsel %vm526_vm0, %v621_v60, %v625_v52  ;;  %v1264_v60 = vrot.slane %v6845_v56, 1 }
  0x56   : > { %5207 = vmatmul.mubr.msk.bf16.gmra.mxu0 %vm714_vm1, %v578_v50  ;;  %5236 = vmatmul.mubr.msk.bf16.gmra.mxu1 %vm714_vm1, %v6615_v5  ;;  %v6770_v50 = vsel %vm1676_vm2, %v1719_v28, %v1723_v46 }
  0x57   : > { %855 = vmatprep.mubr.bf16.mxu0 %v8821_v2  ;;  %1144 = vmatprep.mubr.bf16.mxu1 %v8821_v2 }
  0x5e   : > { %5208 = vmatmul.mubr.msk.bf16.gmra.mxu0 %vm714_vm1, %v586_v61  ;;  %5237 = vmatmul.mubr.msk.bf16.gmra.mxu1 %vm714_vm1, %v6647_v19  ;;  %v6785_v61 = vsel %vm1676_vm2, %v1723_v46, %v6776_v58 }
  0x5f   : > { %865 = vmatprep.mubr.bf16.mxu0 %v8821_v2  ;;  %1154 = vmatprep.mubr.bf16.mxu1 %v8821_v2 }
  0x66   : > { %5209 = vmatmul.mubr.msk.bf16.gmra.mxu0 %vm714_vm1, %v594_v10  ;;  %5238 = vmatmul.mubr.msk.bf16.gmra.mxu1 %vm714_vm1, %v6677_v37  ;;  %v643_v10 = vshrl.u32 %v6762_v43, 16 }
  0x67   : > { %875 = vmatprep.mubr.bf16.mxu0 %v8821_v2  ;;  %1164 = vmatprep.mubr.bf16.mxu1 %v8821_v2 }
  0x68   : > { %v1737_v17 = vrot.slane %v643_v10, 1  ;;  %v645_v26 = vor.u32 %v643_v10, %v641_v7  ;;  %v6068_v7 = vld [vmem:[%s8809_s1 + $0x1c4] ss:$8 sps:$4 sm:$0xff]   ;;  %v1266_v10 = vrot.slane %v6862_v9, 1 }
  0x6a   : > { %v6815_v25 = vor.u32 %v1738_v16, %v1737_v17  ;;  %v1267_v13 = vsel %vm1262_vm3, %v1264_v60, %v1266_v10  ;;  %v6074_v16 = vld [vmem:[%s8809_s1 + $0x1a4] ss:$8 sps:$4 sm:$0xff]   ;;  %v1268_v17 = vrot.slane %v6566_v47, 1 }
  0x6b   : > { %v6080_v47 = vld [vmem:[%s8809_s1 + $0x184] ss:$8 sps:$4 sm:$0xff]  }
  0x6c   : > { %v6825_v28 = vsel %vm1676_vm2, %v6803_v18, %v6815_v25 }
  0x6e   : > { %5210 = vmatmul.mubr.msk.bf16.gmra.mxu0 %vm714_vm1, %v602_v24  ;;  %5239 = vmatmul.mubr.msk.bf16.gmra.mxu1 %vm714_vm1, %v6700_v55  ;;  %v647_v24 = vshll.u32 %v6811_v22, 16 }
  0x6f   : > { %885 = vmatprep.mubr.bf16.mxu0 %v8821_v2  ;;  %1174 = vmatprep.mubr.bf16.mxu1 %v8821_v2 }
  0x70   : > { %v649_v27 = vrot.slane %v647_v24, 1  ;;  %v1269_v24 = vsel %vm1262_vm3, %v1266_v10, %v1268_v17 }
  0x72   : > { %v650_v30 = vsel %vm526_vm0, %v645_v26, %v649_v27  ;;  %v653_v48 = vor.u32 %v651_v40, %v649_v27  ;;  %v1270_v26 = vrot.slane %v6589_v57, 1  ;;  %v6078_v27 = vld [vmem:[%s8809_s1 + $0x180] ss:$8 sps:$4 sm:$0xff]   ;;  %v1272_v57 = vrot.slane %v6615_v5, 1 }
  0x73   : > { %v1276_v5 = vrot.slane %v6677_v37, 1  ;;  %v1280_v37 = vrot.slane %v6711_v1, 1 }
  0x76   : > { %5211 = vmatmul.mubr.msk.bf16.gmra.mxu0 %vm714_vm1, %v610_v38  ;;  %5240 = vmatmul.mubr.msk.bf16.gmra.mxu1 %vm714_vm1, %v6711_v1  ;;  %v5259_v38 = vcombine.low %v1245_v29, %v6830_v32  ;;  %v1271_v29 = vsel %vm1262_vm3, %v1268_v17, %v1270_v26 }
  0x77   : > { %895 = vmatprep.mubr.bf16.mxu0 %v8821_v2  ;;  %1184 = vmatprep.mubr.bf16.mxu1 %v8821_v2 }
  0x78   : > { %v1678_v42 = vshrl.u32 %v5259_v38, 16  ;;  %v1681_v46 = vshll.u32 %v5259_v38, 16  ;;  %v1263_v54 = vrot.slane %v5259_v38, 1 }
  0x7a   : > { %v1680_v52 = vrot.slane %v1678_v42, 1  ;;  %v1683_v53 = vrot.slane %v1681_v46, 2  ;;  %v1265_v0 = vsel %vm1262_vm3, %v1263_v54, %v1264_v60 }
  0x7e   : > { %5212 = vmatmul.mubr.msk.bf16.gmra.mxu0 %vm714_vm1, %v618_v51  ;;  %5241 = vmatmul.mubr.msk.bf16.gmra.mxu1 %vm714_vm1, %v6717_v4  ;;  %v5218_v51 = vcombine.low %v6799_v12, %v419_v41 }
  0x7f   : > { %905 = vmatprep.mubr.bf16.mxu0 %v8821_v2  ;;  %1194 = vmatprep.mubr.bf16.mxu1 %v8821_v2 }
  0x86   : > { %5213 = vmatmul.mubr.msk.bf16.gmra.mxu0 %vm714_vm1, %v626_v62  ;;  %5242 = vmatmul.mubr.msk.bf16.gmra.mxu1 %vm714_vm1, %v6729_v15  ;;  %v1684_v62 = vor.u32 %v1683_v53, %v1680_v52 }
  0x87   : > { %915 = vmatprep.mubr.bf16.mxu0 %v8821_v2  ;;  %1204 = vmatprep.mubr.bf16.mxu1 %v8821_v2 }
  0x88   : > { %v1688_v6 = vsel %vm1676_vm2, %v1684_v62, %v6558_v44  ;;  %v6071_v44 = vld [vmem:[%s8809_s1 + $0x1b4] ss:$8 sps:$4 sm:$0xff]  }
  0x8e   : > { %5214 = vmatmul.mubr.msk.bf16.gmra.mxu0 %vm714_vm1, %v634_v14  ;;  %5243 = vmatmul.mubr.msk.bf16.gmra.mxu1 %vm714_vm1, %v6749_v31  ;;  %v6069_v14 = vld [vmem:[%s8809_s1 + $0x1b0] ss:$8 sps:$4 sm:$0xff]  }
  0x8f   : > { %925 = vmatprep.mubr.bf16.mxu0 %v8821_v2  ;;  %1214 = vmatprep.mubr.bf16.mxu1 %v8821_v2 }
  0x96   : > { %5215 = vmatmul.mubr.msk.bf16.gmra.mxu0 %vm714_vm1, %v642_v23  ;;  %5244 = vmatmul.mubr.msk.bf16.gmra.mxu1 %vm714_vm1, %v6753_v34  ;;  %v6077_v23 = vld [vmem:[%s8809_s1 + $0x194] ss:$8 sps:$4 sm:$0xff]  }
  0x97   : > { %935 = vmatprep.mubr.bf16.mxu0 %v8821_v2  ;;  %1224 = vmatprep.mubr.bf16.mxu1 %v8821_v2 }
  0x9e   : > { %5216 = vmatmul.mubr.msk.bf16.gmra.mxu0 %vm714_vm1, %v650_v30  ;;  %5245 = vmatmul.mubr.msk.bf16.gmra.mxu1 %vm714_vm1, %v6762_v43  ;;  %v1274_v30 = vrot.slane %v6647_v19, 1  ;;  %v1278_v19 = vrot.slane %v6700_v55, 1 }
  0x9f   : > { %945 = vmatprep.mubr.bf16.mxu0 %v8821_v2  ;;  %1234 = vmatprep.mubr.bf16.mxu1 %v8821_v2 }
  0xa6   : > { %5217 = vmatmul.mubr.msk.bf16.gmra.mxu0 %vm714_vm1, %v653_v48  ;;  %5246 = vmatmul.mubr.msk.bf16.gmra.mxu1 %vm714_vm1, %v5218_v51 }
  0xa7   : > { %1434 = vmatprep.mubr.bf16.mxu0 %v8821_v2  ;;  %1890 = vmatprep.mubr.bf16.mxu1 %v8821_v2 }
  0xae   : > { %5272 = vmatmul.mubr.msk.bf16.vlgmr.msra.gmra.mxu0 %vm714_vm1, %v1265_v0  ;;  %5313 = vmatmul.mubr.msk.bf16.vlgmr.msra.gmra.mxu1 %vm714_vm1, %v1688_v6  ;;  %v1284_v0 = vrot.slane %v6729_v15, 1 }
  0xaf   : > { %2277 = vmatpush1.bf16.msra.mxu0 %v6063_v3  ;;  %1444 = vmatprep.mubr.bf16.mxu0 %v8821_v2 }
  0xb0   : > { %1900 = vmatprep.mubr.bf16.mxu1 %v8821_v2  ;;  %2278 = vmatprep.subr.bf16.mxu0 %v6068_v7 }
  0xb3   : > { %2279 = vmatpush1.bf16.msra.mxu0 %v6066_v11 }
  0xb4   : > { %2280 = vmatprep.subr.bf16.mxu0 %v6071_v44 }
  0xb6   : > { %5273 = vmatmul.mubr.msk.bf16.gmra.mxu0 %vm714_vm1, %v1267_v13  ;;  %5314 = vmatmul.mubr.msk.bf16.gmra.mxu1 %vm714_vm1, %v6668_v33  ;;  %v6075_v33 = vld [vmem:[%s8809_s1 + $0x190] ss:$8 sps:$4 sm:$0xff]  }
  0xb7   : > { %1454 = vmatprep.mubr.bf16.mxu0 %v8821_v2  ;;  %1910 = vmatprep.mubr.bf16.mxu1 %v8821_v2 }
  0xb8   : > { %2281 = vmatpush1.bf16.msra.mxu0 %v6069_v14  ;;  %v1730_v14 = vrot.slane %v623_v39, 2 }
  0xb9   : > { %2282 = vmatprep.subr.bf16.mxu0 %v6074_v16 }
  0xbc   : > { %2283 = vmatpush1.bf16.msra.mxu0 %v6072_v20 }
  0xbd   : > { %2284 = vmatprep.subr.bf16.mxu0 %v6077_v23 }
  0xbe   : > { %5274 = vmatmul.mubr.msk.bf16.gmra.mxu0 %vm714_vm1, %v1269_v24  ;;  %5315 = vmatmul.mubr.msk.bf16.gmra.mxu1 %vm714_vm1, %v6674_v36  ;;  %v1273_v36 = vsel %vm1262_vm3, %v1270_v26, %v1272_v57 }
  0xbf   : > { %1464 = vmatprep.mubr.bf16.mxu0 %v8821_v2  ;;  %1920 = vmatprep.mubr.bf16.mxu1 %v8821_v2 }
  0xc0   : > { %2285 = vmatpush1.bf16.msra.mxu0 %v6075_v33 }
  0xc1   : > { %2286 = vmatprep.subr.bf16.mxu0 %v6080_v47 }
  0xc4   : > { %2287 = vmatpush1.bf16.msra.mxu0 %v6078_v27 }
  0xc6   : > { %5275 = vmatmul.mubr.msk.bf16.gmra.mxu0 %vm714_vm1, %v1271_v29  ;;  %5316 = vmatmul.mubr.msk.bf16.gmra.mxu1 %vm714_vm1, %v6688_v45  ;;  %v1275_v45 = vsel %vm1262_vm3, %v1272_v57, %v1274_v30 }
  0xc7   : > { %1474 = vmatprep.mubr.bf16.mxu0 %v8821_v2  ;;  %1930 = vmatprep.mubr.bf16.mxu1 %v8821_v2 }
  0xce   : > { %5276 = vmatmul.mubr.msk.bf16.gmra.mxu0 %vm714_vm1, %v1273_v36  ;;  %5317 = vmatmul.mubr.msk.bf16.gmra.mxu1 %vm714_vm1, %v6692_v49  ;;  %v1277_v49 = vsel %vm1262_vm3, %v1274_v30, %v1276_v5 }
  0xcf   : > { %1484 = vmatprep.mubr.bf16.mxu0 %v8821_v2  ;;  %1940 = vmatprep.mubr.bf16.mxu1 %v8821_v2 }
  0xd6   : > { %5277 = vmatmul.mubr.msk.bf16.gmra.mxu0 %vm714_vm1, %v1275_v45  ;;  %5318 = vmatmul.mubr.msk.bf16.gmra.mxu1 %vm714_vm1, %v6705_v59  ;;  %v1279_v59 = vsel %vm1262_vm3, %v1276_v5, %v1278_v19 }
  0xd7   : > { %1494 = vmatprep.mubr.bf16.mxu0 %v8821_v2  ;;  %1950 = vmatprep.mubr.bf16.mxu1 %v8821_v2 }
  0xde   : > { %5278 = vmatmul.mubr.msk.bf16.gmra.mxu0 %vm714_vm1, %v1277_v49  ;;  %5319 = vmatmul.mubr.msk.bf16.gmra.mxu1 %vm714_vm1, %v6722_v8  ;;  %v1281_v8 = vsel %vm1262_vm3, %v1278_v19, %v1280_v37 }
  0xdf   : > { %1504 = vmatprep.mubr.bf16.mxu0 %v8821_v2  ;;  %1960 = vmatprep.mubr.bf16.mxu1 %v8821_v2 }
  0xe6   : > { %5279 = vmatmul.mubr.msk.bf16.gmra.mxu0 %vm714_vm1, %v1279_v59  ;;  %5320 = vmatmul.mubr.msk.bf16.gmra.mxu1 %vm714_vm1, %v6738_v21  ;;  %v1282_v21 = vrot.slane %v6717_v4, 1  ;;  %v1288_v59 = vrot.slane %v6753_v34, 1 }
  0xe7   : > { %1514 = vmatprep.mubr.bf16.mxu0 %v8821_v2  ;;  %1970 = vmatprep.mubr.bf16.mxu1 %v8821_v2 }
  0xe8   : > { %v1283_v52 = vsel %vm1262_vm3, %v1280_v37, %v1282_v21  ;;  %v1285_v13 = vsel %vm1262_vm3, %v1282_v21, %v1284_v0 }
  0xee   : > { %v797_v38 = vpop.f32.mrf.mxu0  ;;  %v1086_v40 = vpop.f32.mrf.mxu1  ;;  %5280 = vmatmul.mubr.msk.bf16.gmra.mxu0 %vm714_vm1, %v1281_v8  ;;  %5321 = vmatmul.mubr.msk.bf16.gmra.mxu1 %vm714_vm1, %v6756_v35  ;;  %v1659_v8 = vld [vmem:[%s6521_s29 + $0x7c] sm:$0xf] }
  0xef   : > { %v6946_v55 = vadd.f32 %v1086_v40, %v797_v38  ;;  %1524 = vmatprep.mubr.bf16.mxu0 %v8821_v2  ;;  %1980 = vmatprep.mubr.bf16.mxu1 %v8821_v2 }
  0xf0   : > { %v799_v1 = vpop.f32.mrf.mxu0  ;;  %v1088_v41 = vpop.f32.mrf.mxu1 }
  0xf1   : > { %v6951_v42 = vadd.f32 %v1088_v41, %v799_v1 }
  0xf2   : > { %v801_v46 = vpop.f32.mrf.mxu0  ;;  %v1090_v48 = vpop.f32.mrf.mxu1 }
  0xf3   : > { %v6953_v51 = vadd.f32 %v1090_v48, %v801_v46  ;;  %v7010_v48 = vcombine.low %v6799_v12, %v1659_v8 }
  0xf4   : > { %v803_v53 = vpop.f32.mrf.mxu0  ;;  %v1092_v35 = vpop.f32.mrf.mxu1 }
  0xf5   : > { %v6956_v54 = vadd.f32 %v1092_v35, %v803_v53  ;;  %v1742_v12 = vshrl.u32 %v7010_v48, 16 }
  0xf6   : > { %v807_v60 = vpop.f32.mrf.mxu0  ;;  %v1096_v62 = vpop.f32.mrf.mxu1  ;;  %5281 = vmatmul.mubr.msk.bf16.gmra.mxu0 %vm714_vm1, %v1283_v52  ;;  %5322 = vmatmul.mubr.msk.bf16.gmra.mxu1 %vm714_vm1, %v6770_v50  ;;  %v1729_v50 = vrot.slane %v627_v63, 1  ;;  %v1286_v63 = vrot.slane %v6749_v31, 1 }
  0xf7   : > { %v6961_v4 = vadd.f32 %v1096_v62, %v807_v60  ;;  %1534 = vmatprep.mubr.bf16.mxu0 %v8821_v2  ;;  %1990 = vmatprep.mubr.bf16.mxu1 %v8821_v2 }
  0xf8   : > { %v809_v3 = vpop.f32.mrf.mxu0  ;;  %v1098_v6 = vpop.f32.mrf.mxu1  ;;  %v1731_v39 = vor.u32 %v1730_v14, %v1729_v50  ;;  %v1289_v41 = vsel %vm1262_vm3, %v1286_v63, %v1288_v59 }
  0xf9   : > { %v6966_v7 = vadd.f32 %v1098_v6, %v809_v3 }
  0xfa   : > { %v811_v10 = vpop.f32.mrf.mxu0  ;;  %v1100_v11 = vpop.f32.mrf.mxu1  ;;  %v1732_v36 = vsel %vm1676_vm2, %v6776_v58, %v1731_v39  ;;  %v1736_v46 = vsel %vm1676_vm2, %v1731_v39, %v6803_v18  ;;  %v1745_v18 = vshll.u32 %v7010_v48, 16 }
  0xfb   : > { %v6968_v44 = vadd.f32 %v1100_v11, %v811_v10 }
  0xfc   : > { %v813_v16 = vpop.f32.mrf.mxu0  ;;  %v1102_v15 = vpop.f32.mrf.mxu1 }
  0xfd   : > { %v6975_v17 = vadd.f32 %v1102_v15, %v813_v16  ;;  %v1744_v16 = vrot.slane %v1742_v12, 1  ;;  %v1747_v15 = vrot.slane %v1745_v18, 2 }
  0xfe   : > { %v817_v20 = vpop.f32.mrf.mxu0  ;;  %v1106_v23 = vpop.f32.mrf.mxu1  ;;  %5282 = vmatmul.mubr.msk.bf16.gmra.mxu0 %vm714_vm1, %v1285_v13  ;;  %5323 = vmatmul.mubr.msk.bf16.gmra.mxu1 %vm714_vm1, %v6785_v61  ;;  %v1287_v61 = vsel %vm1262_vm3, %v1284_v0, %v1286_v63  ;;  %v1290_v0 = vrot.slane %v6762_v43, 1 }
  0xff   : > { %v6980_v24 = vadd.f32 %v1106_v23, %v817_v20  ;;  %1544 = vmatprep.mubr.bf16.mxu0 %v8821_v2  ;;  %2000 = vmatprep.mubr.bf16.mxu1 %v8821_v2 }
 0x100   : > { %v819_v33 = vpop.f32.mrf.mxu0  ;;  %v1108_v47 = vpop.f32.mrf.mxu1  ;;  %v1291_v14 = vsel %vm1262_vm3, %v1288_v59, %v1290_v0 }
 0x101   : > { %v6985_v26 = vadd.f32 %v1108_v47, %v819_v33  ;;  %v1292_v33 = vrot.slane %v6811_v22, 1  ;;  %v1748_v47 = vor.u32 %v1747_v15, %v1744_v16 }
 0x102   : > { %v821_v27 = vpop.f32.mrf.mxu0  ;;  %v1110_v29 = vpop.f32.mrf.mxu1 }
 0x103   : > { %v6987_v57 = vadd.f32 %v1110_v29, %v821_v27 }
 0x104   : > { %v823_v30 = vpop.f32.mrf.mxu0  ;;  %v1112_v45 = vpop.f32.mrf.mxu1 }
 0x105   : > { %v6992_v31 = vadd.f32 %v1112_v45, %v823_v30 }
 0x106   : > { %v827_v5 = vpop.f32.mrf.mxu0  ;;  %v1116_v49 = vpop.f32.mrf.mxu1  ;;  %5283 = vmatmul.mubr.msk.bf16.gmra.mxu0 %vm714_vm1, %v1287_v61  ;;  %5324 = vmatmul.mubr.msk.bf16.gmra.mxu1 %vm714_vm1, %v1732_v36 }
 0x107   : > { %v6996_v19 = vadd.f32 %v1116_v49, %v827_v5  ;;  %1554 = vmatprep.mubr.bf16.mxu0 %v8821_v2  ;;  %2010 = vmatprep.mubr.bf16.mxu1 %v8821_v2  ;;  %v1749_v5 = vsel %vm1676_vm2, %v6815_v25, %v1748_v47 }
 0x108   : > { %v829_v37 = vpop.f32.mrf.mxu0  ;;  %v1118_v58 = vpop.f32.mrf.mxu1 }
 0x109   : > { %v7002_v38 = vadd.f32 %v1118_v58, %v829_v37 }
 0x10a   : > { %v831_v40 = vpop.f32.mrf.mxu0  ;;  %v1120_v21 = vpop.f32.mrf.mxu1 }
 0x10b   : > { %v7004_v1 = vadd.f32 %v1120_v21, %v831_v40  ;;  %v2115_v21 = vld [vmem:[%s6521_s29] sm:$0xc] }
 0x10c   : > { %v833_v34 = vpop.f32.mrf.mxu0  ;;  %v1122_v52 = vpop.f32.mrf.mxu1 }
 0x10d   : > { %v7012_v53 = vadd.f32 %v1122_v52, %v833_v34  ;;  %v5341_v52 = vcombine.low %v2115_v21, %v6830_v32 }
 0x10e   : > { %v837_v35 = vpop.f32.mrf.mxu0  ;;  %v1126_v60 = vpop.f32.mrf.mxu1  ;;  %5284 = vmatmul.mubr.msk.bf16.gmra.mxu0 %vm714_vm1, %v1289_v41  ;;  %5325 = vmatmul.mubr.msk.bf16.gmra.mxu1 %vm714_vm1, %v1736_v46 }
 0x10f   : > { %v7016_v62 = vadd.f32 %v1126_v60, %v837_v35  ;;  %1564 = vmatprep.mubr.bf16.mxu0 %v8821_v2  ;;  %2020 = vmatprep.mubr.bf16.mxu1 %v8821_v2 }
 0x110   : > { %v839_v3 = vpop.f32.mrf.mxu0  ;;  %v1128_v6 = vpop.f32.mrf.mxu1 }
 0x111   : > { %v7023_v10 = vadd.f32 %v1128_v6, %v839_v3  ;;  %v2133_v3 = vrot.slane %v5341_v52, 2  ;;  %v2134_v6 = vrot.slane %v6845_v56, 2 }
 0x112   : > { %v841_v11 = vpop.f32.mrf.mxu0  ;;  %v1130_v13 = vpop.f32.mrf.mxu1 }
 0x113   : > { %v7025_v50 = vadd.f32 %v1130_v13, %v841_v11 }
 0x114   : > { %v7028_v20 = vpop.f32.mrf.mxu0  ;;  %v7030_v43 = vpop.f32.mrf.mxu1 }
 0x115   : > { %8830 = vst [vmem:[#allocation10_spill] sm:$0xff] %v7028_v20  ;;  %8831 = vst [vmem:[#allocation11_spill] sm:$0xff] %v7030_v43  ;;  %v6280_v20 = vld [vmem:[%s6521_s29 + $0x48] sm:$0xff]  }
 0x116   : > { %v847_v23 = vpop.f32.mrf.mxu0  ;;  %v1136_v63 = vpop.f32.mrf.mxu1  ;;  %5285 = vmatmul.mubr.msk.bf16.gmra.mxu0 %vm714_vm1, %v1291_v14  ;;  %5326 = vmatmul.mubr.msk.bf16.gmra.mxu1 %vm714_vm1, %v6825_v28  ;;  %v1293_v28 = vsel %vm1262_vm3, %v1290_v0, %v1292_v33 }
 0x117   : > { %v7035_v39 = vadd.f32 %v1136_v63, %v847_v23  ;;  %1574 = vmatprep.mubr.bf16.mxu0 %v8821_v2  ;;  %2030 = vmatprep.mubr.bf16.mxu1 %v8821_v2  ;;  %v2135_v23 = vsel %vm2132_vm4, %v2133_v3, %v2134_v6 }
 0x118   : > { %v849_v27 = vpop.f32.mrf.mxu0  ;;  %v1138_v29 = vpop.f32.mrf.mxu1 }
 0x119   : > { %v7040_v61 = vadd.f32 %v1138_v29, %v849_v27  ;;  %v2136_v29 = vrot.slane %v6862_v9, 2  ;;  %v6274_v9 = vld [vmem:[%s6521_s29 + $0x18] sm:$0xff]  }
 0x11a   : > { %v851_v36 = vpop.f32.mrf.mxu0  ;;  %v1140_v30 = vpop.f32.mrf.mxu1 }
 0x11b   : > { %v7042_v45 = vadd.f32 %v1140_v30, %v851_v36 }
 0x11c   : > { %v7047_v49 = vpop.f32.mrf.mxu0  ;;  %v7049_v22 = vpop.f32.mrf.mxu1 }
 0x11d   : > { %8832 = vst [vmem:[#allocation12_spill] sm:$0xff] %v7047_v49  ;;  %8833 = vst [vmem:[#allocation13_spill] sm:$0xff] %v7049_v22 }
 0x11e   : > { %v857_v59 = vpop.f32.mrf.mxu0  ;;  %v1146_v37 = vpop.f32.mrf.mxu1  ;;  %5286 = vmatmul.mubr.msk.bf16.gmra.mxu0 %vm714_vm1, %v1293_v28  ;;  %5327 = vmatmul.mubr.msk.bf16.gmra.mxu1 %vm714_vm1, %v1749_v5 }
 0x11f   : > { %v7053_v58 = vadd.f32 %v1146_v37, %v857_v59  ;;  %1584 = vmatprep.mubr.bf16.mxu0 %v8821_v2  ;;  %2040 = vmatprep.mubr.bf16.mxu1 %v8821_v2 }
 0x120   : > { %v859_v8 = vpop.f32.mrf.mxu0  ;;  %v1148_v40 = vpop.f32.mrf.mxu1 }
 0x121   : > { %v7058_v25 = vadd.f32 %v1148_v40, %v859_v8  ;;  %v2137_v8 = vsel %vm2132_vm4, %v2134_v6, %v2136_v29 }
 0x122   : > { %v861_v41 = vpop.f32.mrf.mxu0  ;;  %v1150_v46 = vpop.f32.mrf.mxu1 }
 0x123   : > { %v7060_v34 = vadd.f32 %v1150_v46, %v861_v41 }
 0x124   : > { %v7063_v35 = vpop.f32.mrf.mxu0  ;;  %v7065_v60 = vpop.f32.mrf.mxu1 }
 0x125   : > { %8834 = vst [vmem:[#allocation14_spill] sm:$0xff] %v7063_v35  ;;  %8835 = vst [vmem:[#allocation15_spill] sm:$0xff] %v7065_v60 }
 0x126   : > { %v867_v0 = vpop.f32.mrf.mxu0  ;;  %v1156_v12 = vpop.f32.mrf.mxu1  ;;  %5287 = vmatmul.mubr.msk.bf16.gmra.mxu0 %vm714_vm1, %v1292_v33  ;;  %5328 = vmatmul.mubr.msk.bf16.gmra.mxu1 %vm714_vm1, %v1748_v47 }
 0x127   : > { %v7069_v18 = vadd.f32 %v1156_v12, %v867_v0  ;;  %2304 = vmatprep.mubr.bf16.mxu0 %v8821_v2  ;;  %3064 = vmatprep.mubr.bf16.mxu1 %v8821_v2  ;;  %v2138_v0 = vrot.slane %v6274_v9, 2 }
 0x128   : > { %v869_v32 = vpop.f32.mrf.mxu0  ;;  %v1158_v11 = vpop.f32.mrf.mxu1 }
 0x129   : > { %v7074_v13 = vadd.f32 %v1158_v11, %v869_v32 }
 0x12a   : > { %v871_v14 = vpop.f32.mrf.mxu0  ;;  %v1160_v16 = vpop.f32.mrf.mxu1 }
 0x12b   : > { %v7076_v15 = vadd.f32 %v1160_v16, %v871_v14  ;;  %v2139_v16 = vsel %vm2132_vm4, %v2136_v29, %v2138_v0 }
 0x12c   : > { %v7079_v63 = vpop.f32.mrf.mxu0  ;;  %v7081_v33 = vpop.f32.mrf.mxu1 }
 0x12d   : > { %8836 = vst [vmem:[#allocation16_spill] sm:$0xff] %v7079_v63  ;;  %8837 = vst [vmem:[#allocation17_spill] sm:$0xff] %v7081_v33 }
 0x12e   : > { %v877_v47 = vpop.f32.mrf.mxu0  ;;  %v1166_v27 = vpop.f32.mrf.mxu1  ;;  %5354 = vmatmul.mubr.msk.bf16.vlgmr.msra.gmra.mxu0 %vm714_vm1, %v2135_v23 }
 0x12f   : > { %v7084_v56 = vadd.f32 %v1166_v27, %v877_v47  ;;  %2314 = vmatprep.mubr.bf16.mxu0 %v8821_v2 }
 0x130   : > { %v879_v36 = vpop.f32.mrf.mxu0  ;;  %v1168_v30 = vpop.f32.mrf.mxu1 }
 0x131   : > { %v7088_v28 = vadd.f32 %v1168_v30, %v879_v36 }
 0x132   : > { %v881_v5 = vpop.f32.mrf.mxu0  ;;  %v1170_v59 = vpop.f32.mrf.mxu1 }
 0x133   : > { %v7090_v37 = vadd.f32 %v1170_v59, %v881_v5  ;;  %v6275_v5 = vld [vmem:[%s6521_s29 + $0x20] sm:$0xff]  }
 0x134   : > { %v7093_v40 = vpop.f32.mrf.mxu0  ;;  %v7095_v21 = vpop.f32.mrf.mxu1  ;;  %v2140_v59 = vrot.slane %v6275_v5, 2  ;;  %v6276_v5 = vld [vmem:[%s6521_s29 + $0x28] sm:$0xff]  }
 0x135   : > { %8838 = vst [vmem:[#allocation18_spill] sm:$0xff] %v7093_v40  ;;  %8839 = vst [vmem:[#allocation19_spill] sm:$0xff] %v7095_v21 }
 0x136   : > { %v887_v41 = vpop.f32.mrf.mxu0  ;;  %v1176_v46 = vpop.f32.mrf.mxu1  ;;  %5355 = vmatmul.mubr.msk.bf16.gmra.mxu0 %vm714_vm1, %v2137_v8 }
 0x137   : > { %v7098_v52 = vadd.f32 %v1176_v46, %v887_v41  ;;  %2324 = vmatprep.mubr.bf16.mxu0 %v8821_v2 }
 0x138   : > { %v889_v12 = vpop.f32.mrf.mxu0  ;;  %v1178_v3 = vpop.f32.mrf.mxu1 }
 0x139   : > { %v7102_v32 = vadd.f32 %v1178_v3, %v889_v12  ;;  %v2141_v3 = vsel %vm2132_vm4, %v2138_v0, %v2140_v59 }
 0x13a   : > { %v891_v6 = vpop.f32.mrf.mxu0  ;;  %v1180_v11 = vpop.f32.mrf.mxu1 }
 0x13b   : > { %v7104_v14 = vadd.f32 %v1180_v11, %v891_v6 }
 0x13c   : > { %v7107_v23 = vpop.f32.mrf.mxu0  ;;  %v7109_v47 = vpop.f32.mrf.mxu1 }
 0x13d   : > { %8840 = vst [vmem:[#allocation20_spill] sm:$0xff] %v7107_v23  ;;  %8841 = vst [vmem:[#allocation21_spill] sm:$0xff] %v7109_v47 }
 0x13e   : > { %v897_v27 = vpop.f32.mrf.mxu0  ;;  %v1186_v36 = vpop.f32.mrf.mxu1  ;;  %5356 = vmatmul.mubr.msk.bf16.gmra.mxu0 %vm714_vm1, %v2139_v16 }
 0x13f   : > { %v7112_v30 = vadd.f32 %v1186_v36, %v897_v27  ;;  %2334 = vmatprep.mubr.bf16.mxu0 %v8821_v2 }
 0x140   : > { %v899_v8 = vpop.f32.mrf.mxu0  ;;  %v1188_v41 = vpop.f32.mrf.mxu1 }
 0x141   : > { %v7116_v46 = vadd.f32 %v1188_v41, %v899_v8  ;;  %v2142_v8 = vrot.slane %v6276_v5, 2  ;;  %v8846_v5 = vmov 0  }
 0x142   : > { %v901_v29 = vpop.f32.mrf.mxu0  ;;  %v1190_v9 = vpop.f32.mrf.mxu1 }
 0x143   : > { %v7118_v12 = vadd.f32 %v1190_v9, %v901_v29 }
 0x144   : > { %v7121_v6 = vpop.f32.mrf.mxu0  ;;  %v7123_v11 = vpop.f32.mrf.mxu1 }
 0x145   : > { %8842 = vst [vmem:[#allocation22_spill] sm:$0xff] %v7121_v6  ;;  %8843 = vst [vmem:[#allocation23_spill] sm:$0xff] %v7123_v11  ;;  %v2143_v11 = vsel %vm2132_vm4, %v2140_v59, %v2142_v8 }
 0x146   : > { %v907_v16 = vpop.f32.mrf.mxu0  ;;  %v1196_v27 = vpop.f32.mrf.mxu1  ;;  %5357 = vmatmul.mubr.msk.bf16.gmra.mxu0 %vm714_vm1, %v2141_v3 }
 0x147   : > { %v7126_v36 = vadd.f32 %v1196_v27, %v907_v16  ;;  %2344 = vmatprep.mubr.bf16.mxu0 %v8821_v2 }
 0x148   : > { %v909_v41 = vpop.f32.mrf.mxu0  ;;  %v1198_v29 = vpop.f32.mrf.mxu1 }
 0x149   : > { %v7130_v9 = vadd.f32 %v1198_v29, %v909_v41  ;;  %v6277_v41 = vld [vmem:[%s6521_s29 + $0x30] sm:$0xff]  }
 0x14a   : > { %v911_v0 = vpop.f32.mrf.mxu0  ;;  %v1200_v47 = vpop.f32.mrf.mxu1  ;;  %v2144_v29 = vrot.slane %v6277_v41, 2 }
 0x14b   : > { %v7132_v6 = vadd.f32 %v1200_v47, %v911_v0 }
 0x14c   : > { %v7135_v23 = vpop.f32.mrf.mxu0  ;;  %v7137_v3 = vpop.f32.mrf.mxu1 }
 0x14d   : > { %8844 = vst [vmem:[#allocation24_spill] sm:$0xff] %v7135_v23  ;;  %8845 = vst [vmem:[#allocation25_spill] sm:$0xff] %v7137_v3  ;;  %v2145_v3 = vsel %vm2132_vm4, %v2142_v8, %v2144_v29 }
 0x14e   : > { %v917_v16 = vpop.f32.mrf.mxu0  ;;  %v1206_v27 = vpop.f32.mrf.mxu1  ;;  %5358 = vmatmul.mubr.msk.bf16.gmra.mxu0 %vm714_vm1, %v2143_v11 }
 0x14f   : > { %v7140_v2 = vadd.f32 %v1206_v27, %v917_v16  ;;  %2354 = vmatprep.mubr.bf16.mxu0 %v8846_v5 }
 0x150   : > { %v919_v21 = vpop.f32.mrf.mxu0  ;;  %v1208_v47 = vpop.f32.mrf.mxu1 }
 0x151   : > { %v7144_v0 = vadd.f32 %v1208_v47, %v919_v21  ;;  %v6278_v21 = vld [vmem:[%s6521_s29 + $0x38] sm:$0xff]  }
 0x152   : > { %v921_v59 = vpop.f32.mrf.mxu0  ;;  %v1210_v40 = vpop.f32.mrf.mxu1  ;;  %v2146_v41 = vrot.slane %v6278_v21, 2  ;;  %v6279_v21 = vld [vmem:[%s6521_s29 + $0x40] sm:$0xff]  }
 0x153   : > { %v7146_v23 = vadd.f32 %v1210_v40, %v921_v59 }
 0x154   : > { %v7149_v33 = vpop.f32.mrf.mxu0  ;;  %v7151_v11 = vpop.f32.mrf.mxu1 }
 0x155   : > { %8847 = vst [vmem:[#allocation26_spill] sm:$0xff] %v7149_v33  ;;  %8848 = vst [vmem:[#allocation27_spill] sm:$0xff] %v7151_v11  ;;  %v2147_v11 = vsel %vm2132_vm4, %v2144_v29, %v2146_v41  ;;  %v6083_v29 = vld [vmem:[%s8811_s3 + $0xf0] ss:$8 sps:$4 sm:$0xff]  }
 0x156   : > { %v927_v16 = vpop.f32.mrf.mxu0  ;;  %v1216_v27 = vpop.f32.mrf.mxu1  ;;  %5359 = vmatmul.mubr.msk.bf16.gmra.mxu0 %vm714_vm1, %v2145_v3 }
 0x157   : > { %v7154_v63 = vadd.f32 %v1216_v27, %v927_v16  ;;  %2364 = vmatprep.mubr.bf16.mxu0 %v8846_v5 }
 0x158   : > { %v929_v47 = vpop.f32.mrf.mxu0  ;;  %v1218_v40 = vpop.f32.mrf.mxu1 }
 0x159   : > { %v7158_v59 = vadd.f32 %v1218_v40, %v929_v47  ;;  %v2148_v47 = vrot.slane %v6279_v21, 2 }
 0x15a   : > { %v931_v8 = vpop.f32.mrf.mxu0  ;;  %v1220_v60 = vpop.f32.mrf.mxu1 }
 0x15b   : > { %v7160_v33 = vadd.f32 %v1220_v60, %v931_v8  ;;  %v6085_v8 = vld [vmem:[%s8811_s3 + $0xf4] ss:$8 sps:$4 sm:$0xff]  }
 0x15c   : > { %v7163_v35 = vpop.f32.mrf.mxu0  ;;  %v7165_v3 = vpop.f32.mrf.mxu1  ;;  %3032 = vmatprep.subr.bf16.mxu1 %v6085_v8 }
 0x15d   : > { %8849 = vst [vmem:[#allocation28_spill] sm:$0xff] %v7163_v35  ;;  %8850 = vst [vmem:[#allocation29_spill] sm:$0xff] %v7165_v3  ;;  %v2149_v3 = vsel %vm2132_vm4, %v2146_v41, %v2148_v47  ;;  %3033 = vmatpush1.bf16.msra.mxu1 %v6083_v29 }
 0x15e   : > { %v937_v16 = vpop.f32.mrf.mxu0  ;;  %v1226_v27 = vpop.f32.mrf.mxu1  ;;  %5360 = vmatmul.mubr.msk.bf16.gmra.mxu0 %vm714_vm1, %v2147_v11 }
 0x15f   : > { %v7168_v22 = vadd.f32 %v1226_v27, %v937_v16  ;;  %2374 = vmatprep.mubr.bf16.mxu0 %v8846_v5 }
 0x160   : > { %v939_v40 = vpop.f32.mrf.mxu0  ;;  %v1228_v49 = vpop.f32.mrf.mxu1 }
 0x161   : > { %v7172_v60 = vadd.f32 %v1228_v49, %v939_v40 }
 0x162   : > { %v941_v11 = vpop.f32.mrf.mxu0  ;;  %v1230_v16 = vpop.f32.mrf.mxu1 }
 0x163   : > { %8851 = vst [vmem:[#allocation30_spill] sm:$0xff] %v7172_v60  ;;  %v7180_v27 = vadd.f32 %v1230_v16, %v941_v11  ;;  %v2150_v11 = vrot.slane %v6280_v20, 2 }
 0x164   : > { %v7183_v21 = vpop.f32.mrf.mxu0  ;;  %v7185_v49 = vpop.f32.mrf.mxu1 }
 0x165   : > { %8852 = vst [vmem:[#allocation31_spill] sm:$0xff] %v7180_v27  ;;  %8853 = vst [vmem:[#allocation32_spill] sm:$0xff] %v7183_v21  ;;  %v2151_v29 = vsel %vm2132_vm4, %v2148_v47, %v2150_v11 }
 0x166   : > { %8854 = vst [vmem:[#allocation33_spill] sm:$0xff] %v7185_v49  ;;  %v947_v40 = vpop.f32.mrf.mxu0  ;;  %v1236_v35 = vpop.f32.mrf.mxu1  ;;  %5361 = vmatmul.mubr.msk.bf16.gmra.mxu0 %vm714_vm1, %v2149_v3 }
 0x167   : > { %v7188_v43 = vadd.f32 %v1236_v35, %v947_v40  ;;  %2384 = vmatprep.mubr.bf16.mxu0 %v8846_v5 }
 0x168   : > { %v949_v16 = vpop.f32.mrf.mxu0  ;;  %v1238_v27 = vpop.f32.mrf.mxu1 }
 0x169   : > { %v7192_v41 = vadd.f32 %v1238_v27, %v949_v16  ;;  %v6281_v27 = vld [vmem:[%s6521_s29 + $0x50] sm:$0xff]  }
 0x16a   : > { %v951_v8 = vpop.f32.mrf.mxu0  ;;  %v1240_v21 = vpop.f32.mrf.mxu1  ;;  %v2152_v16 = vrot.slane %v6281_v27, 2  ;;  %v6086_v27 = vld [vmem:[%s8811_s3 + $0xe0] ss:$8 sps:$4 sm:$0xff]  }
 0x16b   : > { %v7194_v60 = vadd.f32 %v1240_v21, %v951_v8 }
 0x16c   : > { %v7197_v49 = vpop.f32.mrf.mxu0  ;;  %v7199_v3 = vpop.f32.mrf.mxu1 }
 0x16d   : > { %8855 = vst [vmem:[#allocation34_spill] sm:$0xff] %v7197_v49  ;;  %8856 = vst [vmem:[#allocation35_spill] sm:$0xff] %v7199_v3 }
 0x16e   : > { %v1436_v35 = vpop.f32.mrf.mxu0  ;;  %5362 = vmatmul.mubr.msk.bf16.gmra.mxu0 %vm714_vm1, %v2151_v29  ;;  %v7202_v40 = vpop.f32.mrf.mxu1  ;;  %v2153_v29 = vsel %vm2132_vm4, %v2150_v11, %v2152_v16  ;;  %v6282_v11 = vld [vmem:[%s6521_s29 + $0x58] sm:$0xff]  }
 0x16f   : > { %8857 = vst [vmem:[#allocation36_spill] sm:$0xff] %v7202_v40  ;;  %v7205_v20 = vadd.f32 %v1436_v35, %v6946_v55  ;;  %2394 = vmatprep.mubr.bf16.mxu0 %v8846_v5 }
 0x170   : > { %v1438_v21 = vpop.f32.mrf.mxu0  ;;  %v7209_v8 = vpop.f32.mrf.mxu1 }
 0x171   : > { %v7212_v47 = vadd.f32 %v1438_v21, %v6951_v42  ;;  %v6088_v42 = vld [vmem:[%s8811_s3 + $0xe4] ss:$8 sps:$4 sm:$0xff]  }
 0x172   : > { %v1440_v3 = vpop.f32.mrf.mxu0  ;;  %v7218_v55 = vpop.f32.mrf.mxu1  ;;  %3034 = vmatprep.subr.bf16.mxu1 %v6088_v42 }
 0x173   : > { %v7215_v49 = vadd.f32 %v1440_v3, %v6953_v51  ;;  %8859 = vst [vmem:[#allocation38_spill] sm:$0xff] %v7218_v55  ;;  %v2154_v3 = vrot.slane %v6282_v11, 2  ;;  %3035 = vmatpush1.bf16.msra.mxu1 %v6086_v27 }
 0x174   : > { %v1442_v40 = vpop.f32.mrf.mxu0 }
 0x175   : > { %8858 = vst [vmem:[#allocation37_spill] sm:$0xff] %v7215_v49  ;;  %v7221_v35 = vadd.f32 %v1442_v40, %v6956_v54  ;;  %v7235_v54 = vpop.f32.mrf.mxu1 }
 0x176   : > { %v1446_v21 = vpop.f32.mrf.mxu0  ;;  %5363 = vmatmul.mubr.msk.bf16.gmra.mxu0 %vm714_vm1, %v2153_v29 }
 0x177   : > { %8860 = vst [vmem:[#allocation39_spill] sm:$0xff] %v7221_v35  ;;  %v7231_v51 = vadd.f32 %v1446_v21, %v6961_v4  ;;  %2404 = vmatprep.mubr.bf16.mxu0 %v8846_v5  ;;  %v2155_v4 = vsel %vm2132_vm4, %v2152_v16, %v2154_v3  ;;  %v7244_v29 = vpop.f32.mrf.mxu1 }
 0x178   : > { %v1448_v40 = vpop.f32.mrf.mxu0 }
 0x179   : > { %v7238_v35 = vadd.f32 %v1448_v40, %v6966_v7  ;;  %v6283_v7 = vld [vmem:[%s6521_s29 + $0x60] sm:$0xff]  }
 0x17a   : > { %v1450_v55 = vpop.f32.mrf.mxu0 }
 0x17b   : > { %v7241_v49 = vadd.f32 %v1450_v55, %v6968_v44  ;;  %v2156_v44 = vrot.slane %v6283_v7, 2  ;;  %v7255_v55 = vpop.f32.mrf.mxu1 }
 0x17c   : > { %v1452_v21 = vpop.f32.mrf.mxu0 }
 0x17d   : > { %8861 = vst [vmem:[#allocation40_spill] sm:$0xff] %v7241_v49  ;;  %v7247_v11 = vadd.f32 %v1452_v21, %v6975_v17  ;;  %v7264_v21 = vpop.f32.mrf.mxu1 }
 0x17e   : > { %v1456_v42 = vpop.f32.mrf.mxu0  ;;  %5364 = vmatmul.mubr.msk.bf16.gmra.mxu0 %vm714_vm1, %v2155_v4  ;;  %v2157_v4 = vsel %vm2132_vm4, %v2154_v3, %v2156_v44 }
 0x17f   : > { %v7251_v27 = vadd.f32 %v1456_v42, %v6980_v24  ;;  %2414 = vmatprep.mubr.bf16.mxu0 %v8846_v5 }
 0x180   : > { %v1458_v16 = vpop.f32.mrf.mxu0 }
 0x181   : > { %8862 = vst [vmem:[#allocation41_spill] sm:$0xff] %v7251_v27  ;;  %v7258_v40 = vadd.f32 %v1458_v16, %v6985_v26  ;;  %v6284_v26 = vld [vmem:[%s6521_s29 + $0x68] sm:$0xff]  }
 0x182   : > { %v1460_v49 = vpop.f32.mrf.mxu0  ;;  %v2158_v16 = vrot.slane %v6284_v26, 2  ;;  %v6092_v26 = vld [vmem:[%s8811_s3 + $0x170] ss:$8 sps:$4 sm:$0xff]  }
 0x183   : > { %v7261_v17 = vadd.f32 %v1460_v49, %v6987_v57  ;;  %v7275_v57 = vpop.f32.mrf.mxu1 }
 0x184   : > { %v1462_v24 = vpop.f32.mrf.mxu0 }
 0x185   : > { %8863 = vst [vmem:[#allocation42_spill] sm:$0xff] %v7261_v17  ;;  %v7267_v42 = vadd.f32 %v1462_v24, %v6992_v31 }
 0x186   : > { %v1466_v27 = vpop.f32.mrf.mxu0  ;;  %5365 = vmatmul.mubr.msk.bf16.gmra.mxu0 %vm714_vm1, %v2157_v4  ;;  %v2159_v4 = vsel %vm2132_vm4, %v2156_v44, %v2158_v16  ;;  %v6285_v44 = vld [vmem:[%s6521_s29 + $0x70] sm:$0xff]   ;;  %s378_s29 = sand.u32 1, %s6339_s18  }
 0x187   : > { %v7271_v7 = vadd.f32 %v1466_v27, %v6996_v19  ;;  %2424 = vmatprep.mubr.bf16.mxu0 %v8846_v5  ;;  %v6094_v19 = vld [vmem:[%s8811_s3 + $0x174] ss:$8 sps:$4 sm:$0xff]   ;;  %v7287_v27 = vpop.f32.mrf.mxu1  ;;  %s5159_s26 = sshll.u32 %s378_s29, 3  ;;  %s5083_s30 = scalar_lea.sflag [#allocation6], %s378_s29 }
 0x188   : > { %v1468_v49 = vpop.f32.mrf.mxu0  ;;  %3473 = vmatprep.subr.bf16.mxu0 %v6094_v19  ;;  %v6098_v19 = vld [vmem:[%s8811_s3 + $0x160] ss:$8 sps:$4 sm:$0xff]   ;;  %s380_s22 = scalar_lea.vmem [#allocation5], %s5159_s26  ;;  %s6291_s26 = sshll.u32 %s6352_s21, 4  ;;  %s6292_s26 = int_to_ptr.vmem [resolvable:$false] %s6291_s26 }
 0x189   : > { %v7278_v3 = vadd.f32 %v1468_v49, %v7002_v38  ;;  %3474 = vmatpush1.bf16.msra.mxu0 %v6092_v26  ;;  %s5096_s19 = sshll.u32 %s380_s22, 4  ;;  %s6293_s14 = scalar_lea.vmem %s6292_s26, 256  ;;  %s8769_s19 = int_to_ptr.vmem [resolvable:$true] %s5096_s19 }
 0x18a   : > { %v1470_v17 = vpop.f32.mrf.mxu0  ;;  %s6287_s13 = scalar_lea.vmem %s8769_s19, 128  ;;  %p6294_p0 = scmp.lt.s32.totalorder %s8769_s19, %s6292_s26 }
 0x18b   : > { %8864 = vst [vmem:[#allocation43_spill] sm:$0xff] %v7278_v3  ;;  %v7281_v31 = vadd.f32 %v1470_v17, %v7004_v1  ;;  %v2160_v17 = vrot.slane %v6285_v44, 2  ;;  %v7304_v3 = vpop.f32.mrf.mxu1  ;;  %p6288_p11 = scmp.ne.s32.totalorder %s8769_s19, %s6287_s13  ;;  %p6295_p1 = scmp.lt.s32.totalorder %s6293_s14, %s6287_s13 }
 0x18c   : > { %v1472_v24 = vpop.f32.mrf.mxu0 }
 0x18d   : > { %8865 = vst [vmem:[#allocation44_spill] sm:$0xff] %v7281_v31  ;;  %v7293_v38 = vadd.f32 %v1472_v24, %v7012_v53  ;;  %v6100_v31 = vld [vmem:[%s8811_s3 + $0x164] ss:$8 sps:$4 sm:$0xff]   ;;  %v6091_v24 = vld [vmem:[%s8811_s3 + $0xd4] ss:$8 sps:$4 sm:$0xff]   ;;  %v2161_v44 = vsel %vm2132_vm4, %v2158_v16, %v2160_v17  ;;  %p6289_p12 = pnand %p6288_p11, %p6451_p5  ;;  %p6296_p2 = por %p6295_p1, %p6294_p0 }
 0x18e   : > { %v1476_v49 = vpop.f32.mrf.mxu0  ;;  %5366 = vmatmul.mubr.msk.bf16.gmra.mxu0 %vm714_vm1, %v2159_v4  ;;  %3475 = vmatprep.subr.bf16.mxu0 %v6100_v31  ;;  %v6101_v31 = vld [vmem:[%s8811_s3 + $0x150] ss:$8 sps:$4 sm:$0xff]  }
 0x18f   : > { %v7297_v1 = vadd.f32 %v1476_v49, %v7016_v62  ;;  %2434 = vmatprep.mubr.bf16.mxu0 %v8846_v5  ;;  %v6089_v62 = vld [vmem:[%s8811_s3 + $0xd0] ss:$8 sps:$4 sm:$0xff]   ;;  %3036 = vmatprep.subr.bf16.mxu1 %v6091_v24  ;;  %p6290_p13 = pneg %p6289_p12 }
 0x190   : > { %v1478_v53 = vpop.f32.mrf.mxu0  ;;  %3476 = vmatpush1.bf16.msra.mxu0 %v6098_v19  ;;  %3037 = vmatpush1.bf16.msra.mxu1 %v6089_v62  ;;  %v2162_v19 = vrot.slane %v7010_v48, 2  ;;  %v6106_v62 = vld [vmem:[%s8811_s3 + $0x144] ss:$8 sps:$4 sm:$0xff]  }
 0x191   : > { %v7310_v4 = vadd.f32 %v1478_v53, %v7023_v10  ;;  %v6103_v10 = vld [vmem:[%s8811_s3 + $0x154] ss:$8 sps:$4 sm:$0xff]   ;;  %v7325_v53 = vpop.f32.mrf.mxu1  ;;  %p6297_p3 = pnand %p6296_p2, %p6290_p13 }
 0x192   : > { %v1480_v26 = vpop.f32.mrf.mxu0  ;;  %3477 = vmatprep.subr.bf16.mxu0 %v6103_v10  ;;  %v6104_v10 = vld [vmem:[%s8811_s3 + $0x140] ss:$8 sps:$4 sm:$0xff]  }
 0x193   : > { %8866 = vst [vmem:[#allocation45_spill] sm:$0xff] %v7310_v4  ;;  %v7319_v49 = vadd.f32 %v1480_v26, %v7025_v50  ;;  %v7341_v24 = vpop.f32.mrf.mxu1 }
 0x194   : > { %v7327_v4 = vpop.f32.mrf.mxu0  ;;  %3478 = vmatpush1.bf16.msra.mxu0 %v6101_v31  ;;  %v6095_v31 = vld [vmem:[%s8811_s3 + $0xc0] ss:$8 sps:$4 sm:$0xff]  }
 0x195   : > { %3479 = vmatprep.subr.bf16.mxu0 %v6106_v62  ;;  %v6107_v62 = vld [vmem:[%s8811_s3 + $0x130] ss:$8 sps:$4 sm:$0xff]  }
 0x196   : > { %v1486_v50 = vpop.f32.mrf.mxu0  ;;  %5367 = vmatmul.mubr.msk.bf16.gmra.mxu0 %vm714_vm1, %v2161_v44 }
 0x197   : > { %v7334_v16 = vadd.f32 %v1486_v50, %v7035_v39  ;;  %2444 = vmatprep.mubr.bf16.mxu0 %v8846_v5  ;;  %v6097_v39 = vld [vmem:[%s8811_s3 + $0xc4] ss:$8 sps:$4 sm:$0xff]  }
 0x198   : > { %v1488_v26 = vpop.f32.mrf.mxu0  ;;  %3038 = vmatprep.subr.bf16.mxu1 %v6097_v39  ;;  %3480 = vmatpush1.bf16.msra.mxu0 %v6104_v10  ;;  %v6110_v10 = vld [vmem:[%s8811_s3 + $0xb0] ss:$8 sps:$4 sm:$0xff]  }
 0x199   : > { %8867 = vst [vmem:[#allocation46_spill] sm:$0xff] %v7334_v16  ;;  %v7347_v44 = vadd.f32 %v1488_v26, %v7040_v61  ;;  %v2163_v16 = vsel %vm2132_vm4, %v2160_v17, %v2162_v19  ;;  %v6109_v61 = vld [vmem:[%s8811_s3 + $0x134] ss:$8 sps:$4 sm:$0xff]   ;;  %v7362_v26 = vpop.f32.mrf.mxu1  ;;  %3039 = vmatpush1.bf16.msra.mxu1 %v6095_v31 }
 0x19a   : > { %v1490_v48 = vpop.f32.mrf.mxu0  ;;  %3481 = vmatprep.subr.bf16.mxu0 %v6109_v61 }
 0x19b   : > { %8868 = vst [vmem:[#allocation47_spill] sm:$0xff] %v7347_v44  ;;  %v7356_v50 = vadd.f32 %v1490_v48, %v7042_v45  ;;  %v6112_v45 = vld [vmem:[%s8811_s3 + $0xb4] ss:$8 sps:$4 sm:$0xff]   ;;  %v6115_v48 = vld [vmem:[%s8811_s3 + $0x124] ss:$8 sps:$4 sm:$0xff]   ;;  %v7383_v31 = vpop.f32.mrf.mxu1 }
 0x19c   : > { %v7364_v44 = vpop.f32.mrf.mxu0  ;;  %3482 = vmatpush1.bf16.msra.mxu0 %v6107_v62  ;;  %3040 = vmatprep.subr.bf16.mxu1 %v6112_v45 }
 0x19d   : > { %8869 = vst [vmem:[#allocation48_spill] sm:$0xff] %v7356_v50  ;;  %3041 = vmatpush1.bf16.msra.mxu1 %v6110_v10  ;;  %3483 = vmatprep.subr.bf16.mxu0 %v6115_v48  ;;  %v7403_v10 = vpop.f32.mrf.mxu1 }
 0x19e   : > { %v1496_v17 = vpop.f32.mrf.mxu0  ;;  %5368 = vmatmul.mubr.msk.bf16.gmra.mxu0 %vm714_vm1, %v2163_v16  ;;  %v6113_v16 = vld [vmem:[%s8811_s3 + $0x120] ss:$8 sps:$4 sm:$0xff]  }
 0x19f   : > { %v7377_v39 = vadd.f32 %v1496_v17, %v7053_v58  ;;  %2454 = vmatprep.mubr.bf16.mxu0 %v8846_v5  ;;  %v6118_v58 = vld [vmem:[%s8811_s3 + $0xa4] ss:$8 sps:$4 sm:$0xff]   ;;  %v6116_v17 = vld [vmem:[%s8811_s3 + $0xa0] ss:$8 sps:$4 sm:$0xff]  }
 0x1a0   : > { %v1498_v61 = vpop.f32.mrf.mxu0  ;;  %3484 = vmatpush1.bf16.msra.mxu0 %v6113_v16  ;;  %3042 = vmatprep.subr.bf16.mxu1 %v6118_v58  ;;  %v6122_v58 = vld [vmem:[%s8811_s3 + $0x90] ss:$8 sps:$4 sm:$0xff]  }
 0x1a1   : > { %v7389_v50 = vadd.f32 %v1498_v61, %v7058_v25  ;;  %v6121_v25 = vld [vmem:[%s8811_s3 + $0x114] ss:$8 sps:$4 sm:$0xff]   ;;  %v6119_v61 = vld [vmem:[%s8811_s3 + $0x110] ss:$8 sps:$4 sm:$0xff]   ;;  %3043 = vmatpush1.bf16.msra.mxu1 %v6116_v17  ;;  %v6127_v17 = vld [vmem:[%s8811_s3 + $0x104] ss:$8 sps:$4 sm:$0xff]  }
 0x1a2   : > { %v1500_v62 = vpop.f32.mrf.mxu0  ;;  %3485 = vmatprep.subr.bf16.mxu0 %v6121_v25  ;;  %v7423_v25 = vpop.f32.mrf.mxu1 }
 0x1a3   : > { %8870 = vst [vmem:[#allocation49_spill] sm:$0xff] %v7389_v50  ;;  %v7398_v45 = vadd.f32 %v1500_v62, %v7060_v34  ;;  %v6124_v34 = vld [vmem:[%s8811_s3 + $0x94] ss:$8 sps:$4 sm:$0xff]  }
 0x1a4   : > { %v7405_v48 = vpop.f32.mrf.mxu0  ;;  %3486 = vmatpush1.bf16.msra.mxu0 %v6119_v61  ;;  %3044 = vmatprep.subr.bf16.mxu1 %v6124_v34  ;;  %v6128_v34 = vld [vmem:[%s8811_s3 + $0x80] ss:$8 sps:$4 sm:$0xff]  }
 0x1a5   : > { %8871 = vst [vmem:[#allocation50_spill] sm:$0xff] %v7398_v45  ;;  %8872 = vst [vmem:[#allocation51_spill] sm:$0xff] %v7405_v48  ;;  %3045 = vmatpush1.bf16.msra.mxu1 %v6122_v58  ;;  %3487 = vmatprep.subr.bf16.mxu0 %v6127_v17 }
 0x1a6   : > { %v1506_v16 = vpop.f32.mrf.mxu0  ;;  %5369 = vmatmul.mubr.msk.bf16.gmra.mxu0 %vm714_vm1, %v2162_v19  ;;  %v6125_v19 = vld [vmem:[%s8811_s3 + $0x100] ss:$8 sps:$4 sm:$0xff]  }
 0x1a7   : > { %v7418_v62 = vadd.f32 %v1506_v16, %v7069_v18  ;;  %3505 = vmatprep.mubr.bf16.mxu0 %v8846_v5  ;;  %v6130_v18 = vld [vmem:[%s8811_s3 + $0x84] ss:$8 sps:$4 sm:$0xff]   ;;  %v7441_v5 = vpop.f32.mrf.mxu1 }
 0x1a8   : > { %v1508_v45 = vpop.f32.mrf.mxu0  ;;  %3488 = vmatpush1.bf16.msra.mxu0 %v6125_v19  ;;  %3046 = vmatprep.subr.bf16.mxu1 %v6130_v18 }
 0x1a9   : > { %8873 = vst [vmem:[#allocation52_spill] sm:$0xff] %v7418_v62  ;;  %v7430_v48 = vadd.f32 %v1508_v45, %v7074_v13  ;;  %3047 = vmatpush1.bf16.msra.mxu1 %v6128_v34  ;;  %v7448_v17 = vpop.f32.mrf.mxu1 }
 0x1aa   : > { %v1510_v61 = vpop.f32.mrf.mxu0 }
 0x1ab   : > { %8874 = vst [vmem:[#allocation53_spill] sm:$0xff] %v7430_v48  ;;  %v7439_v16 = vadd.f32 %v1510_v61, %v7076_v15  ;;  %v7456_v19 = vpop.f32.mrf.mxu1 }
 0x1ac   : > { %v7443_v13 = vpop.f32.mrf.mxu0 }
 0x1ae   : > { %v1516_v45 = vpop.f32.mrf.mxu0 }
 0x1af   : > { %v7446_v58 = vadd.f32 %v1516_v45, %v7084_v56  ;;  %v7463_v56 = vpop.f32.mrf.mxu1 }
 0x1b0   : > { %v1518_v48 = vpop.f32.mrf.mxu0 }
 0x1b1   : > { %8875 = vst [vmem:[#allocation54_spill] sm:$0xff] %v7446_v58  ;;  %v7451_v62 = vadd.f32 %v1518_v48, %v7088_v28 }
 0x1b2   : > { %v1520_v50 = vpop.f32.mrf.mxu0 }
 0x1b3   : > { %v7454_v15 = vadd.f32 %v1520_v50, %v7090_v37  ;;  %v7471_v37 = vpop.f32.mrf.mxu1 }
 0x1b4   : > { %v7458_v18 = vpop.f32.mrf.mxu0 }
 0x1b5   : > { %8876 = vst [vmem:[#allocation55_spill] sm:$0xff] %v7454_v15  ;;  %8877 = vst [vmem:[#allocation56_spill] sm:$0xff] %v7458_v18 }
 0x1b6   : > { %v1526_v61 = vpop.f32.mrf.mxu0 }
 0x1b7   : > { %v7461_v34 = vadd.f32 %v1526_v61, %v7098_v52  ;;  %v7478_v52 = vpop.f32.mrf.mxu1 }
 0x1b8   : > { %v1528_v45 = vpop.f32.mrf.mxu0 }
 0x1b9   : > { %8878 = vst [vmem:[#allocation57_spill] sm:$0xff] %v7461_v34  ;;  %v7466_v58 = vadd.f32 %v1528_v45, %v7102_v32 }
 0x1ba   : > { %v1530_v28 = vpop.f32.mrf.mxu0 }
 0x1bb   : > { %8879 = vst [vmem:[#allocation58_spill] sm:$0xff] %v7466_v58  ;;  %v7469_v48 = vadd.f32 %v1530_v28, %v7104_v14  ;;  %v7486_v14 = vpop.f32.mrf.mxu1 }
 0x1bc   : > { %v7473_v50 = vpop.f32.mrf.mxu0 }
 0x1bd   : > { %8880 = vst [vmem:[#allocation59_spill] sm:$0xff] %v7469_v48  ;;  %8881 = vst [vmem:[#allocation60_spill] sm:$0xff] %v7473_v50 }
 0x1be   : > { %v1536_v15 = vpop.f32.mrf.mxu0 }
 0x1bf   : > { %v7476_v18 = vadd.f32 %v1536_v15, %v7112_v30  ;;  %v7493_v30 = vpop.f32.mrf.mxu1 }
 0x1c0   : > { %v1538_v61 = vpop.f32.mrf.mxu0 }
 0x1c1   : > { %8882 = vst [vmem:[#allocation61_spill] sm:$0xff] %v7476_v18  ;;  %v7481_v34 = vadd.f32 %v1538_v61, %v7116_v46 }
 0x1c2   : > { %v1540_v32 = vpop.f32.mrf.mxu0 }
 0x1c3   : > { %8883 = vst [vmem:[#allocation62_spill] sm:$0xff] %v7481_v34  ;;  %v7484_v45 = vadd.f32 %v1540_v32, %v7118_v12  ;;  %v7501_v12 = vpop.f32.mrf.mxu1 }
 0x1c4   : > { %v7488_v28 = vpop.f32.mrf.mxu0 }
 0x1c5   : > { %8884 = vst [vmem:[#allocation63_spill] sm:$0xff] %v7484_v45  ;;  %8885 = vst [vmem:[#allocation64_spill] sm:$0xff] %v7488_v28 }
 0x1c6   : > { %v1546_v48 = vpop.f32.mrf.mxu0 }
 0x1c7   : > { %v7491_v58 = vadd.f32 %v1546_v48, %v7126_v36  ;;  %v7508_v36 = vpop.f32.mrf.mxu1 }
 0x1c8   : > { %v1548_v15 = vpop.f32.mrf.mxu0 }
 0x1c9   : > { %8886 = vst [vmem:[#allocation65_spill] sm:$0xff] %v7491_v58  ;;  %v7496_v18 = vadd.f32 %v1548_v15, %v7130_v9 }
 0x1ca   : > { %v1550_v46 = vpop.f32.mrf.mxu0 }
 0x1cb   : > { %8887 = vst [vmem:[#allocation66_spill] sm:$0xff] %v7496_v18  ;;  %v7499_v61 = vadd.f32 %v1550_v46, %v7132_v6  ;;  %v7516_v6 = vpop.f32.mrf.mxu1 }
 0x1cc   : > { %v7503_v32 = vpop.f32.mrf.mxu0 }
 0x1cd   : > { %8888 = vst [vmem:[#allocation67_spill] sm:$0xff] %v7499_v61  ;;  %8889 = vst [vmem:[#allocation68_spill] sm:$0xff] %v7503_v32  ;;  %v8911_v32 = vld [vmem:[#allocation39_spill] sm:$0xff] }
 0x1ce   : > { %v1556_v45 = vpop.f32.mrf.mxu0  ;;  %v2054_v34 = vadd.f32 %v7235_v54, %v8911_v32 }
 0x1cf   : > { %v7506_v28 = vadd.f32 %v1556_v45, %v7140_v2  ;;  %v7523_v2 = vpop.f32.mrf.mxu1 }
 0x1d0   : > { %v1558_v48 = vpop.f32.mrf.mxu0 }
 0x1d1   : > { %8890 = vst [vmem:[#allocation69_spill] sm:$0xff] %v7506_v28  ;;  %v7511_v58 = vadd.f32 %v1558_v48, %v7144_v0 }
 0x1d2   : > { %v1560_v9 = vpop.f32.mrf.mxu0 }
 0x1d3   : > { %8891 = vst [vmem:[#allocation70_spill] sm:$0xff] %v7511_v58  ;;  %v7514_v15 = vadd.f32 %v1560_v9, %v7146_v23  ;;  %v7531_v23 = vpop.f32.mrf.mxu1 }
 0x1d4   : > { %v7518_v46 = vpop.f32.mrf.mxu0 }
 0x1d5   : > { %8892 = vst [vmem:[#allocation71_spill] sm:$0xff] %v7514_v15  ;;  %8893 = vst [vmem:[#allocation72_spill] sm:$0xff] %v7518_v46 }
 0x1d6   : > { %v1566_v61 = vpop.f32.mrf.mxu0 }
 0x1d7   : > { %v7521_v18 = vadd.f32 %v1566_v61, %v7154_v63  ;;  %v7538_v63 = vpop.f32.mrf.mxu1 }
 0x1d8   : > { %v1568_v45 = vpop.f32.mrf.mxu0 }
 0x1d9   : > { %8894 = vst [vmem:[#allocation73_spill] sm:$0xff] %v7521_v18  ;;  %v7526_v28 = vadd.f32 %v1568_v45, %v7158_v59  ;;  %v8899_v18 = vld [vmem:[#allocation30_spill] sm:$0xff]  ;;  %v8901_v45 = vld [vmem:[#allocation31_spill] sm:$0xff] }
 0x1da   : > { %v1570_v0 = vpop.f32.mrf.mxu0 }
 0x1db   : > { %8895 = vst [vmem:[#allocation74_spill] sm:$0xff] %v7526_v28  ;;  %v7529_v48 = vadd.f32 %v1570_v0, %v7160_v33  ;;  %v7546_v33 = vpop.f32.mrf.mxu1 }
 0x1dc   : > { %v7533_v9 = vpop.f32.mrf.mxu0 }
 0x1dd   : > { %8896 = vst [vmem:[#allocation75_spill] sm:$0xff] %v7529_v48  ;;  %8897 = vst [vmem:[#allocation76_spill] sm:$0xff] %v7533_v9 }
 0x1de   : > { %v1576_v15 = vpop.f32.mrf.mxu0 }
 0x1df   : > { %v7536_v46 = vadd.f32 %v1576_v15, %v7168_v22  ;;  %v7553_v22 = vpop.f32.mrf.mxu1 }
 0x1e0   : > { %v1578_v61 = vpop.f32.mrf.mxu0 }
 0x1e1   : > { %8898 = vst [vmem:[#allocation77_spill] sm:$0xff] %v7536_v46  ;;  %v7541_v58 = vadd.f32 %v1578_v61, %v8899_v18 }
 0x1e2   : > { %v1580_v59 = vpop.f32.mrf.mxu0 }
 0x1e3   : > { %8900 = vst [vmem:[#allocation30_spill] sm:$0xff] %v7541_v58  ;;  %v7544_v28 = vadd.f32 %v1580_v59, %v8901_v45  ;;  %v7561_v59 = vpop.f32.mrf.mxu1 }
 0x1e4   : > { %v7548_v0 = vpop.f32.mrf.mxu0 }
 0x1e5   : > { %8902 = vst [vmem:[#allocation31_spill] sm:$0xff] %v7544_v28  ;;  %8903 = vst [vmem:[#allocation78_spill] sm:$0xff] %v7548_v0  ;;  %v8908_v0 = vld [vmem:[#allocation36_spill] sm:$0xff] }
 0x1e6   : > { %v1586_v48 = vpop.f32.mrf.mxu0  ;;  %v2051_v58 = vadd.f32 %v8908_v0, %v7205_v20 }
 0x1e7   : > { %v7551_v9 = vadd.f32 %v1586_v48, %v7188_v43  ;;  %v2052_v43 = vadd.f32 %v7209_v8, %v7212_v47  ;;  %v7569_v48 = vpop.f32.mrf.mxu1 }
 0x1e8   : > { %v1588_v15 = vpop.f32.mrf.mxu0 }
 0x1e9   : > { %8904 = vst [vmem:[#allocation79_spill] sm:$0xff] %v7551_v9  ;;  %v7556_v46 = vadd.f32 %v1588_v15, %v7192_v41  ;;  %v7578_v0 = vpop.f32.mrf.mxu1 }
 0x1ea   : > { %v1590_v18 = vpop.f32.mrf.mxu0 }
 0x1eb   : > { %8905 = vst [vmem:[#allocation80_spill] sm:$0xff] %v7556_v46  ;;  %v7559_v61 = vadd.f32 %v1590_v18, %v7194_v60  ;;  %v6139_v60 = vld [vmem:[%s8811_s3 + $0x74] ss:$8 sps:$4 sm:$0xff]  }
 0x1ec   : > { %v7563_v45 = vpop.f32.mrf.mxu0  ;;  %v8910_v46 = vld [vmem:[#allocation38_spill] sm:$0xff]  ;;  %3236 = vmatprep.subr.bf16.mxu1 %v6139_v60 }
 0x1ed   : > { %8906 = vst [vmem:[#allocation81_spill] sm:$0xff] %v7559_v61  ;;  %8907 = vst [vmem:[#allocation82_spill] sm:$0xff] %v7563_v45  ;;  %v8909_v61 = vld [vmem:[#allocation37_spill] sm:$0xff] }
 0x1ee   : > { %v2306_v28 = vpop.f32.mrf.mxu0  ;;  %v2053_v45 = vadd.f32 %v8910_v46, %v8909_v61  ;;  %v7584_v46 = vpop.f32.mrf.mxu1 }
 0x1ef   : > { %v2465_v41 = vadd.f32 %v2306_v28, %v2051_v58 }
 0x1f0   : > { %v2308_v9 = vpop.f32.mrf.mxu0 }
 0x1f1   : > { %v2466_v15 = vadd.f32 %v2308_v9, %v2052_v43  ;;  %v2055_v9 = vadd.f32 %v7244_v29, %v7231_v51  ;;  %v2056_v43 = vadd.f32 %v7255_v55, %v7238_v35 }
 0x1f2   : > { %v2310_v18 = vpop.f32.mrf.mxu0 }
 0x1f3   : > { %v2529_v20 = vmax.f32 %v2465_v41, %v2466_v15  ;;  %v2467_v47 = vadd.f32 %v2310_v18, %v2053_v45  ;;  %v8912_v15 = vld [vmem:[#allocation40_spill] sm:$0xff]  ;;  %v7590_v18 = vpop.f32.mrf.mxu1 }
 0x1f4   : > { %v2312_v8 = vpop.f32.mrf.mxu0  ;;  %v2057_v60 = vadd.f32 %v7264_v21, %v8912_v15  ;;  %v2060_v21 = vadd.f32 %v7304_v3, %v7258_v40 }
 0x1f5   : > { %2561 = vst [vmem:[#allocation2] sm:$0xff] %v2529_v20  ;;  %v2468_v58 = vadd.f32 %v2312_v8, %v2054_v34  ;;  %v2058_v34 = vadd.f32 %v7275_v57, %v7247_v11  ;;  %v8913_v20 = vld [vmem:[#allocation41_spill] sm:$0xff]  ;;  %v7599_v11 = vpop.f32.mrf.mxu1 }
 0x1f6   : > { %v2316_v28 = vpop.f32.mrf.mxu0  ;;  %v2059_v8 = vadd.f32 %v7287_v27, %v8913_v20  ;;  %v2062_v27 = vadd.f32 %v7341_v24, %v7267_v42 }
 0x1f7   : > { %v2530_v50 = vmax.f32 %v2467_v47, %v2468_v58  ;;  %v2469_v54 = vadd.f32 %v2316_v28, %v2055_v9  ;;  %v7605_v15 = vpop.f32.mrf.mxu1 }
 0x1f8   : > { %v2318_v61 = vpop.f32.mrf.mxu0 }
 0x1f9   : > { %2562 = vst [vmem:[#allocation2 + $0x8] sm:$0xff] %v2530_v50  ;;  %v2470_v32 = vadd.f32 %v2318_v61, %v2056_v43  ;;  %v6153_v50 = vld [vmem:[%s8811_s3 + $0x274] ss:$8 sps:$4 sm:$0xff]  }
 0x1fa   : > { %v2320_v41 = vpop.f32.mrf.mxu0  ;;  %4037 = vmatprep.subr.bf16.mxu0 %v6153_v50 }
 0x1fb   : > { %v2531_v45 = vmax.f32 %v2469_v54, %v2470_v32  ;;  %v2471_v35 = vadd.f32 %v2320_v41, %v2057_v60  ;;  %v8914_v54 = vld [vmem:[#allocation42_spill] sm:$0xff] }
 0x1fc   : > { %v2322_v51 = vpop.f32.mrf.mxu0  ;;  %v2061_v32 = vadd.f32 %v7325_v53, %v8914_v54  ;;  %v2063_v53 = vadd.f32 %v7362_v26, %v7271_v7  ;;  %v2066_v7 = vadd.f32 %v7423_v25, %v7293_v38 }
 0x1fd   : > { %2563 = vst [vmem:[#allocation2 + $0x10] sm:$0xff] %v2531_v45  ;;  %v2472_v29 = vadd.f32 %v2322_v51, %v2058_v34  ;;  %v7610_v45 = vld [vmem:[%s8810_s2] ss:$0 sm:$0xff] }
 0x1fe   : > { %v2326_v55 = vpop.f32.mrf.mxu0 }
 0x1ff   : > { %v2532_v47 = vmax.f32 %v2471_v35, %v2472_v29  ;;  %v2473_v58 = vadd.f32 %v2326_v55, %v2059_v8  ;;  %v8915_v35 = vld [vmem:[#allocation43_spill] sm:$0xff]  ;;  %v7616_v29 = vpop.f32.mrf.mxu1 }
 0x200   : > { %v2328_v57 = vpop.f32.mrf.mxu0  ;;  %v2593_v9 = vld [vmem:[#allocation2] ss:$2 sm:$0xff]  ;;  %v2625_v43 = vld [vmem:[#allocation2 + $0x1] ss:$2 sm:$0xff]  ;;  %v2064_v42 = vadd.f32 %v7383_v31, %v8915_v35 }
 0x201   : > { %2564 = vst [vmem:[#allocation2 + $0x18] sm:$0xff] %v2532_v47  ;;  %v2474_v28 = vadd.f32 %v2328_v57, %v2060_v21  ;;  %v2656_v3 = vmax.f32 %v2593_v9, %v2625_v43  ;;  %v8917_v43 = vld [vmem:[#allocation10_spill] sm:$0xff] }
 0x202   : > { %v2330_v61 = vpop.f32.mrf.mxu0 }
 0x203   : > { %v2533_v41 = vmax.f32 %v2473_v58, %v2474_v28  ;;  %v2475_v60 = vadd.f32 %v2330_v61, %v2061_v32  ;;  %v2679_v8 = vadd.f32 %v7610_v45, %v2656_v3  ;;  %v8916_v28 = vld [vmem:[#allocation44_spill] sm:$0xff]  ;;  %v8918_v61 = vld [vmem:[#allocation11_spill] sm:$0xff]  ;;  %v7626_v32 = vpop.f32.mrf.mxu1 }
 0x204   : > { %v2332_v40 = vpop.f32.mrf.mxu0  ;;  %v2065_v9 = vadd.f32 %v7403_v10, %v8916_v28  ;;  %v1133_v54 = vadd.f32 %v8918_v61, %v8917_v43  ;;  %v2067_v10 = vadd.f32 %v7441_v5, %v7297_v1  ;;  %v2069_v5 = vadd.f32 %v7456_v19, %v7319_v49  ;;  %v8922_v43 = vld [vmem:[#allocation46_spill] sm:$0xff] }
 0x205   : > { %2565 = vst [vmem:[#allocation2 + $0x20] sm:$0xff] %v2533_v41  ;;  %v2476_v34 = vadd.f32 %v2332_v40, %v2062_v27  ;;  %v2695_v41 = vmax.f32 %v2679_v8, 0.0  ;;  %v2071_v61 = vadd.f32 %v7471_v37, %v8922_v43 }
 0x206   : > { %v2336_v51 = vpop.f32.mrf.mxu0  ;;  %v1614_v25 = vadd.f32 %v7327_v4, %v1133_v54  ;;  %v8923_v54 = vld [vmem:[#allocation47_spill] sm:$0xff] }
 0x207   : > { %v2534_v24 = vmax.f32 %v2475_v60, %v2476_v34  ;;  %v2477_v47 = vadd.f32 %v2336_v51, %v2063_v53  ;;  %v8919_v51 = vld [vmem:[#allocation45_spill] sm:$0xff]  ;;  %v2072_v49 = vadd.f32 %v7478_v52, %v8923_v54 }
 0x208   : > { %v2595_v55 = vld [vmem:[#allocation2 + $0x10] ss:$2 sm:$0xff]  ;;  %v2627_v50 = vld [vmem:[#allocation2 + $0x11] ss:$2 sm:$0xff]  ;;  %v2338_v20 = vpop.f32.mrf.mxu0  ;;  %v2068_v38 = vadd.f32 %v7448_v17, %v8919_v51  ;;  %v2070_v1 = vadd.f32 %v7463_v56, %v1614_v25  ;;  %v8924_v25 = vld [vmem:[#allocation48_spill] sm:$0xff] }
 0x209   : > { %v2657_v21 = vmax.f32 %v2595_v55, %v2627_v50  ;;  %2566 = vst [vmem:[#allocation2 + $0x28] sm:$0xff] %v2534_v24  ;;  %v2478_v57 = vadd.f32 %v2338_v20, %v2064_v42  ;;  %v7633_v42 = vpop.f32.mrf.mxu1  ;;  %v2073_v37 = vadd.f32 %v7486_v14, %v8924_v25 }
 0x20a   : > { %v2340_v58 = vpop.f32.mrf.mxu0 }
 0x20b   : > { %v2680_v26 = vadd.f32 %v7610_v45, %v2657_v21  ;;  %v2535_v31 = vmax.f32 %v2477_v47, %v2478_v57  ;;  %v2479_v3 = vadd.f32 %v2340_v58, %v2065_v9  ;;  %v7638_v47 = vpop.f32.mrf.mxu1  ;;  %v8920_v57 = vld [vmem:[#allocation12_spill] sm:$0xff]  ;;  %v8921_v58 = vld [vmem:[#allocation13_spill] sm:$0xff] }
 0x20c   : > { %v2342_v27 = vpop.f32.mrf.mxu0  ;;  %v1143_v28 = vadd.f32 %v8921_v58, %v8920_v57  ;;  %v8928_v57 = vld [vmem:[#allocation51_spill] sm:$0xff] }
 0x20d   : > { %v2696_v40 = vmax.f32 %v2680_v26, 0.0  ;;  %2567 = vst [vmem:[#allocation2 + $0x30] sm:$0xff] %v2535_v31  ;;  %v2480_v60 = vadd.f32 %v2342_v27, %v2066_v7  ;;  %v7647_v27 = vpop.f32.mrf.mxu1 }
 0x20e   : > { %v2346_v34 = vpop.f32.mrf.mxu0  ;;  %v1618_v19 = vadd.f32 %v7364_v44, %v1143_v28 }
 0x20f   : > { %v5690_v53 = vpack.c.bf16 %v2696_v40, %v2695_v41  ;;  %v2536_v35 = vmax.f32 %v2479_v3, %v2480_v60  ;;  %v2481_v55 = vadd.f32 %v2346_v34, %v2067_v10 }
 0x210   : > { %v2348_v24 = vpop.f32.mrf.mxu0  ;;  %v2597_v20 = vld [vmem:[#allocation2 + $0x20] ss:$2 sm:$0xff]  ;;  %v2629_v8 = vld [vmem:[#allocation2 + $0x21] ss:$2 sm:$0xff]  ;;  %v2074_v52 = vadd.f32 %v7493_v30, %v1618_v19 }
 0x211   : > { %5691 = vst [vmem:[#allocation3] sm:$0xff] %v5690_v53   ;;  %2568 = vst [vmem:[#allocation2 + $0x38] sm:$0xff] %v2536_v35  ;;  %v2482_v50 = vadd.f32 %v2348_v24, %v2068_v38  ;;  %v2658_v9 = vmax.f32 %v2597_v20, %v2629_v8  ;;  %v8925_v35 = vld [vmem:[#allocation14_spill] sm:$0xff]  ;;  %v8926_v24 = vld [vmem:[#allocation15_spill] sm:$0xff] }
 0x212   : > { %v2350_v21 = vpop.f32.mrf.mxu0  ;;  %v8929_v19 = vld [vmem:[#allocation16_spill] sm:$0xff] }
 0x213   : > { %v2537_v17 = vmax.f32 %v2481_v55, %v2482_v50  ;;  %v2483_v7 = vadd.f32 %v2350_v21, %v2069_v5  ;;  %v2681_v60 = vadd.f32 %v7610_v45, %v2658_v9  ;;  %v1153_v55 = vadd.f32 %v8926_v24, %v8925_v35  ;;  %v7656_v50 = vpop.f32.mrf.mxu1  ;;  %v8932_v35 = vld [vmem:[#allocation52_spill] sm:$0xff] }
 0x214   : > { %v2352_v4 = vpop.f32.mrf.mxu0  ;;  %v2079_v24 = vadd.f32 %v7531_v23, %v8932_v35 }
 0x215   : > { %2569 = vst [vmem:[#allocation2 + $0x40] sm:$0xff] %v2537_v17  ;;  %v2484_v26 = vadd.f32 %v2352_v4, %v2070_v1  ;;  %v2697_v8 = vmax.f32 %v2681_v60, 0.0  ;;  %v2075_v17 = vadd.f32 %v7501_v12, %v7377_v39  ;;  %v8927_v4 = vld [vmem:[#allocation49_spill] sm:$0xff]  ;;  %v1622_v58 = vadd.f32 %v8928_v57, %v1153_v55 }
 0x216   : > { %v2356_v31 = vpop.f32.mrf.mxu0  ;;  %v2076_v30 = vadd.f32 %v7508_v36, %v8927_v4 }
 0x217   : > { %v2538_v56 = vmax.f32 %v2483_v7, %v2484_v26  ;;  %v2485_v34 = vadd.f32 %v2356_v31, %v2071_v61  ;;  %v7665_v31 = vpop.f32.mrf.mxu1 }
 0x218   : > { %v2599_v41 = vld [vmem:[#allocation2 + $0x30] ss:$2 sm:$0xff]  ;;  %v2631_v40 = vld [vmem:[#allocation2 + $0x31] ss:$2 sm:$0xff]  ;;  %v2358_v3 = vpop.f32.mrf.mxu0  ;;  %v7663_v7 = vld [vmem:[#allocation3 + $0x4] sm:$0xf] }
 0x219   : > { %v2659_v10 = vmax.f32 %v2599_v41, %v2631_v40  ;;  %2570 = vst [vmem:[#allocation2 + $0x48] sm:$0xff] %v2538_v56  ;;  %v2486_v51 = vadd.f32 %v2358_v3, %v2072_v49  ;;  %v2791_v26 = vld [vmem:[#allocation3] sm:$0xf]  ;;  %v8930_v56 = vld [vmem:[#allocation17_spill] sm:$0xff]  ;;  %v8931_v3 = vld [vmem:[#allocation50_spill] sm:$0xff]  ;;  %v7677_v25 = vpop.f32.mrf.mxu1 }
 0x21a   : > { %v2360_v38 = vpop.f32.mrf.mxu0  ;;  %v3349_v61 = vld [vmem:[#allocation3] sm:$0xe]  ;;  %v1163_v36 = vadd.f32 %v8930_v56, %v8929_v19  ;;  %v7670_v40 = vcombine.low %v2791_v26, %v7663_v7  ;;  %v2077_v60 = vadd.f32 %v7516_v6, %v8931_v3 }
 0x21b   : > { %v2682_v44 = vadd.f32 %v7610_v45, %v2659_v10  ;;  %v2539_v53 = vmax.f32 %v2485_v34, %v2486_v51  ;;  %v2487_v5 = vadd.f32 %v2360_v38, %v2073_v37  ;;  %v2078_v10 = vadd.f32 %v7523_v2, %v1622_v58 }
 0x21c   : > { %v2362_v20 = vpop.f32.mrf.mxu0  ;;  %v5460_v51 = vcombine.low %v3349_v61, %v7663_v7  ;;  %v1626_v38 = vadd.f32 %v7443_v13, %v1163_v36  ;;  %v2884_v6 = vshll.u32 %v7670_v40, 16  ;;  %v8934_v13 = vld [vmem:[#allocation18_spill] sm:$0xff] }
 0x21d   : > { %v2698_v21 = vmax.f32 %v2682_v44, 0.0  ;;  %2571 = vst [vmem:[#allocation2 + $0x50] sm:$0xff] %v2539_v53  ;;  %v2488_v1 = vadd.f32 %v2362_v20, %v2074_v52  ;;  %v8933_v20 = vld [vmem:[#allocation53_spill] sm:$0xff] }
 0x21e   : > { %v2366_v14 = vpop.f32.mrf.mxu0  ;;  %v2080_v2 = vadd.f32 %v7538_v63, %v8933_v20  ;;  %v2082_v4 = vadd.f32 %v7553_v22, %v1626_v38  ;;  %v3370_v22 = vrot.slane %v5460_v51, 1  ;;  %v8937_v20 = vld [vmem:[#allocation56_spill] sm:$0xff] }
 0x21f   : > { %v5695_v28 = vpack.c.bf16 %v2698_v21, %v2697_v8  ;;  %v2540_v9 = vmax.f32 %v2487_v5, %v2488_v1  ;;  %v2489_v39 = vadd.f32 %v2366_v14, %v2075_v17  ;;  %v3640_v21 = vshrl.u32 %v5460_v51, 16  ;;  %v8935_v1 = vld [vmem:[#allocation19_spill] sm:$0xff] }
 0x220   : > { %v2368_v43 = vpop.f32.mrf.mxu0  ;;  %v2601_v54 = vld [vmem:[#allocation2 + $0x40] ss:$2 sm:$0xff]  ;;  %v2633_v49 = vld [vmem:[#allocation2 + $0x41] ss:$2 sm:$0xff]  ;;  %v3643_v5 = vshll.u32 %v5460_v51, 16  ;;  %v1173_v17 = vadd.f32 %v8935_v1, %v8934_v13  ;;  %v2081_v14 = vadd.f32 %v7546_v33, %v7439_v16  ;;  %v2084_v16 = vadd.f32 %v7569_v48, %v7451_v62 }
 0x221   : > { %5722 = vst [vmem:[#allocation3 + $0x8] sm:$0xff] %v5695_v28   ;;  %2572 = vst [vmem:[#allocation2 + $0x58] sm:$0xff] %v2540_v9  ;;  %v2490_v12 = vadd.f32 %v2368_v43, %v2076_v30  ;;  %v2660_v37 = vmax.f32 %v2601_v54, %v2633_v49  ;;  %v7689_v30 = vpop.f32.mrf.mxu1  ;;  %v8936_v9 = vld [vmem:[#allocation54_spill] sm:$0xff]  ;;  %v2882_v49 = vshrl.u32 %v7670_v40, 16  ;;  %v3642_v36 = vrot.slane %v3640_v21, 1 }
 0x222   : > { %v2370_v41 = vpop.f32.mrf.mxu0  ;;  %v2083_v63 = vadd.f32 %v7561_v59, %v8936_v9  ;;  %v6151_v59 = vld [vmem:[%s8811_s3 + $0x270] ss:$8 sps:$4 sm:$0xff]   ;;  %v6142_v13 = vld [vmem:[%s8811_s3 + $0x64] ss:$8 sps:$4 sm:$0xff]   ;;  %v6157_v1 = vld [vmem:[%s8811_s3 + $0x260] ss:$8 sps:$4 sm:$0xff]  }
 0x223   : > { %v2541_v34 = vmax.f32 %v2489_v39, %v2490_v12  ;;  %v2491_v44 = vadd.f32 %v2370_v41, %v2077_v60  ;;  %v2683_v23 = vadd.f32 %v7610_v45, %v2660_v37  ;;  %v2886_v39 = vrot.slane %v2884_v6, 1  ;;  %v7704_v41 = vpop.f32.mrf.mxu1 }
 0x224   : > { %v2372_v52 = vpop.f32.mrf.mxu0 }
 0x225   : > { %2573 = vst [vmem:[#allocation2 + $0x60] sm:$0xff] %v2541_v34  ;;  %v2492_v53 = vadd.f32 %v2372_v52, %v2078_v10  ;;  %v2699_v3 = vmax.f32 %v2683_v23, 0.0  ;;  %v6159_v10 = vld [vmem:[%s8811_s3 + $0x264] ss:$8 sps:$4 sm:$0xff]   ;;  %v3645_v34 = vrot.slane %v3643_v5, 2  ;;  %v8938_v5 = vmov 0  }
 0x226   : > { %v2376_v55 = vpop.f32.mrf.mxu0 }
 0x227   : > { %v2542_v8 = vmax.f32 %v2491_v44, %v2492_v53  ;;  %v2493_v43 = vadd.f32 %v2376_v55, %v2079_v24  ;;  %v2887_v53 = vor.u32 %v2886_v39, %v2882_v49  ;;  %v6137_v55 = vld [vmem:[%s8811_s3 + $0x70] ss:$8 sps:$4 sm:$0xff]  }
 0x228   : > { %v2603_v57 = vld [vmem:[#allocation2 + $0x50] ss:$2 sm:$0xff]  ;;  %v2635_v58 = vld [vmem:[#allocation2 + $0x51] ss:$2 sm:$0xff]  ;;  %v2378_v28 = vpop.f32.mrf.mxu0  ;;  %v7694_v54 = vld [vmem:[#allocation3 + $0x8] sm:$0xff]  }
 0x229   : > { %v2661_v26 = vmax.f32 %v2603_v57, %v2635_v58  ;;  %2574 = vst [vmem:[#allocation2 + $0x68] sm:$0xff] %v2542_v8  ;;  %v2494_v61 = vadd.f32 %v2378_v28, %v2080_v2  ;;  %v3371_v56 = vrot.slane %v7694_v54, 1  ;;  %v2889_v62 = vshll.u32 %v7694_v54, 16  ;;  %v8939_v49 = vld [vmem:[#allocation55_spill] sm:$0xff] }
 0x22a   : > { %v2380_v33 = vpop.f32.mrf.mxu0  ;;  %v2893_v48 = vshrl.u32 %v7694_v54, 16  ;;  %v1630_v2 = vadd.f32 %v8937_v20, %v1173_v17  ;;  %v6162_v17 = vld [vmem:[%s8811_s3 + $0x254] ss:$8 sps:$4 sm:$0xff]   ;;  %v3646_v57 = vor.u32 %v3645_v34, %v3642_v36  ;;  %v2085_v39 = vadd.f32 %v7578_v0, %v8939_v49  ;;  %v8941_v36 = vld [vmem:[#allocation21_spill] sm:$0xff] }
 0x22b   : > { %v2684_v12 = vadd.f32 %v7610_v45, %v2661_v26  ;;  %v2543_v19 = vmax.f32 %v2493_v43, %v2494_v61  ;;  %v2495_v38 = vadd.f32 %v2380_v33, %v2081_v14  ;;  %v3372_v52 = vsel %vm1262_vm3, %v3370_v22, %v3371_v56  ;;  %v7729_v14 = vpop.f32.mrf.mxu1  ;;  %v6140_v33 = vld [vmem:[%s8811_s3 + $0x60] ss:$8 sps:$4 sm:$0xff]   ;;  %v6149_v20 = vld [vmem:[%s8811_s3 + $0x44] ss:$8 sps:$4 sm:$0xff]  }
 0x22c   : > { %v2382_v60 = vpop.f32.mrf.mxu0  ;;  %3506 = vmatmul.mubr.bf16.vlgmr.msra.gmra.mxu0 %v3372_v52  ;;  %v7714_v35 = vrot.slane %v2889_v62, 1  ;;  %v3647_v24 = vrot.slane %v2893_v48, 1  ;;  %v3648_v6 = vrot.slane %v2889_v62, 2  ;;  %v6144_v52 = vld [vmem:[%s8811_s3 + $0x50] ss:$8 sps:$4 sm:$0xff]  }
 0x22d   : > { %v2700_v51 = vmax.f32 %v2684_v12, 0.0  ;;  %2575 = vst [vmem:[#allocation2 + $0x70] sm:$0xff] %v2543_v19  ;;  %v2496_v37 = vadd.f32 %v2382_v60, %v2082_v4  ;;  %3515 = vmatprep.mubr.bf16.mxu0 %v8938_v5  ;;  %4038 = vmatpush1.bf16.msra.mxu0 %v6151_v59  ;;  %v2086_v12 = vadd.f32 %v7584_v46, %v1630_v2  ;;  %v6160_v19 = vld [vmem:[%s8811_s3 + $0x250] ss:$8 sps:$4 sm:$0xff]   ;;  %v8940_v59 = vld [vmem:[#allocation20_spill] sm:$0xff]  ;;  %v7757_v60 = vpop.f32.mrf.mxu1 }
 0x22e   : > { %v2386_v44 = vpop.f32.mrf.mxu0  ;;  %v2892_v23 = vsel %vm526_vm0, %v2887_v53, %v7714_v35  ;;  %4039 = vmatprep.subr.bf16.mxu0 %v6159_v10  ;;  %v7736_v58 = vor.u32 %v3648_v6, %v3647_v24  ;;  %v6168_v46 = vld [vmem:[%s8811_s3 + $0x244] ss:$8 sps:$4 sm:$0xff]   ;;  %v8944_v24 = vld [vmem:[#allocation58_spill] sm:$0xff]  ;;  %v6166_v2 = vld [vmem:[%s8811_s3 + $0x240] ss:$8 sps:$4 sm:$0xff]  }
 0x22f   : > { %v5700_v8 = vpack.c.bf16 %v2700_v51, %v2699_v3  ;;  %v2544_v21 = vmax.f32 %v2495_v38, %v2496_v37  ;;  %v2497_v26 = vadd.f32 %v2386_v44, %v2083_v63  ;;  %3065 = vmatmul.mubr.bf16.vlgmr.msra.gmra.mxu1 %v2892_v23  ;;  %v1183_v3 = vadd.f32 %v8941_v36, %v8940_v59  ;;  %v8942_v51 = vld [vmem:[#allocation60_spill] sm:$0xff]  ;;  %v8943_v44 = vld [vmem:[#allocation57_spill] sm:$0xff] }
 0x230   : > { %v2388_v4 = vpop.f32.mrf.mxu0  ;;  %v2605_v28 = vld [vmem:[#allocation2 + $0x60] ss:$2 sm:$0xff]  ;;  %v2637_v9 = vld [vmem:[#allocation2 + $0x61] ss:$2 sm:$0xff]  ;;  %3074 = vmatprep.mubr.bf16.mxu1 %v8938_v5  ;;  %3237 = vmatpush1.bf16.msra.mxu1 %v6137_v55  ;;  %v7744_v22 = vsel %vm1676_vm2, %v3646_v57, %v7736_v58  ;;  %v2087_v53 = vadd.f32 %v7590_v18, %v8943_v44  ;;  %v2088_v55 = vadd.f32 %v7599_v11, %v8944_v24  ;;  %v6154_v24 = vld [vmem:[%s8811_s3 + $0x30] ss:$8 sps:$4 sm:$0xff]  }
 0x231   : > { %5723 = vst [vmem:[#allocation3 + $0x10] sm:$0xff] %v5700_v8   ;;  %2576 = vst [vmem:[#allocation2 + $0x78] sm:$0xff] %v2544_v21  ;;  %v2498_v43 = vadd.f32 %v2388_v4, %v2084_v16  ;;  %3238 = vmatprep.subr.bf16.mxu1 %v6142_v13  ;;  %v6146_v16 = vld [vmem:[%s8811_s3 + $0x54] ss:$8 sps:$4 sm:$0xff]   ;;  %4040 = vmatpush1.bf16.msra.mxu0 %v6157_v1  ;;  %v2662_v62 = vmax.f32 %v2605_v28, %v2637_v9  ;;  %v7779_v21 = vpop.f32.mrf.mxu1 }
 0x232   : > { %v2390_v61 = vpop.f32.mrf.mxu0  ;;  %4041 = vmatprep.subr.bf16.mxu0 %v6162_v17  ;;  %v1634_v38 = vadd.f32 %v8942_v51, %v1183_v3  ;;  %v6172_v8 = vld [vmem:[%s8811_s3 + $0x234] ss:$8 sps:$4 sm:$0xff]   ;;  %v2895_v44 = vor.u32 %v2893_v48, %v7714_v35  ;;  %v6165_v48 = vld [vmem:[%s8811_s3 + $0x24] ss:$8 sps:$4 sm:$0xff]  }
 0x233   : > { %v2545_v63 = vmax.f32 %v2497_v26, %v2498_v43  ;;  %v2499_v10 = vadd.f32 %v2390_v61, %v2085_v39  ;;  %v2685_v18 = vadd.f32 %v7610_v45, %v2662_v62  ;;  %v8945_v28 = vld [vmem:[#allocation22_spill] sm:$0xff]  ;;  %v8946_v9 = vld [vmem:[#allocation23_spill] sm:$0xff]  ;;  %v6147_v39 = vld [vmem:[%s8811_s3 + $0x40] ss:$8 sps:$4 sm:$0xff]   ;;  %v7801_v3 = vpop.f32.mrf.mxu1 }
 0x234   : > { %v2392_v0 = vpop.f32.mrf.mxu0  ;;  %3239 = vmatpush1.bf16.msra.mxu1 %v6140_v33  ;;  %v1193_v26 = vadd.f32 %v8946_v9, %v8945_v28  ;;  %v8947_v43 = vld [vmem:[#allocation59_spill] sm:$0xff]  ;;  %v2090_v33 = vadd.f32 %v7616_v29, %v1634_v38  ;;  %v8949_v29 = vld [vmem:[#allocation62_spill] sm:$0xff] }
 0x235   : > { %2577 = vst [vmem:[#allocation2 + $0x80] sm:$0xff] %v2545_v63  ;;  %v2500_v34 = vadd.f32 %v2392_v0, %v2086_v12  ;;  %3240 = vmatprep.subr.bf16.mxu1 %v6146_v16  ;;  %4042 = vmatpush1.bf16.msra.mxu0 %v6160_v19  ;;  %v2089_v61 = vadd.f32 %v7605_v15, %v8947_v43  ;;  %v8948_v12 = vld [vmem:[#allocation61_spill] sm:$0xff]  ;;  %v6156_v15 = vld [vmem:[%s8811_s3 + $0x34] ss:$8 sps:$4 sm:$0xff]   ;;  %v2701_v62 = vmax.f32 %v2685_v18, 0.0  ;;  %v7831_v35 = vpop.f32.mrf.mxu1 }
 0x236   : > { %v2396_v37 = vpop.f32.mrf.mxu0  ;;  %4043 = vmatprep.subr.bf16.mxu0 %v6168_v46  ;;  %v2091_v63 = vadd.f32 %v7626_v32, %v8948_v12  ;;  %v2092_v36 = vadd.f32 %v7633_v42, %v8949_v29  ;;  %v6181_v9 = vld [vmem:[%s8811_s3 + $0x214] ss:$8 sps:$4 sm:$0xff]   ;;  %v6163_v43 = vld [vmem:[%s8811_s3 + $0x20] ss:$8 sps:$4 sm:$0xff]  }
 0x237   : > { %v2546_v6 = vmax.f32 %v2499_v10, %v2500_v34  ;;  %v2501_v23 = vadd.f32 %v2396_v37, %v2087_v53  ;;  %v6170_v10 = vld [vmem:[%s8811_s3 + $0x230] ss:$8 sps:$4 sm:$0xff]   ;;  %v6178_v37 = vld [vmem:[%s8811_s3 + $0x224] ss:$8 sps:$4 sm:$0xff]   ;;  %v7860_v29 = vpop.f32.mrf.mxu1 }
 0x238   : > { %v2607_v11 = vld [vmem:[#allocation2 + $0x70] ss:$2 sm:$0xff]  ;;  %v2639_v13 = vld [vmem:[#allocation2 + $0x71] ss:$2 sm:$0xff]  ;;  %v2398_v1 = vpop.f32.mrf.mxu0  ;;  %3241 = vmatpush1.bf16.msra.mxu1 %v6144_v52 }
 0x239   : > { %v2663_v4 = vmax.f32 %v2607_v11, %v2639_v13  ;;  %2578 = vst [vmem:[#allocation2 + $0x88] sm:$0xff] %v2546_v6  ;;  %v2502_v17 = vadd.f32 %v2398_v1, %v2088_v55  ;;  %v7782_v57 = vld [vmem:[#allocation3 + $0x10] sm:$0xff]   ;;  %3242 = vmatprep.subr.bf16.mxu1 %v6149_v20  ;;  %4044 = vmatpush1.bf16.msra.mxu0 %v6166_v2  ;;  %v8950_v6 = vld [vmem:[#allocation64_spill] sm:$0xff] }
 0x23a   : > { %v2400_v49 = vpop.f32.mrf.mxu0  ;;  %v3373_v59 = vrot.slane %v7782_v57, 1  ;;  %v2897_v32 = vshll.u32 %v7782_v57, 16  ;;  %v2901_v46 = vshrl.u32 %v7782_v57, 16  ;;  %4045 = vmatprep.subr.bf16.mxu0 %v6172_v8  ;;  %v1638_v20 = vadd.f32 %v8950_v6, %v1193_v26  ;;  %v6176_v13 = vld [vmem:[%s8811_s3 + $0x220] ss:$8 sps:$4 sm:$0xff]  }
 0x23b   : > { %v2686_v16 = vadd.f32 %v7610_v45, %v2663_v4  ;;  %v2547_v19 = vmax.f32 %v2501_v23, %v2502_v17  ;;  %v2503_v51 = vadd.f32 %v2400_v49, %v2089_v61 }
 0x23c   : > { %v2402_v0 = vpop.f32.mrf.mxu0  ;;  %v3374_v42 = vsel %vm1262_vm3, %v3371_v56, %v3373_v59  ;;  %v7819_v53 = vrot.slane %v2897_v32, 1  ;;  %3243 = vmatpush1.bf16.msra.mxu1 %v6147_v39  ;;  %v3651_v56 = vrot.slane %v2901_v46, 1  ;;  %v3652_v55 = vrot.slane %v2897_v32, 2  ;;  %v8954_v32 = vld [vmem:[#allocation68_spill] sm:$0xff] }
 0x23d   : > { %v2702_v34 = vmax.f32 %v2686_v16, 0.0  ;;  %2579 = vst [vmem:[#allocation2 + $0x90] sm:$0xff] %v2547_v19  ;;  %v2504_v38 = vadd.f32 %v2402_v0, %v2090_v33  ;;  %3516 = vmatmul.mubr.bf16.gmra.mxu0 %v3374_v42  ;;  %3244 = vmatprep.subr.bf16.mxu1 %v6156_v15  ;;  %v8951_v33 = vld [vmem:[#allocation63_spill] sm:$0xff]  ;;  %v2094_v39 = vadd.f32 %v7647_v27, %v1638_v20  ;;  %v8952_v16 = vld [vmem:[#allocation24_spill] sm:$0xff]  ;;  %v8953_v19 = vld [vmem:[#allocation25_spill] sm:$0xff] }
 0x23e   : > { %v2406_v52 = vpop.f32.mrf.mxu0  ;;  %3525 = vmatprep.mubr.bf16.mxu0 %v8938_v5  ;;  %v2900_v11 = vsel %vm526_vm0, %v2895_v44, %v7819_v53  ;;  %4046 = vmatpush1.bf16.msra.mxu0 %v6170_v10  ;;  %v7838_v1 = vor.u32 %v3652_v55, %v3651_v56  ;;  %v2093_v49 = vadd.f32 %v7638_v47, %v8951_v33  ;;  %v6179_v47 = vld [vmem:[%s8811_s3 + $0x210] ss:$8 sps:$4 sm:$0xff]   ;;  %v6187_v0 = vld [vmem:[%s8811_s3 + $0x204] ss:$8 sps:$4 sm:$0xff]   ;;  %v6185_v56 = vld [vmem:[%s8811_s3 + $0x200] ss:$8 sps:$4 sm:$0xff]   ;;  %v7882_v55 = vpop.f32.mrf.mxu1 }
 0x23f   : > { %v5705_v2 = vpack.c.bf16 %v2702_v34, %v2701_v62  ;;  %v2548_v8 = vmax.f32 %v2503_v51, %v2504_v38  ;;  %v2505_v17 = vadd.f32 %v2406_v52, %v2091_v63  ;;  %3075 = vmatmul.mubr.bf16.gmra.mxu1 %v2900_v11  ;;  %4047 = vmatprep.subr.bf16.mxu0 %v6178_v37  ;;  %v6175_v63 = vld [vmem:[%s8811_s3 + $0x14] ss:$8 sps:$4 sm:$0xff]   ;;  %v6173_v51 = vld [vmem:[%s8811_s3 + $0x10] ss:$8 sps:$4 sm:$0xff]   ;;  %v8955_v38 = vld [vmem:[#allocation65_spill] sm:$0xff] }
 0x240   : > { %v2408_v18 = vpop.f32.mrf.mxu0  ;;  %v2609_v4 = vld [vmem:[#allocation2 + $0x80] ss:$2 sm:$0xff]  ;;  %v2641_v23 = vld [vmem:[#allocation2 + $0x81] ss:$2 sm:$0xff]  ;;  %3084 = vmatprep.mubr.bf16.mxu1 %v8938_v5  ;;  %3245 = vmatpush1.bf16.msra.mxu1 %v6154_v24  ;;  %v7850_v61 = vsel %vm1676_vm2, %v7736_v58, %v7838_v1  ;;  %v1203_v15 = vadd.f32 %v8953_v19, %v8952_v16  ;;  %v2095_v42 = vadd.f32 %v7656_v50, %v8955_v38  ;;  %v8956_v37 = vld [vmem:[#allocation66_spill] sm:$0xff]  ;;  %v7904_v16 = vpop.f32.mrf.mxu1 }
 0x241   : > { %5724 = vst [vmem:[#allocation3 + $0x18] sm:$0xff] %v5705_v2   ;;  %2580 = vst [vmem:[#allocation2 + $0x98] sm:$0xff] %v2548_v8  ;;  %v2506_v28 = vadd.f32 %v2408_v18, %v2092_v36  ;;  %3246 = vmatprep.subr.bf16.mxu1 %v6165_v48  ;;  %v2664_v36 = vmax.f32 %v2609_v4, %v2641_v23  ;;  %v2096_v52 = vadd.f32 %v7665_v31, %v8956_v37  ;;  %v6184_v24 = vld [vmem:[%s8811_s3 + $0x4] ss:$8 sps:$4 sm:$0xff]   ;;  %v8957_v11 = vld [vmem:[#allocation26_spill] sm:$0xff] }
 0x242   : > { %v2410_v26 = vpop.f32.mrf.mxu0  ;;  %4048 = vmatpush1.bf16.msra.mxu0 %v6176_v13  ;;  %v1642_v10 = vadd.f32 %v8954_v32, %v1203_v15  ;;  %v8958_v13 = vld [vmem:[#allocation27_spill] sm:$0xff] }
 0x243   : > { %v2549_v12 = vmax.f32 %v2505_v17, %v2506_v28  ;;  %v2507_v27 = vadd.f32 %v2410_v26, %v2093_v49  ;;  %4049 = vmatprep.subr.bf16.mxu0 %v6181_v9  ;;  %v2687_v6 = vadd.f32 %v7610_v45, %v2664_v36  ;;  %v1213_v4 = vadd.f32 %v8958_v13, %v8957_v11  ;;  %v8959_v23 = vld [vmem:[#allocation67_spill] sm:$0xff]  ;;  %v6182_v26 = vld [vmem:[%s8811_s3] ss:$8 sps:$4 sm:$0xff]  }
 0x244   : > { %v2412_v62 = vpop.f32.mrf.mxu0  ;;  %3247 = vmatpush1.bf16.msra.mxu1 %v6163_v43  ;;  %v2097_v17 = vadd.f32 %v7677_v25, %v8959_v23  ;;  %v2098_v28 = vadd.f32 %v7689_v30, %v1642_v10  ;;  %v8960_v43 = vld [vmem:[#allocation69_spill] sm:$0xff]  ;;  %v6191_v25 = vld [vmem:[%s8811_s3 + $0x1f4] ss:$8 sps:$4 sm:$0xff]   ;;  %v8964_v23 = vld [vmem:[#allocation28_spill] sm:$0xff] }
 0x245   : > { %2581 = vst [vmem:[#allocation2 + $0xa0] sm:$0xff] %v2549_v12  ;;  %v2508_v58 = vadd.f32 %v2412_v62, %v2094_v39  ;;  %3248 = vmatprep.subr.bf16.mxu1 %v6175_v63  ;;  %v2099_v33 = vadd.f32 %v7704_v41, %v8960_v43  ;;  %v8961_v30 = vld [vmem:[#allocation70_spill] sm:$0xff]  ;;  %v2703_v19 = vmax.f32 %v2687_v6, 0.0 }
 0x246   : > { %v2416_v34 = vpop.f32.mrf.mxu0  ;;  %4050 = vmatpush1.bf16.msra.mxu0 %v6179_v47  ;;  %v2100_v63 = vadd.f32 %v7729_v14, %v8961_v30 }
 0x247   : > { %v2550_v44 = vmax.f32 %v2507_v27, %v2508_v58  ;;  %v2509_v31 = vadd.f32 %v2416_v34, %v2095_v42  ;;  %4051 = vmatprep.subr.bf16.mxu0 %v6187_v0  ;;  %v2903_v0 = vor.u32 %v2901_v46, %v7819_v53 }
 0x248   : > { %v2611_v20 = vld [vmem:[#allocation2 + $0x90] ss:$2 sm:$0xff]  ;;  %v2643_v2 = vld [vmem:[#allocation2 + $0x91] ss:$2 sm:$0xff]  ;;  %v2418_v50 = vpop.f32.mrf.mxu0  ;;  %3249 = vmatpush1.bf16.msra.mxu1 %v6173_v51  ;;  %v8962_v51 = vld [vmem:[#allocation72_spill] sm:$0xff] }
 0x249   : > { %v2665_v8 = vmax.f32 %v2611_v20, %v2643_v2  ;;  %2582 = vst [vmem:[#allocation2 + $0xa8] sm:$0xff] %v2550_v44  ;;  %v2510_v48 = vadd.f32 %v2418_v50, %v2096_v52  ;;  %v7885_v18 = vld [vmem:[#allocation3 + $0x18] sm:$0xff]   ;;  %3250 = vmatprep.subr.bf16.mxu1 %v6184_v24  ;;  %v1646_v38 = vadd.f32 %v8962_v51, %v1213_v4 }
 0x24a   : > { %v2420_v9 = vpop.f32.mrf.mxu0  ;;  %v3375_v12 = vrot.slane %v7885_v18, 1  ;;  %v2905_v36 = vshll.u32 %v7885_v18, 16  ;;  %v2909_v41 = vshrl.u32 %v7885_v18, 16  ;;  %4052 = vmatpush1.bf16.msra.mxu0 %v6185_v56  ;;  %v8963_v50 = vld [vmem:[#allocation71_spill] sm:$0xff] }
 0x24b   : > { %v2688_v49 = vadd.f32 %v7610_v45, %v2665_v8  ;;  %v2551_v39 = vmax.f32 %v2509_v31, %v2510_v48  ;;  %v2511_v47 = vadd.f32 %v2420_v9, %v2097_v17  ;;  %v2101_v8 = vadd.f32 %v7757_v60, %v8963_v50  ;;  %v8965_v17 = vld [vmem:[#allocation29_spill] sm:$0xff] }
 0x24c   : > { %v2422_v15 = vpop.f32.mrf.mxu0  ;;  %v3376_v58 = vsel %vm1262_vm3, %v3373_v59, %v3375_v12  ;;  %v7916_v32 = vrot.slane %v2905_v36, 1  ;;  %3251 = vmatpush1.bf16.msra.mxu1 %v6182_v26  ;;  %v3655_v10 = vrot.slane %v2909_v41, 1  ;;  %v3656_v34 = vrot.slane %v2905_v36, 2  ;;  %v7922_v59 = vpop.f32.mrf.mxu1 }
 0x24d   : > { %v2704_v62 = vmax.f32 %v2688_v49, 0.0  ;;  %2583 = vst [vmem:[#allocation2 + $0xb0] sm:$0xff] %v2551_v39  ;;  %v2512_v27 = vadd.f32 %v2422_v15, %v2098_v28  ;;  %3526 = vmatmul.mubr.bf16.gmra.mxu0 %v3376_v58  ;;  %3768 = vmatprep.subr.bf16.mxu1 %v6191_v25  ;;  %v2102_v31 = vadd.f32 %v7779_v21, %v1646_v38  ;;  %v8967_v49 = vld [vmem:[#allocation74_spill] sm:$0xff]  ;;  %v8968_v39 = vld [vmem:[#allocation76_spill] sm:$0xff] }
 0x24e   : > { %v2426_v14 = vpop.f32.mrf.mxu0  ;;  %3535 = vmatprep.mubr.bf16.mxu0 %v8938_v5  ;;  %v2908_v46 = vsel %vm526_vm0, %v2903_v0, %v7916_v32  ;;  %v7926_v53 = vor.u32 %v3656_v34, %v3655_v10  ;;  %v7937_v11 = vpop.f32.mrf.mxu1  ;;  %v1223_v28 = vadd.f32 %v8965_v17, %v8964_v23  ;;  %v2104_v60 = vadd.f32 %v7831_v35, %v8967_v49  ;;  %v8971_v10 = vld [vmem:[#allocation75_spill] sm:$0xff]  ;;  %v8973_v23 = vld [vmem:[#allocation30_spill] sm:$0xff] }
 0x24f   : > { %v5710_v42 = vpack.c.bf16 %v2704_v62, %v2703_v19  ;;  %v2552_v37 = vmax.f32 %v2511_v47, %v2512_v27  ;;  %v2513_v56 = vadd.f32 %v2426_v14, %v2099_v33  ;;  %3085 = vmatmul.mubr.bf16.gmra.mxu1 %v2908_v46  ;;  %v8966_v33 = vld [vmem:[#allocation73_spill] sm:$0xff]  ;;  %v8969_v14 = vld [vmem:[#allocation32_spill] sm:$0xff]  ;;  %v2105_v35 = vadd.f32 %v7860_v29, %v8971_v10 }
 0x250   : > { %v2428_v52 = vpop.f32.mrf.mxu0  ;;  %v2613_v44 = vld [vmem:[#allocation2 + $0xa0] ss:$2 sm:$0xff]  ;;  %v2645_v24 = vld [vmem:[#allocation2 + $0xa1] ss:$2 sm:$0xff]  ;;  %3094 = vmatprep.mubr.bf16.mxu1 %v8938_v5  ;;  %v7932_v2 = vsel %vm1676_vm2, %v7838_v1, %v7926_v53  ;;  %v2103_v1 = vadd.f32 %v7801_v3, %v8966_v33  ;;  %v1650_v21 = vadd.f32 %v8968_v39, %v1223_v28  ;;  %v2038_v30 = vpop.f32.mrf.mxu1  ;;  %v2108_v17 = vadd.f32 %v7922_v59, %v8973_v23  ;;  %v8974_v28 = vld [vmem:[#allocation78_spill] sm:$0xff] }
 0x251   : > { %5725 = vst [vmem:[#allocation3 + $0x20] sm:$0xff] %v5710_v42   ;;  %2584 = vst [vmem:[#allocation2 + $0xb8] sm:$0xff] %v2552_v37  ;;  %v2514_v6 = vadd.f32 %v2428_v52, %v2100_v63  ;;  %v2666_v13 = vmax.f32 %v2613_v44, %v2645_v24  ;;  %v8970_v3 = vld [vmem:[#allocation33_spill] sm:$0xff] }
 0x252   : > { %v2430_v20 = vpop.f32.mrf.mxu0  ;;  %v1233_v0 = vadd.f32 %v8970_v3, %v8969_v14  ;;  %v2106_v51 = vadd.f32 %v7882_v55, %v1650_v21  ;;  %v8972_v52 = vld [vmem:[#allocation77_spill] sm:$0xff]  ;;  %v2042_v44 = vpop.f32.mrf.mxu1  ;;  %v8977_v14 = vld [vmem:[#allocation35_spill] sm:$0xff] }
 0x253   : > { %v2553_v48 = vmax.f32 %v2513_v56, %v2514_v6  ;;  %v2515_v9 = vadd.f32 %v2430_v20, %v2101_v8  ;;  %v2689_v63 = vadd.f32 %v7610_v45, %v2666_v13  ;;  %v2107_v46 = vadd.f32 %v7904_v16, %v8972_v52 }
 0x254   : > { %v2432_v4 = vpop.f32.mrf.mxu0  ;;  %v2911_v16 = vor.u32 %v2909_v41, %v7916_v32 }
 0x255   : > { %2585 = vst [vmem:[#allocation2 + $0xc0] sm:$0xff] %v2553_v48  ;;  %v2516_v26 = vadd.f32 %v2432_v4, %v2102_v31  ;;  %v2705_v24 = vmax.f32 %v2689_v63, 0.0 }
 0x256   : > { %v2436_v43 = vpop.f32.mrf.mxu0 }
 0x257   : > { %v2554_v25 = vmax.f32 %v2515_v9, %v2516_v26  ;;  %v2517_v47 = vadd.f32 %v2436_v43, %v2103_v1  ;;  %v1654_v9 = vadd.f32 %v8974_v28, %v1233_v0 }
 0x258   : > { %v2615_v19 = vld [vmem:[#allocation2 + $0xb0] ss:$2 sm:$0xff]  ;;  %v2647_v15 = vld [vmem:[#allocation2 + $0xb1] ss:$2 sm:$0xff]  ;;  %v2438_v36 = vpop.f32.mrf.mxu0  ;;  %v7947_v58 = vld [vmem:[#allocation3 + $0x20] sm:$0xff]  }
 0x259   : > { %v2667_v62 = vmax.f32 %v2615_v19, %v2647_v15  ;;  %2586 = vst [vmem:[#allocation2 + $0xc8] sm:$0xff] %v2554_v25  ;;  %v2518_v27 = vadd.f32 %v2438_v36, %v2104_v60  ;;  %v3377_v37 = vrot.slane %v7947_v58, 1  ;;  %v2913_v6 = vshll.u32 %v7947_v58, 16  ;;  %v8975_v25 = vld [vmem:[#allocation31_spill] sm:$0xff] }
 0x25a   : > { %v2440_v34 = vpop.f32.mrf.mxu0  ;;  %v2917_v20 = vshrl.u32 %v7947_v58, 16  ;;  %v2109_v63 = vadd.f32 %v7937_v11, %v8975_v25  ;;  %v2110_v19 = vadd.f32 %v2038_v30, %v1654_v9 }
 0x25b   : > { %v2690_v38 = vadd.f32 %v7610_v45, %v2667_v62  ;;  %v2555_v42 = vmax.f32 %v2517_v47, %v2518_v27  ;;  %v2519_v29 = vadd.f32 %v2440_v34, %v2105_v35  ;;  %v3378_v55 = vsel %vm1262_vm3, %v3375_v12, %v3377_v37  ;;  %v2044_v12 = vpop.f32.mrf.mxu1  ;;  %v8976_v27 = vld [vmem:[#allocation34_spill] sm:$0xff]  ;;  %v8978_v34 = vld [vmem:[#allocation79_spill] sm:$0xff] }
 0x25c   : > { %v2442_v56 = vpop.f32.mrf.mxu0  ;;  %3536 = vmatmul.mubr.bf16.gmra.mxu0 %v3378_v55  ;;  %v7968_v48 = vrot.slane %v2913_v6, 1  ;;  %v3659_v13 = vrot.slane %v2917_v20, 1  ;;  %v3660_v4 = vrot.slane %v2913_v6, 2  ;;  %v1243_v3 = vadd.f32 %v8977_v14, %v8976_v27 }
 0x25d   : > { %v2706_v50 = vmax.f32 %v2690_v38, 0.0  ;;  %2587 = vst [vmem:[#allocation2 + $0xd0] sm:$0xff] %v2555_v42  ;;  %v2520_v8 = vadd.f32 %v2442_v56, %v2106_v51  ;;  %3545 = vmatprep.mubr.bf16.mxu0 %v8938_v5  ;;  %v2046_v36 = vpop.f32.mrf.mxu1  ;;  %v2111_v51 = vadd.f32 %v2042_v44, %v8978_v34  ;;  %v8979_v38 = vld [vmem:[#allocation80_spill] sm:$0xff]  ;;  %v8980_v42 = vld [vmem:[#allocation82_spill] sm:$0xff] }
 0x25e   : > { %v2446_v31 = vpop.f32.mrf.mxu0  ;;  %v2916_v41 = vsel %vm526_vm0, %v2911_v16, %v7968_v48  ;;  %v7978_v32 = vor.u32 %v3660_v4, %v3659_v13  ;;  %v1658_v52 = vadd.f32 %v8980_v42, %v1243_v3 }
 0x25f   : > { %v5715_v26 = vpack.c.bf16 %v2706_v50, %v2705_v24  ;;  %v2556_v43 = vmax.f32 %v2519_v29, %v2520_v8  ;;  %v2521_v60 = vadd.f32 %v2446_v31, %v2107_v46  ;;  %3095 = vmatmul.mubr.bf16.gmra.mxu1 %v2916_v41  ;;  %v2048_v11 = vpop.f32.mrf.mxu1  ;;  %v8981_v31 = vld [vmem:[#allocation81_spill] sm:$0xff] }
 0x260   : > { %v2448_v33 = vpop.f32.mrf.mxu0  ;;  %v2617_v1 = vld [vmem:[#allocation2 + $0xc0] ss:$2 sm:$0xff]  ;;  %v2649_v49 = vld [vmem:[#allocation2 + $0xc1] ss:$2 sm:$0xff]  ;;  %3104 = vmatprep.mubr.bf16.mxu1 %v8938_v5  ;;  %v7984_v21 = vsel %vm1676_vm2, %v7926_v53, %v7978_v32  ;;  %v2112_v53 = vadd.f32 %v2044_v12, %v8979_v38  ;;  %v2113_v16 = vadd.f32 %v2046_v36, %v8981_v31  ;;  %v2114_v13 = vadd.f32 %v2048_v11, %v1658_v52 }
 0x261   : > { %5726 = vst [vmem:[#allocation3 + $0x28] sm:$0xff] %v5715_v26   ;;  %2588 = vst [vmem:[#allocation2 + $0xd8] sm:$0xff] %v2556_v43  ;;  %v2522_v39 = vadd.f32 %v2448_v33, %v2108_v17  ;;  %v2668_v62 = vmax.f32 %v2617_v1, %v2649_v49  ;;  %v2919_v49 = vor.u32 %v2917_v20, %v7968_v48 }
 0x262   : > { %v2450_v59 = vpop.f32.mrf.mxu0 }
 0x263   : > { %v2557_v15 = vmax.f32 %v2521_v60, %v2522_v39  ;;  %v2523_v0 = vadd.f32 %v2450_v59, %v2109_v63  ;;  %v2691_v30 = vadd.f32 %v7610_v45, %v2668_v62 }
 0x264   : > { %v2452_v47 = vpop.f32.mrf.mxu0 }
 0x265   : > { %2589 = vst [vmem:[#allocation2 + $0xe0] sm:$0xff] %v2557_v15  ;;  %v2524_v10 = vadd.f32 %v2452_v47, %v2110_v19  ;;  %v2707_v28 = vmax.f32 %v2691_v30, 0.0 }
 0x266   : > { %v2456_v35 = vpop.f32.mrf.mxu0 }
 0x267   : > { %v2558_v46 = vmax.f32 %v2523_v0, %v2524_v10  ;;  %v2525_v29 = vadd.f32 %v2456_v35, %v2111_v51  ;;  %v6286_v35 = vld [vmem:[%s8810_s2] ss:$0 sm:$0xff] }
 0x268   : > { %v2619_v24 = vld [vmem:[#allocation2 + $0xd0] ss:$2 sm:$0xff]  ;;  %v2651_v56 = vld [vmem:[#allocation2 + $0xd1] ss:$2 sm:$0xff]  ;;  %v2458_v6 = vpop.f32.mrf.mxu0  ;;  %v7994_v55 = vld [vmem:[#allocation3 + $0x28] sm:$0xff]  }
 0x269   : > { %v2669_v50 = vmax.f32 %v2619_v24, %v2651_v56  ;;  %2590 = vst [vmem:[#allocation2 + $0xe8] sm:$0xff] %v2558_v46  ;;  %v2526_v8 = vadd.f32 %v2458_v6, %v2112_v53  ;;  %v3379_v17 = vrot.slane %v7994_v55, 1  ;;  %v2921_v26 = vshll.u32 %v7994_v55, 16 }
 0x26a   : > { %v2460_v44 = vpop.f32.mrf.mxu0  ;;  %v2925_v43 = vshrl.u32 %v7994_v55, 16 }
 0x26b   : > { %v2692_v4 = vadd.f32 %v7610_v45, %v2669_v50  ;;  %v2559_v23 = vmax.f32 %v2525_v29, %v2526_v8  ;;  %v2527_v33 = vadd.f32 %v2460_v44, %v2113_v16  ;;  %v3380_v1 = vsel %vm1262_vm3, %v3377_v37, %v3379_v17 }
 0x26c   : > { %v2462_v9 = vpop.f32.mrf.mxu0  ;;  %3546 = vmatmul.mubr.bf16.gmra.mxu0 %v3380_v1  ;;  %v2923_v60 = vrot.slane %v2921_v26, 1  ;;  %v3663_v39 = vrot.slane %v2925_v43, 1  ;;  %v3664_v59 = vrot.slane %v2921_v26, 2 }
 0x26d   : > { %v2708_v12 = vmax.f32 %v2692_v4, 0.0  ;;  %2591 = vst [vmem:[#allocation2 + $0xf0] sm:$0xff] %v2559_v23  ;;  %v2528_v41 = vadd.f32 %v2462_v9, %v2114_v13  ;;  %3555 = vmatprep.mubr.bf16.mxu0 %v8938_v5 }
 0x26e   : > { %v2924_v36 = vsel %vm526_vm0, %v2919_v49, %v2923_v60  ;;  %v3665_v62 = vor.u32 %v3664_v59, %v3663_v39  ;;  %v3913_v49 = vld [vmem:[#allocation3] sm:$0xc]  ;;  %v3935_v59 = vrot.slane %v7694_v54, 2 }
 0x26f   : > { %v5720_v25 = vpack.c.bf16 %v2708_v12, %v2707_v28  ;;  %v2560_v63 = vmax.f32 %v2527_v33, %v2528_v41  ;;  %3105 = vmatmul.mubr.bf16.gmra.mxu1 %v2924_v36  ;;  %v5526_v39 = vcombine.low %v3913_v49, %v7663_v7  ;;  %v3937_v7 = vrot.slane %v7782_v57, 2  ;;  %v6192_v36 = vld [vmem:[%s8811_s3 + $0x1e0] ss:$8 sps:$4 sm:$0xff]  }
 0x270   : > { %v2621_v19 = vld [vmem:[#allocation2 + $0xe0] ss:$2 sm:$0xff]  ;;  %v2653_v15 = vld [vmem:[#allocation2 + $0xe1] ss:$2 sm:$0xff]  ;;  %3114 = vmatprep.mubr.bf16.mxu1 %v8938_v5  ;;  %v8012_v37 = vsel %vm1676_vm2, %v7978_v32, %v3665_v62 }
 0x271   : > { %5727 = vst [vmem:[#allocation3 + $0x30] sm:$0xff] %v5720_v25   ;;  %v2670_v47 = vmax.f32 %v2621_v19, %v2653_v15  ;;  %2592 = vst [vmem:[#allocation2 + $0xf8] sm:$0xf] %v2560_v63  ;;  %v3934_v25 = vrot.slane %v5526_v39, 2  ;;  %v6189_v19 = vld [vmem:[%s8811_s3 + $0x1f0] ss:$8 sps:$4 sm:$0xff]  }
 0x272   : > { %v6194_v15 = vld [vmem:[%s8811_s3 + $0x1e4] ss:$8 sps:$4 sm:$0xff]  }
 0x273   : > { %v2693_v20 = vadd.f32 %v7610_v45, %v2670_v47  ;;  %v2927_v45 = vor.u32 %v2925_v43, %v2923_v60  ;;  %v3936_v63 = vsel %vm2132_vm4, %v3934_v25, %v3935_v59  ;;  %v3938_v47 = vsel %vm2132_vm4, %v3935_v59, %v3937_v7 }
 0x275   : > { %v2709_v48 = vmax.f32 %v2693_v20, 0.0  ;;  %v6200_v20 = vld [vmem:[%s8811_s3 + $0x1c4] ss:$8 sps:$4 sm:$0xff]  }
 0x277   : > { %v5685_v27 = vpack.c.bf16 %v2709_v48, %v2709_v48  ;;  %v3939_v48 = vrot.slane %v7885_v18, 2 }
 0x278   : > { %v2623_v14 = vld [vmem:[#allocation2 + $0xf0] ss:$2 sm:$0x3f]  ;;  %v2655_v3 = vld [vmem:[#allocation2 + $0xf1] ss:$2 sm:$0x3f] }
 0x279   : > { %2789 = vst [vmem:[#allocation3 + $0x38] sm:$0xf] %v5685_v27  ;;  %v2671_v0 = vmax.f32 %v2623_v14, %v2655_v3  ;;  %v8015_v10 = vld [vmem:[#allocation3 + $0x30] sm:$0xff]   ;;  %v6198_v27 = vld [vmem:[%s8811_s3 + $0x1c0] ss:$8 sps:$4 sm:$0xff]   ;;  %v3940_v3 = vsel %vm2132_vm4, %v3937_v7, %v3939_v48 }
 0x27a   : > { %v3381_v51 = vrot.slane %v8015_v10, 1  ;;  %v2929_v32 = vshll.u32 %v8015_v10, 16  ;;  %v2933_v38 = vshrl.u32 %v8015_v10, 16  ;;  %v6203_v14 = vld [vmem:[%s8811_s3 + $0x1b4] ss:$8 sps:$4 sm:$0xff]  }
 0x27b   : > { %v2694_v34 = vadd.f32 %v6286_v35, %v2671_v0  ;;  %v6206_v0 = vld [vmem:[%s8811_s3 + $0x1a4] ss:$8 sps:$4 sm:$0xff]   ;;  %v3941_v35 = vrot.slane %v7947_v58, 2 }
 0x27c   : > { %v3382_v42 = vsel %vm1262_vm3, %v3379_v17, %v3381_v51  ;;  %v2931_v52 = vrot.slane %v2929_v32, 1  ;;  %v3667_v46 = vrot.slane %v2933_v38, 1  ;;  %v3668_v11 = vrot.slane %v2929_v32, 2 }
 0x27d   : > { %v2710_v53 = vmax.f32 %v2694_v34, 0.0  ;;  %3556 = vmatmul.mubr.bf16.gmra.mxu0 %v3382_v42  ;;  %v6204_v34 = vld [vmem:[%s8811_s3 + $0x1a0] ss:$8 sps:$4 sm:$0xff]   ;;  %v3942_v32 = vsel %vm2132_vm4, %v3939_v48, %v3941_v35  ;;  %v6216_v48 = vld [vmem:[%s8813_s5 + $0x70] sm:$0xff]  }
 0x27e   : > { %v2932_v24 = vsel %vm526_vm0, %v2927_v45, %v2931_v52  ;;  %3565 = vmatprep.mubr.bf16.mxu0 %v8938_v5  ;;  %v3669_v56 = vor.u32 %v3668_v11, %v3667_v46  ;;  %v2935_v28 = vor.u32 %v2933_v38, %v2931_v52  ;;  %v6214_v38 = vld [vmem:[%s8811_s3 + $0x184] ss:$8 sps:$4 sm:$0xff]   ;;  %v3943_v45 = vrot.slane %v7994_v55, 2 }
 0x27f   : > { %v5686_v30 = vpack.c.bf16 %v2710_v53, %v2710_v53  ;;  %3115 = vmatmul.mubr.bf16.gmra.mxu1 %v2932_v24  ;;  %v6212_v53 = vld [vmem:[%s8811_s3 + $0x180] ss:$8 sps:$4 sm:$0xff]  }
 0x280   : > { %3124 = vmatprep.mubr.bf16.mxu1 %v8938_v5  ;;  %v8028_v6 = vsel %vm1676_vm2, %v3665_v62, %v3669_v56  ;;  %v8030_v50 = vld [vmem:[#allocation3 + $0x38] sm:$0xf]  ;;  %v6197_v62 = vld [vmem:[%s8811_s3 + $0x1d4] ss:$8 sps:$4 sm:$0xff]   ;;  %v3944_v42 = vsel %vm2132_vm4, %v3941_v35, %v3943_v45 }
 0x281   : > { %2790 = vst [vmem:[#allocation3 + $0x3c] sm:$0x7] %v5686_v30 }
 0x288   : > { %v2823_v29 = vld [vmem:[#allocation3 + $0x3c] sm:$0x3] }
 0x289   : > { %v3618_v8 = vld [vmem:[#allocation3 + $0x3c] sm:$0x7]  ;;  %v5410_v31 = vcombine.low %v8030_v50, %v2823_v29 }
 0x28a   : > { %v8034_v16 = vcombine.low %v8030_v50, %v3618_v8 }
 0x28b   : > { %v3383_v44 = vrot.slane %v5410_v31, 1  ;;  %v2937_v13 = vshll.u32 %v5410_v31, 16  ;;  %v2941_v1 = vshrl.u32 %v5410_v31, 16 }
 0x28c   : > { %v3672_v4 = vshrl.u32 %v8034_v16, 16  ;;  %v3675_v23 = vshll.u32 %v8034_v16, 16  ;;  %v3947_v46 = vrot.slane %v8034_v16, 2 }
 0x28d   : > { %v3384_v17 = vsel %vm1262_vm3, %v3381_v51, %v3383_v44  ;;  %v2939_v9 = vrot.slane %v2937_v13, 1  ;;  %v6210_v51 = vld [vmem:[%s8811_s3 + $0x194] ss:$8 sps:$4 sm:$0xff]  }
 0x28e   : > { %3566 = vmatmul.mubr.bf16.gmra.mxu0 %v3384_v17  ;;  %v3674_v26 = vrot.slane %v3672_v4, 1  ;;  %v3677_v43 = vrot.slane %v3675_v23, 2 }
 0x28f   : > { %v2940_v12 = vsel %vm526_vm0, %v2935_v28, %v2939_v9  ;;  %3575 = vmatprep.mubr.bf16.mxu0 %v8938_v5  ;;  %v2943_v60 = vor.u32 %v2941_v1, %v2939_v9 }
 0x290   : > { %3125 = vmatmul.mubr.bf16.gmra.mxu1 %v2940_v12  ;;  %v8041_v33 = vor.u32 %v3677_v43, %v3674_v26 }
 0x291   : > { %3134 = vmatprep.mubr.bf16.mxu1 %v8938_v5 }
 0x292   : > { %v8046_v41 = vsel %vm1676_vm2, %v3669_v56, %v8041_v33 }
 0x296   : > { %3576 = vmatmul.mubr.bf16.gmra.mxu0 %v3383_v44 }
 0x297   : > { %4069 = vmatprep.mubr.bf16.mxu0 %v8938_v5 }
 0x298   : > { %3135 = vmatmul.mubr.bf16.gmra.mxu1 %v2943_v60 }
 0x299   : > { %3268 = vmatprep.mubr.bf16.mxu1 %v8938_v5 }
 0x29e   : > { %4070 = vmatmul.mubr.bf16.vlgmr.msra.gmra.mxu0 %v3936_v63 }
 0x29f   : > { %4079 = vmatprep.mubr.bf16.mxu0 %v8938_v5 }
 0x2a0   : > { %3269 = vmatmul.mubr.bf16.vlgmr.msra.gmra.mxu1 %v7670_v40  ;;  %v6195_v40 = vld [vmem:[%s8811_s3 + $0x1d0] ss:$8 sps:$4 sm:$0xff]  }
 0x2a1   : > { %3769 = vmatpush1.bf16.msra.mxu1 %v6189_v19  ;;  %3278 = vmatprep.mubr.bf16.mxu1 %v8938_v5 }
 0x2a2   : > { %3770 = vmatprep.subr.bf16.mxu1 %v6194_v15  ;;  %v6215_v15 = vld [vmem:[%s8813_s5 + $0x78] sm:$0xff]  }
 0x2a5   : > { %3771 = vmatpush1.bf16.msra.mxu1 %v6192_v36  ;;  %v8824_v36 = vmov 0.0  }
 0x2a6   : > { %4080 = vmatmul.mubr.bf16.gmra.mxu0 %v3938_v47  ;;  %3772 = vmatprep.subr.bf16.mxu1 %v6197_v62 }
 0x2a7   : > { %4089 = vmatprep.mubr.bf16.mxu0 %v8938_v5  ;;  %5831 = vmatprep.subr.bf16.mxu0 %v8824_v36 }
 0x2a8   : > { %3279 = vmatmul.mubr.bf16.gmra.mxu1 %v7694_v54  ;;  %v6201_v54 = vld [vmem:[%s8811_s3 + $0x1b0] ss:$8 sps:$4 sm:$0xff]  }
 0x2a9   : > { %3288 = vmatprep.mubr.bf16.mxu1 %v8938_v5  ;;  %3773 = vmatpush1.bf16.msra.mxu1 %v6195_v40 }
 0x2aa   : > { %3774 = vmatprep.subr.bf16.mxu1 %v6200_v20 }
 0x2ad   : > { %3775 = vmatpush1.bf16.msra.mxu1 %v6198_v27 }
 0x2ae   : > { %4090 = vmatmul.mubr.bf16.gmra.mxu0 %v3940_v3  ;;  %3776 = vmatprep.subr.bf16.mxu1 %v6203_v14 }
 0x2af   : > { %4099 = vmatprep.mubr.bf16.mxu0 %v8938_v5 }
 0x2b0   : > { %3289 = vmatmul.mubr.bf16.gmra.mxu1 %v7782_v57  ;;  %v6208_v57 = vld [vmem:[%s8811_s3 + $0x190] ss:$8 sps:$4 sm:$0xff]  }
 0x2b1   : > { %3298 = vmatprep.mubr.bf16.mxu1 %v8938_v5  ;;  %3777 = vmatpush1.bf16.msra.mxu1 %v6201_v54 }
 0x2b2   : > { %3778 = vmatprep.subr.bf16.mxu1 %v6206_v0  ;;  %v6217_v0 = vld [vmem:[%s8813_s5 + $0x68] sm:$0xff]  }
 0x2b5   : > { %3779 = vmatpush1.bf16.msra.mxu1 %v6204_v34 }
 0x2b6   : > { %4100 = vmatmul.mubr.bf16.gmra.mxu0 %v3942_v32  ;;  %3780 = vmatprep.subr.bf16.mxu1 %v6210_v51 }
 0x2b7   : > { %4109 = vmatprep.mubr.bf16.mxu0 %v8938_v5 }
 0x2b8   : > { %3299 = vmatmul.mubr.bf16.gmra.mxu1 %v7885_v18  ;;  %v3945_v18 = vrot.slane %v8015_v10, 2 }
 0x2b9   : > { %3308 = vmatprep.mubr.bf16.mxu1 %v8938_v5  ;;  %3781 = vmatpush1.bf16.msra.mxu1 %v6208_v57 }
 0x2ba   : > { %3782 = vmatprep.subr.bf16.mxu1 %v6214_v38  ;;  %v3946_v52 = vsel %vm2132_vm4, %v3943_v45, %v3945_v18  ;;  %v3948_v11 = vsel %vm2132_vm4, %v3945_v18, %v3947_v46  ;;  %v6218_v45 = vld [vmem:[%s8813_s5 + $0x60] sm:$0xff]  }
 0x2bd   : > { %3783 = vmatpush1.bf16.msra.mxu1 %v6212_v53 }
 0x2be   : > { %4110 = vmatmul.mubr.bf16.gmra.mxu0 %v3944_v42  ;;  %5791 = vmatprep.subr.bf16.mxu1 %v8824_v36 }
 0x2bf   : > { %4119 = vmatprep.mubr.bf16.mxu0 %v8938_v5 }
 0x2c0   : > { %3309 = vmatmul.mubr.bf16.gmra.mxu1 %v7947_v58  ;;  %v2806_v58 = vld [vmem:[#allocation3 + $0x3c] sm:$0x1] }
 0x2c1   : > { %3318 = vmatprep.mubr.bf16.mxu1 %v8938_v5  ;;  %v5427_v30 = vcombine.low %v8030_v50, %v2806_v58 }
 0x2c6   : > { %4120 = vmatmul.mubr.bf16.gmra.mxu0 %v3946_v52 }
 0x2c7   : > { %4129 = vmatprep.mubr.bf16.mxu0 %v8938_v5 }
 0x2c8   : > { %3319 = vmatmul.mubr.bf16.gmra.mxu1 %v7994_v55 }
 0x2c9   : > { %3328 = vmatprep.mubr.bf16.mxu1 %v8938_v5 }
 0x2ce   : > { %4130 = vmatmul.mubr.bf16.gmra.mxu0 %v3948_v11 }
 0x2cf   : > { %4139 = vmatprep.mubr.bf16.mxu0 %v8938_v5 }
 0x2d0   : > { %3329 = vmatmul.mubr.bf16.gmra.mxu1 %v8015_v10 }
 0x2d1   : > { %3338 = vmatprep.mubr.bf16.mxu1 %v8938_v5 }
 0x2d6   : > { %4140 = vmatmul.mubr.bf16.gmra.mxu0 %v3947_v46  ;;  %v6219_v46 = vld [vmem:[%s8813_s5 + $0xb8] sm:$0xff]  }
 0x2d7   : > { %5832 = vmatpush3.bf16.msra.mxu0 %v6219_v46  ;;  %5847 = vmatprep.mubr.msk.bf16.mxu0 %vm6351_vm5, %v8824_v36 }
 0x2d8   : > { %3339 = vmatmul.mubr.bf16.gmra.mxu1 %v5427_v30  ;;  %5833 = vmatprep.subr.bf16.mxu0 %v8824_v36 }
 0x2d9   : > { %3800 = vmatprep.mubr.bf16.mxu1 %v8938_v5 }
 0x2e0   : > { %3801 = vmatmul.mubr.bf16.vlgmr.msra.gmra.mxu1 %v7744_v22 }
 0x2e1   : > { %3810 = vmatprep.mubr.bf16.mxu1 %v8938_v5  ;;  %5792 = vmatpush3.bf16.msra.mxu1 %v6215_v15 }
 0x2e2   : > { %5793 = vmatprep.subr.bf16.mxu1 %v8824_v36 }
 0x2e5   : > { %5794 = vmatpush3.bf16.msra.mxu1 %v6216_v48  ;;  %v6220_v48 = vld [vmem:[%s8813_s5 + $0x58] sm:$0xff]  }
 0x2e6   : > { %5795 = vmatprep.subr.bf16.mxu1 %v8824_v36 }
 0x2e8   : > { %3811 = vmatmul.mubr.bf16.gmra.mxu1 %v7850_v61 }
 0x2e9   : > { %3820 = vmatprep.mubr.bf16.mxu1 %v8938_v5  ;;  %5796 = vmatpush3.bf16.msra.mxu1 %v6217_v0  ;;  %v6221_v0 = vld [vmem:[%s8813_s5 + $0xb0] sm:$0xff]  }
 0x2ea   : > { %5797 = vmatprep.subr.bf16.mxu1 %v8824_v36  ;;  %5834 = vmatpush3.bf16.msra.mxu0 %v6221_v0  ;;  %v6224_v0 = vld [vmem:[%s8813_s5 + $0xa0] sm:$0xff]  }
 0x2eb   : > { %5835 = vmatprep.subr.bf16.mxu0 %v8824_v36 }
 0x2ec   : > { %v8141_v55 = vpop.f32.mrf.mxu0 }
 0x2ed   : > { %5798 = vmatpush3.bf16.msra.mxu1 %v6218_v45 }
 0x2ee   : > { %v8145_v24 = vpop.f32.mrf.mxu0  ;;  %5799 = vmatprep.subr.bf16.mxu1 %v8824_v36 }
 0x2ef   : > { %v8143_v10 = vpop.f32.mrf.mxu1 }
 0x2f0   : > { %3821 = vmatmul.mubr.bf16.gmra.mxu1 %v7932_v2  ;;  %v8151_v61 = vpop.f32.mrf.mxu0 }
 0x2f1   : > { %3830 = vmatprep.mubr.bf16.mxu1 %v8938_v5  ;;  %v8147_v22 = vpop.f32.mrf.mxu1  ;;  %5800 = vmatpush3.bf16.msra.mxu1 %v6220_v48  ;;  %v6223_v48 = vld [vmem:[%s8813_s5 + $0x50] sm:$0xff]  }
 0x2f2   : > { %v8155_v56 = vpop.f32.mrf.mxu0  ;;  %5801 = vmatprep.subr.bf16.mxu1 %v8824_v36 }
 0x2f3   : > { %v8153_v2 = vpop.f32.mrf.mxu1 }
 0x2f5   : > { %5802 = vmatpush3.bf16.msra.mxu1 %v6223_v48  ;;  %v6227_v48 = vld [vmem:[%s8813_s5 + $0x90] sm:$0xff]  }
 0x2f6   : > { %5803 = vmatprep.subr.bf16.mxu1 %v8824_v36 }
 0x2f8   : > { %3831 = vmatmul.mubr.bf16.gmra.mxu1 %v7984_v21  ;;  %v8157_v21 = vpop.f32.mrf.mxu1 }
 0x2f9   : > { %3840 = vmatprep.mubr.bf16.mxu1 %v8938_v5 }
 0x2fd   : > { %v8159_v50 = vpop.f32.mrf.mxu0 }
 0x2ff   : > { %v8163_v29 = vpop.f32.mrf.mxu1  ;;  %v8165_v8 = vpop.f32.mrf.mxu0 }
 0x300   : > { %3841 = vmatmul.mubr.bf16.gmra.mxu1 %v8012_v37 }
 0x301   : > { %3850 = vmatprep.mubr.bf16.mxu1 %v8938_v5  ;;  %v8167_v37 = vpop.f32.mrf.mxu1  ;;  %v8169_v31 = vpop.f32.mrf.mxu0 }
 0x303   : > { %v8173_v16 = vpop.f32.mrf.mxu1  ;;  %v8175_v44 = vpop.f32.mrf.mxu0 }
 0x305   : > { %v8177_v13 = vpop.f32.mrf.mxu1 }
 0x308   : > { %3851 = vmatmul.mubr.bf16.gmra.mxu1 %v8028_v6 }
 0x309   : > { %3860 = vmatprep.mubr.bf16.mxu1 %v8938_v5 }
 0x30d   : > { %v8179_v6 = vpop.f32.mrf.mxu0 }
 0x30f   : > { %v8181_v4 = vpop.f32.mrf.mxu1  ;;  %v8184_v23 = vpop.f32.mrf.mxu0 }
 0x310   : > { %3861 = vmatmul.mubr.bf16.gmra.mxu1 %v8046_v41 }
 0x311   : > { %3870 = vmatprep.mubr.bf16.mxu1 %v8938_v5  ;;  %v8186_v17 = vpop.f32.mrf.mxu1  ;;  %v8188_v28 = vpop.f32.mrf.mxu0 }
 0x313   : > { %v8190_v9 = vpop.f32.mrf.mxu1  ;;  %v8192_v5 = vpop.f32.mrf.mxu0 }
 0x315   : > { %v8194_v26 = vpop.f32.mrf.mxu1 }
 0x318   : > { %3871 = vmatmul.mubr.bf16.gmra.mxu1 %v8041_v33 }
 0x319   : > { %5807 = vmatprep.mubr.msk.bf16.mxu1 %vm6351_vm5, %v8824_v36 }
 0x31c   : > { %v8196_v43 = vpop.f32.mrf.mxu0 }
 0x31e   : > { %v8200_v41 = vpop.f32.mrf.mxu0 }
 0x31f   : > { %v8198_v12 = vpop.f32.mrf.mxu1  ;;  %8982 = vst [vmem:[#allocation36_spill] sm:$0xff] %v8200_v41 }
 0x320   : > { %v8204_v33 = vpop.f32.mrf.mxu0 }
 0x321   : > { %v8202_v1 = vpop.f32.mrf.mxu1  ;;  %8983 = vst [vmem:[#allocation37_spill] sm:$0xff] %v8204_v33 }
 0x322   : > { %v8208_v60 = vpop.f32.mrf.mxu0 }
 0x323   : > { %v8206_v49 = vpop.f32.mrf.mxu1  ;;  %8984 = vst [vmem:[#allocation38_spill] sm:$0xff] %v8208_v60 }
 0x325   : > { %v8210_v39 = vpop.f32.mrf.mxu1 }
 0x326   : > { %8985 = vst [vmem:[#allocation39_spill] sm:$0xff] %v8210_v39 }
 0x32c   : > { %v8212_v59 = vpop.f32.mrf.mxu0 }
 0x32d   : > { %8986 = vst [vmem:[#allocation40_spill] sm:$0xff] %v8212_v59 }
 0x32e   : > { %v8216_v63 = vpop.f32.mrf.mxu0 }
 0x32f   : > { %v8214_v25 = vpop.f32.mrf.mxu1  ;;  %8988 = vst [vmem:[#allocation42_spill] sm:$0xff] %v8216_v63 }
 0x330   : > { %8987 = vst [vmem:[#allocation41_spill] sm:$0xff] %v8214_v25  ;;  %v8223_v7 = vpop.f32.mrf.mxu0 }
 0x331   : > { %v8218_v19 = vpop.f32.mrf.mxu1  ;;  %8990 = vst [vmem:[#allocation44_spill] sm:$0xff] %v8223_v7 }
 0x332   : > { %8989 = vst [vmem:[#allocation43_spill] sm:$0xff] %v8218_v19  ;;  %v8230_v47 = vpop.f32.mrf.mxu0 }
 0x333   : > { %v8227_v62 = vpop.f32.mrf.mxu1  ;;  %8992 = vst [vmem:[#allocation11_spill] sm:$0xff] %v8230_v47 }
 0x334   : > { %8991 = vst [vmem:[#allocation10_spill] sm:$0xff] %v8227_v62 }
 0x335   : > { %v8232_v40 = vpop.f32.mrf.mxu1 }
 0x336   : > { %8993 = vst [vmem:[#allocation45_spill] sm:$0xff] %v8232_v40 }
 0x33d   : > { %v8234_v20 = vpop.f32.mrf.mxu0 }
 0x33e   : > { %8994 = vst [vmem:[#allocation12_spill] sm:$0xff] %v8234_v20 }
 0x33f   : > { %v8239_v27 = vpop.f32.mrf.mxu1  ;;  %v8241_v14 = vpop.f32.mrf.mxu0 }
 0x340   : > { %8995 = vst [vmem:[#allocation13_spill] sm:$0xff] %v8239_v27  ;;  %8996 = vst [vmem:[#allocation46_spill] sm:$0xff] %v8241_v14 }
 0x341   : > { %v8244_v3 = vpop.f32.mrf.mxu1  ;;  %v8246_v54 = vpop.f32.mrf.mxu0 }
 0x342   : > { %8997 = vst [vmem:[#allocation47_spill] sm:$0xff] %v8244_v3  ;;  %8998 = vst [vmem:[#allocation48_spill] sm:$0xff] %v8246_v54 }
 0x343   : > { %v8251_v35 = vpop.f32.mrf.mxu1  ;;  %v8253_v34 = vpop.f32.mrf.mxu0 }
 0x344   : > { %8999 = vst [vmem:[#allocation14_spill] sm:$0xff] %v8251_v35  ;;  %9000 = vst [vmem:[#allocation15_spill] sm:$0xff] %v8253_v34 }
 0x345   : > { %v8256_v51 = vpop.f32.mrf.mxu1 }
 0x346   : > { %9001 = vst [vmem:[#allocation49_spill] sm:$0xff] %v8256_v51 }
 0x34e   : > { %v8258_v32 = vpop.f32.mrf.mxu0 }
 0x34f   : > { %9002 = vst [vmem:[#allocation51_spill] sm:$0xff] %v8258_v32 }
 0x350   : > { %v8260_v57 = vpop.f32.mrf.mxu1  ;;  %v8262_v38 = vpop.f32.mrf.mxu0 }
 0x351   : > { %9003 = vst [vmem:[#allocation16_spill] sm:$0xff] %v8260_v57  ;;  %9004 = vst [vmem:[#allocation17_spill] sm:$0xff] %v8262_v38 }
 0x352   : > { %v8267_v53 = vpop.f32.mrf.mxu1  ;;  %v8269_v42 = vpop.f32.mrf.mxu0 }
 0x353   : > { %9005 = vst [vmem:[#allocation50_spill] sm:$0xff] %v8267_v53  ;;  %9006 = vst [vmem:[#allocation52_spill] sm:$0xff] %v8269_v42 }
 0x354   : > { %v8271_v18 = vpop.f32.mrf.mxu1  ;;  %v8273_v52 = vpop.f32.mrf.mxu0 }
 0x355   : > { %9007 = vst [vmem:[#allocation53_spill] sm:$0xff] %v8271_v18  ;;  %9008 = vst [vmem:[#allocation18_spill] sm:$0xff] %v8273_v52 }
 0x356   : > { %v8279_v11 = vpop.f32.mrf.mxu1  ;;  %v8281_v58 = vpop.f32.mrf.mxu0 }
 0x357   : > { %9009 = vst [vmem:[#allocation19_spill] sm:$0xff] %v8279_v11  ;;  %9010 = vst [vmem:[#allocation54_spill] sm:$0xff] %v8281_v58 }
 0x358   : > { %v8283_v30 = vpop.f32.mrf.mxu1  ;;  %v8285_v15 = vpop.f32.mrf.mxu0 }
 0x359   : > { %9011 = vst [vmem:[#allocation56_spill] sm:$0xff] %v8283_v30  ;;  %9012 = vst [vmem:[#allocation55_spill] sm:$0xff] %v8285_v15  ;;  %v6222_v15 = vld [vmem:[%s8813_s5 + $0xa8] sm:$0xff]  }
 0x35a   : > { %v8294_v45 = vpop.f32.mrf.mxu1  ;;  %v8296_v58 = vpop.f32.mrf.mxu0  ;;  %5836 = vmatpush3.bf16.msra.mxu0 %v6222_v15 }
 0x35b   : > { %9013 = vst [vmem:[#allocation20_spill] sm:$0xff] %v8294_v45  ;;  %9014 = vst [vmem:[#allocation21_spill] sm:$0xff] %v8296_v58  ;;  %5837 = vmatprep.subr.bf16.mxu0 %v8824_v36 }
 0x35c   : > { %v8298_v46 = vpop.f32.mrf.mxu1  ;;  %v8307_v42 = vpop.f32.mrf.mxu0 }
 0x35d   : > { %9015 = vst [vmem:[#allocation60_spill] sm:$0xff] %v8298_v46  ;;  %9017 = vst [vmem:[#allocation58_spill] sm:$0xff] %v8307_v42  ;;  %v6225_v42 = vld [vmem:[%s8813_s5 + $0x98] sm:$0xff]   ;;  %v6226_v46 = vld [vmem:[%s8813_s5 + $0x48] sm:$0xff]  }
 0x35e   : > { %v8305_v52 = vpop.f32.mrf.mxu1  ;;  %5838 = vmatpush3.bf16.msra.mxu0 %v6224_v0  ;;  %5804 = vmatpush3.bf16.msra.mxu1 %v6226_v46  ;;  %v6229_v0 = vld [vmem:[%s8813_s5 + $0x40] sm:$0xff]  }
 0x35f   : > { %9016 = vst [vmem:[#allocation57_spill] sm:$0xff] %v8305_v52  ;;  %v8320_v52 = vpop.f32.mrf.mxu0  ;;  %5839 = vmatprep.subr.bf16.mxu0 %v8824_v36  ;;  %5805 = vmatprep.subr.bf16.mxu1 %v8824_v36 }
 0x360   : > { %v8309_v45 = vpop.f32.mrf.mxu1 }
 0x361   : > { %v8344_v11 = vpop.f32.mrf.mxu0 }
 0x362   : > { %v8318_v58 = vpop.f32.mrf.mxu1  ;;  %5840 = vmatpush3.bf16.msra.mxu0 %v6225_v42  ;;  %v6228_v42 = vld [vmem:[%s8813_s5 + $0x88] sm:$0xff]   ;;  %5806 = vmatpush3.bf16.msra.mxu1 %v6229_v0 }
 0x363   : > { %5841 = vmatprep.subr.bf16.mxu0 %v8824_v36  ;;  %v8355_v46 = vpop.f32.mrf.mxu0  ;;  %5811 = vmatprep.subr.bf16.mxu1 %v8824_v36 }
 0x364   : > { %v8322_v15 = vpop.f32.mrf.mxu1 }
 0x365   : > { %v8366_v53 = vpop.f32.mrf.mxu0 }
 0x366   : > { %v8332_v30 = vpop.f32.mrf.mxu1  ;;  %5842 = vmatpush3.bf16.msra.mxu0 %v6227_v48  ;;  %v6230_v48 = vld [vmem:[%s8813_s5 + $0x80] sm:$0xff]  }
 0x367   : > { %5843 = vmatprep.subr.bf16.mxu0 %v8824_v36  ;;  %v8373_v57 = vpop.f32.mrf.mxu0 }
 0x368   : > { %v8346_v38 = vpop.f32.mrf.mxu1 }
 0x369   : > { %v8380_v14 = vpop.f32.mrf.mxu0 }
 0x36a   : > { %v8350_v32 = vpop.f32.mrf.mxu1  ;;  %5844 = vmatpush3.bf16.msra.mxu0 %v6228_v42 }
 0x36b   : > { %5845 = vmatprep.subr.bf16.mxu0 %v8824_v36  ;;  %v8386_v47 = vpop.f32.mrf.mxu0 }
 0x36c   : > { %v8357_v18 = vpop.f32.mrf.mxu1 }
 0x36e   : > { %v8361_v34 = vpop.f32.mrf.mxu1  ;;  %5846 = vmatpush3.bf16.msra.mxu0 %v6230_v48  ;;  %v8392_v48 = vpop.f32.mrf.mxu0 }
 0x36f   : > { %5871 = vmatprep.subr.bf16.mxu0 %v8824_v36 }
 0x370   : > { %v8368_v54 = vpop.f32.mrf.mxu1  ;;  %v8398_v36 = vpop.f32.mrf.mxu0 }
 0x372   : > { %v8371_v0 = vpop.f32.mrf.mxu1  ;;  %v8404_v62 = vpop.f32.mrf.mxu0 }
 0x374   : > { %v8375_v51 = vpop.f32.mrf.mxu1  ;;  %v8410_v33 = vpop.f32.mrf.mxu0 }
 0x375   : > { %9025 = vst [vmem:[#allocation24_spill] sm:$0xff] %v8410_v33 }
 0x376   : > { %v8378_v42 = vpop.f32.mrf.mxu1 }
 0x378   : > { %v8382_v20 = vpop.f32.mrf.mxu1 }
 0x37a   : > { %v8384_v35 = vpop.f32.mrf.mxu1 }
 0x37c   : > { %v8388_v3 = vpop.f32.mrf.mxu1 }
 0x37e   : > { %v8390_v7 = vpop.f32.mrf.mxu1 }
 0x37f   : > { %9018 = vst [vmem:[#allocation22_spill] sm:$0xff] %v8390_v7 }
 0x380   : > { %v8394_v27 = vpop.f32.mrf.mxu1 }
 0x381   : > { %9019 = vst [vmem:[#allocation23_spill] sm:$0xff] %v8394_v27  ;;  %v8416_v27 = vpop.f32.mrf.mxu0 }
 0x382   : > { %v8396_v40 = vpop.f32.mrf.mxu1 }
 0x383   : > { %9020 = vst [vmem:[#allocation59_spill] sm:$0xff] %v8396_v40 }
 0x384   : > { %v8400_v63 = vpop.f32.mrf.mxu1 }
 0x385   : > { %9021 = vst [vmem:[#allocation61_spill] sm:$0xff] %v8400_v63  ;;  %v8422_v63 = vpop.f32.mrf.mxu0 }
 0x386   : > { %v8402_v59 = vpop.f32.mrf.mxu1  ;;  %9030 = vst [vmem:[#allocation26_spill] sm:$0xff] %v8422_v63 }
 0x387   : > { %9022 = vst [vmem:[#allocation62_spill] sm:$0xff] %v8402_v59 }
 0x388   : > { %v8406_v60 = vpop.f32.mrf.mxu1 }
 0x389   : > { %9023 = vst [vmem:[#allocation64_spill] sm:$0xff] %v8406_v60  ;;  %v8428_v60 = vpop.f32.mrf.mxu0 }
 0x38a   : > { %v8408_v19 = vpop.f32.mrf.mxu1 }
 0x38b   : > { %9024 = vst [vmem:[#allocation63_spill] sm:$0xff] %v8408_v19 }
 0x38c   : > { %v8412_v25 = vpop.f32.mrf.mxu1 }
 0x38d   : > { %9026 = vst [vmem:[#allocation25_spill] sm:$0xff] %v8412_v25  ;;  %v8436_v25 = vpop.f32.mrf.mxu0 }
 0x38e   : > { %v8414_v7 = vpop.f32.mrf.mxu1  ;;  %9035 = vst [vmem:[#allocation72_spill] sm:$0xff] %v8436_v25 }
 0x38f   : > { %9027 = vst [vmem:[#allocation68_spill] sm:$0xff] %v8414_v7  ;;  %v3271_v7 = vadd.f32 %v8309_v45, %v8143_v10  ;;  %v3277_v10 = vadd.f32 %v8332_v30, %v8157_v21 }
 0x390   : > { %v8418_v40 = vpop.f32.mrf.mxu1 }
 0x391   : > { %9028 = vst [vmem:[#allocation65_spill] sm:$0xff] %v8418_v40 }
 0x392   : > { %v8420_v39 = vpop.f32.mrf.mxu1 }
 0x393   : > { %9029 = vst [vmem:[#allocation66_spill] sm:$0xff] %v8420_v39  ;;  %v3273_v39 = vadd.f32 %v8318_v58, %v8147_v22  ;;  %v3281_v22 = vadd.f32 %v8346_v38, %v8163_v29  ;;  %v3285_v29 = vadd.f32 %v8357_v18, %v8173_v16  ;;  %v3291_v16 = vadd.f32 %v8368_v54, %v8181_v4 }
 0x394   : > { %v8424_v59 = vpop.f32.mrf.mxu1  ;;  %v3295_v4 = vadd.f32 %v8375_v51, %v8190_v9  ;;  %v3301_v9 = vadd.f32 %v8382_v20, %v8198_v12  ;;  %v3305_v12 = vadd.f32 %v8388_v3, %v8206_v49  ;;  %v9042_v49 = vld [vmem:[#allocation41_spill] sm:$0xff]  ;;  %v9043_v3 = vld [vmem:[#allocation23_spill] sm:$0xff] }
 0x395   : > { %9031 = vst [vmem:[#allocation27_spill] sm:$0xff] %v8424_v59  ;;  %v3586_v59 = vadd.f32 %v8141_v55, %v3271_v7  ;;  %v3587_v25 = vadd.f32 %v8145_v24, %v3273_v39  ;;  %v3589_v24 = vadd.f32 %v8155_v56, %v3277_v10 }
 0x396   : > { %v8426_v41 = vpop.f32.mrf.mxu1 }
 0x397   : > { %9032 = vst [vmem:[#allocation67_spill] sm:$0xff] %v8426_v41  ;;  %v3275_v41 = vadd.f32 %v8322_v15, %v8153_v2  ;;  %v3283_v2 = vadd.f32 %v8350_v32, %v8167_v37  ;;  %v3287_v32 = vadd.f32 %v8361_v34, %v8177_v13 }
 0x398   : > { %v8430_v19 = vpop.f32.mrf.mxu1 }
 0x399   : > { %9033 = vst [vmem:[#allocation69_spill] sm:$0xff] %v8430_v19  ;;  %v8447_v19 = vpop.f32.mrf.mxu0  ;;  %v3593_v10 = vadd.f32 %v8175_v44, %v3287_v32 }
 0x39a   : > { %v8432_v33 = vpop.f32.mrf.mxu1 }
 0x39b   : > { %9034 = vst [vmem:[#allocation70_spill] sm:$0xff] %v8432_v33  ;;  %v8457_v55 = vpop.f32.mrf.mxu0 }
 0x39c   : > { %v8438_v40 = vpop.f32.mrf.mxu1 }
 0x39d   : > { %9036 = vst [vmem:[#allocation71_spill] sm:$0xff] %v8438_v40 }
 0x39e   : > { %v8442_v63 = vpop.f32.mrf.mxu1 }
 0x39f   : > { %9037 = vst [vmem:[#allocation28_spill] sm:$0xff] %v8442_v63  ;;  %v3588_v63 = vadd.f32 %v8151_v61, %v3275_v41  ;;  %v3590_v61 = vadd.f32 %v8159_v50, %v3281_v22  ;;  %v8465_v41 = vpop.f32.mrf.mxu0  ;;  %v3594_v22 = vadd.f32 %v8179_v6, %v3291_v16  ;;  %v9045_v16 = vld [vmem:[#allocation43_spill] sm:$0xff] }
 0x3a0   : > { %v3802_v33 = vpop.f32.mrf.mxu1 }
 0x3a1   : > { %v3881_v45 = vadd.f32 %v3802_v33, %v3586_v59  ;;  %v8477_v30 = vpop.f32.mrf.mxu0 }
 0x3a2   : > { %v3804_v40 = vpop.f32.mrf.mxu1 }
 0x3a3   : > { %v3882_v58 = vadd.f32 %v3804_v40, %v3587_v25  ;;  %v4150_v15 = vadd.f32 %v8320_v52, %v3881_v45  ;;  %v3591_v40 = vadd.f32 %v8165_v8, %v3283_v2  ;;  %v3293_v8 = vadd.f32 %v8371_v0, %v8186_v17  ;;  %v8485_v17 = vpop.f32.mrf.mxu0 }
 0x3a4   : > { %v3806_v7 = vpop.f32.mrf.mxu1 }
 0x3a5   : > { %v4151_v21 = vadd.f32 %v8344_v11, %v3882_v58  ;;  %v3883_v33 = vadd.f32 %v3806_v7, %v3588_v63  ;;  %v3592_v11 = vadd.f32 %v8169_v31, %v3285_v29  ;;  %v3595_v58 = vadd.f32 %v8184_v23, %v3293_v8  ;;  %v9038_v29 = vld [vmem:[#allocation36_spill] sm:$0xff] }
 0x3a6   : > { %v3808_v39 = vpop.f32.mrf.mxu1  ;;  %v3303_v23 = vadd.f32 %v8384_v35, %v8202_v1 }
 0x3a7   : > { %v4182_v59 = vmax.f32 %v4150_v15, %v4151_v21  ;;  %v3884_v25 = vadd.f32 %v3808_v39, %v3589_v24  ;;  %v4152_v63 = vadd.f32 %v8355_v46, %v3883_v33  ;;  %v3596_v15 = vadd.f32 %v8188_v28, %v3295_v4  ;;  %v8497_v21 = vpop.f32.mrf.mxu0  ;;  %v9049_v4 = vld [vmem:[#allocation10_spill] sm:$0xff] }
 0x3a8   : > { %v3812_v37 = vpop.f32.mrf.mxu1  ;;  %v3598_v39 = vadd.f32 %v8196_v43, %v3301_v9  ;;  %v9053_v9 = vld [vmem:[#allocation45_spill] sm:$0xff] }
 0x3a9   : > { %4198 = vst [vmem:[#allocation4] sm:$0xff] %v4182_v59  ;;  %v4153_v56 = vadd.f32 %v8366_v53, %v3884_v25  ;;  %v3885_v38 = vadd.f32 %v3812_v37, %v3590_v61  ;;  %v8505_v1 = vpop.f32.mrf.mxu0  ;;  %v3599_v59 = vadd.f32 %v9038_v29, %v3303_v23  ;;  %v9039_v25 = vld [vmem:[#allocation39_spill] sm:$0xff] }
 0x3aa   : > { %v3814_v52 = vpop.f32.mrf.mxu1 }
 0x3ab   : > { %v4183_v18 = vmax.f32 %v4152_v63, %v4153_v56  ;;  %v3886_v50 = vadd.f32 %v3814_v52, %v3591_v40  ;;  %v4154_v34 = vadd.f32 %v8373_v57, %v3885_v38  ;;  %v3297_v57 = vadd.f32 %v8378_v42, %v8194_v26  ;;  %v9044_v38 = vld [vmem:[#allocation37_spill] sm:$0xff] }
 0x3ac   : > { %v3816_v13 = vpop.f32.mrf.mxu1  ;;  %v3311_v63 = vadd.f32 %v9043_v3, %v9042_v49  ;;  %v3600_v52 = vadd.f32 %v9044_v38, %v3305_v12 }
 0x3ad   : > { %4199 = vst [vmem:[#allocation4 + $0x8] sm:$0xff] %v4183_v18  ;;  %v4155_v53 = vadd.f32 %v8380_v14, %v3886_v50  ;;  %v3887_v46 = vadd.f32 %v3816_v13, %v3592_v11  ;;  %v3597_v33 = vadd.f32 %v8192_v5, %v3297_v57  ;;  %v9046_v18 = vld [vmem:[#allocation59_spill] sm:$0xff]  ;;  %v8517_v11 = vpop.f32.mrf.mxu0  ;;  %v9047_v13 = vld [vmem:[#allocation26_spill] sm:$0xff] }
 0x3ae   : > { %v3818_v45 = vpop.f32.mrf.mxu1  ;;  %v3313_v50 = vadd.f32 %v9046_v18, %v9045_v16  ;;  %v9065_v16 = vld [vmem:[#allocation46_spill] sm:$0xff] }
 0x3af   : > { %v4184_v54 = vmax.f32 %v4154_v34, %v4155_v53  ;;  %v3888_v31 = vadd.f32 %v3818_v45, %v3593_v10  ;;  %v4156_v14 = vadd.f32 %v8386_v47, %v3887_v46  ;;  %v9048_v46 = vld [vmem:[#allocation38_spill] sm:$0xff] }
 0x3b0   : > { %v3822_v0 = vpop.f32.mrf.mxu1 }
 0x3b1   : > { %4200 = vst [vmem:[#allocation4 + $0x10] sm:$0xff] %v4184_v54  ;;  %v4157_v44 = vadd.f32 %v8392_v48, %v3888_v31  ;;  %v3889_v2 = vadd.f32 %v3822_v0, %v3594_v22  ;;  %v9050_v54 = vld [vmem:[#allocation61_spill] sm:$0xff] }
 0x3b2   : > { %v3824_v7 = vpop.f32.mrf.mxu1  ;;  %v3315_v31 = vadd.f32 %v9050_v54, %v9049_v4  ;;  %v9070_v54 = vld [vmem:[#allocation48_spill] sm:$0xff] }
 0x3b3   : > { %v4185_v51 = vmax.f32 %v4156_v14, %v4157_v44  ;;  %v3890_v6 = vadd.f32 %v3824_v7, %v3595_v58  ;;  %v4158_v47 = vadd.f32 %v8398_v36, %v3889_v2  ;;  %v9040_v36 = vld [vmem:[#allocation22_spill] sm:$0xff]  ;;  %v9051_v58 = vld [vmem:[#allocation40_spill] sm:$0xff]  ;;  %v4127_v14 = vpop.f32.mrf.mxu0 }
 0x3b4   : > { %v3826_v26 = vpop.f32.mrf.mxu1  ;;  %v3307_v61 = vadd.f32 %v9040_v36, %v9039_v25  ;;  %v3602_v57 = vadd.f32 %v9051_v58, %v3311_v63  ;;  %v9052_v2 = vld [vmem:[#allocation42_spill] sm:$0xff] }
 0x3b5   : > { %4201 = vst [vmem:[#allocation4 + $0x18] sm:$0xff] %v4185_v51  ;;  %v4159_v42 = vadd.f32 %v8404_v62, %v3890_v6  ;;  %v3891_v48 = vadd.f32 %v3826_v26, %v3596_v15  ;;  %v9041_v62 = vld [vmem:[#allocation24_spill] sm:$0xff]  ;;  %v3603_v7 = vadd.f32 %v9052_v2, %v3313_v50  ;;  %v9054_v51 = vld [vmem:[#allocation62_spill] sm:$0xff]  ;;  %v9066_v50 = vld [vmem:[#allocation49_spill] sm:$0xff] }
 0x3b6   : > { %v3828_v24 = vpop.f32.mrf.mxu1  ;;  %v3601_v10 = vadd.f32 %v9048_v46, %v3307_v61  ;;  %v3317_v6 = vadd.f32 %v9054_v51, %v9053_v9  ;;  %v9069_v46 = vld [vmem:[#allocation65_spill] sm:$0xff] }
 0x3b7   : > { %v4186_v20 = vmax.f32 %v4158_v47, %v4159_v42  ;;  %v3892_v28 = vadd.f32 %v3828_v24, %v3597_v33  ;;  %v4160_v37 = vadd.f32 %v9041_v62, %v3891_v48  ;;  %v9056_v42 = vld [vmem:[#allocation13_spill] sm:$0xff]  ;;  %v9057_v48 = vld [vmem:[#allocation64_spill] sm:$0xff]  ;;  %v9061_v62 = vld [vmem:[#allocation11_spill] sm:$0xff] }
 0x3b8   : > { %v3832_v35 = vpop.f32.mrf.mxu1  ;;  %v3321_v33 = vadd.f32 %v9057_v48, %v9056_v42 }
 0x3b9   : > { %4202 = vst [vmem:[#allocation4 + $0x20] sm:$0xff] %v4186_v20  ;;  %v4161_v5 = vadd.f32 %v8416_v27, %v3892_v28  ;;  %v3893_v40 = vadd.f32 %v3832_v35, %v3598_v39  ;;  %v9058_v20 = vld [vmem:[#allocation44_spill] sm:$0xff]  ;;  %v9059_v39 = vld [vmem:[#allocation47_spill] sm:$0xff] }
 0x3ba   : > { %v3834_v32 = vpop.f32.mrf.mxu1  ;;  %v3604_v28 = vadd.f32 %v9058_v20, %v3315_v31  ;;  %v9060_v35 = vld [vmem:[#allocation63_spill] sm:$0xff] }
 0x3bb   : > { %v4187_v56 = vmax.f32 %v4160_v37, %v4161_v5  ;;  %v3894_v43 = vadd.f32 %v3834_v32, %v3599_v59  ;;  %v4162_v34 = vadd.f32 %v9047_v13, %v3893_v40  ;;  %v3323_v29 = vadd.f32 %v9060_v35, %v9059_v39  ;;  %v4131_v59 = vpop.f32.mrf.mxu0  ;;  %v9062_v40 = vld [vmem:[#allocation14_spill] sm:$0xff]  ;;  %v9063_v32 = vld [vmem:[#allocation25_spill] sm:$0xff]  ;;  %v9078_v20 = vld [vmem:[#allocation19_spill] sm:$0xff] }
 0x3bc   : > { %v3836_v8 = vpop.f32.mrf.mxu1  ;;  %v3605_v37 = vadd.f32 %v9061_v62, %v3317_v6  ;;  %v3325_v49 = vadd.f32 %v9063_v32, %v9062_v40  ;;  %v9074_v6 = vld [vmem:[#allocation53_spill] sm:$0xff]  ;;  %v9083_v32 = vld [vmem:[#allocation20_spill] sm:$0xff] }
 0x3bd   : > { %4203 = vst [vmem:[#allocation4 + $0x28] sm:$0xff] %v4187_v56  ;;  %v4163_v27 = vadd.f32 %v8428_v60, %v3894_v43  ;;  %v3895_v53 = vadd.f32 %v3836_v8, %v3600_v52  ;;  %v9055_v60 = vld [vmem:[#allocation72_spill] sm:$0xff]  ;;  %v4133_v38 = vpop.f32.mrf.mxu0  ;;  %v3607_v18 = vadd.f32 %v9065_v16, %v3323_v29 }
 0x3be   : > { %v3838_v45 = vpop.f32.mrf.mxu1  ;;  %v9064_v56 = vld [vmem:[#allocation12_spill] sm:$0xff]  ;;  %v3608_v31 = vadd.f32 %v9070_v54, %v3325_v49  ;;  %v9084_v49 = vld [vmem:[#allocation70_spill] sm:$0xff] }
 0x3bf   : > { %v4188_v22 = vmax.f32 %v4162_v34, %v4163_v27  ;;  %v3896_v0 = vadd.f32 %v3838_v45, %v3601_v10  ;;  %v4164_v15 = vadd.f32 %v9055_v60, %v3895_v53  ;;  %v3606_v43 = vadd.f32 %v9064_v56, %v3321_v33  ;;  %v9067_v8 = vld [vmem:[#allocation68_spill] sm:$0xff]  ;;  %v9075_v60 = vld [vmem:[#allocation27_spill] sm:$0xff] }
 0x3c0   : > { %v3842_v44 = vpop.f32.mrf.mxu1  ;;  %v9068_v53 = vld [vmem:[#allocation16_spill] sm:$0xff] }
 0x3c1   : > { %4204 = vst [vmem:[#allocation4 + $0x30] sm:$0xff] %v4188_v22  ;;  %v4165_v23 = vadd.f32 %v8447_v19, %v3896_v0  ;;  %v3897_v26 = vadd.f32 %v3842_v44, %v3602_v57  ;;  %v3331_v10 = vadd.f32 %v9069_v46, %v9068_v53  ;;  %v9071_v22 = vld [vmem:[#allocation50_spill] sm:$0xff]  ;;  %v4135_v57 = vpop.f32.mrf.mxu0  ;;  %v9089_v46 = vld [vmem:[#allocation55_spill] sm:$0xff] }
 0x3c2   : > { %v3844_v47 = vpop.f32.mrf.mxu1  ;;  %v9072_v0 = vld [vmem:[#allocation66_spill] sm:$0xff] }
 0x3c3   : > { %v4189_v24 = vmax.f32 %v4164_v15, %v4165_v23  ;;  %v3898_v12 = vadd.f32 %v3844_v47, %v3603_v7  ;;  %v4166_v36 = vadd.f32 %v8457_v55, %v3897_v26  ;;  %v3327_v55 = vadd.f32 %v9067_v8, %v9066_v50  ;;  %v9073_v7 = vld [vmem:[#allocation15_spill] sm:$0xff]  ;;  %v4137_v48 = vpop.f32.mrf.mxu0 }
 0x3c4   : > { %v3846_v25 = vpop.f32.mrf.mxu1  ;;  %v3333_v58 = vadd.f32 %v9072_v0, %v9071_v22  ;;  %v3335_v15 = vadd.f32 %v9075_v60, %v9074_v6  ;;  %v9076_v47 = vld [vmem:[#allocation51_spill] sm:$0xff]  ;;  %v9093_v6 = vld [vmem:[#allocation58_spill] sm:$0xff] }
 0x3c5   : > { %4205 = vst [vmem:[#allocation4 + $0x38] sm:$0xff] %v4189_v24  ;;  %v4167_v61 = vadd.f32 %v8465_v41, %v3898_v12  ;;  %v3899_v19 = vadd.f32 %v3846_v25, %v3604_v28  ;;  %v3609_v9 = vadd.f32 %v9073_v7, %v3327_v55  ;;  %v3610_v42 = vadd.f32 %v9076_v47, %v3331_v10  ;;  %v9077_v24 = vld [vmem:[#allocation17_spill] sm:$0xff]  ;;  %v9079_v28 = vld [vmem:[#allocation67_spill] sm:$0xff]  ;;  %v9080_v25 = vld [vmem:[#allocation56_spill] sm:$0xff]  ;;  %v4141_v40 = vpop.f32.mrf.mxu0 }
 0x3c6   : > { %v3848_v5 = vpop.f32.mrf.mxu1  ;;  %v3611_v12 = vadd.f32 %v9077_v24, %v3333_v58  ;;  %v9087_v50 = vld [vmem:[#allocation71_spill] sm:$0xff]  ;;  %v4265_v24 = vld [vmem:[#allocation4 + $0x3] ss:$16 sm:$0x3] }
 0x3c7   : > { %v4190_v3 = vmax.f32 %v4166_v36, %v4167_v61  ;;  %v3900_v63 = vadd.f32 %v3848_v5, %v3605_v37  ;;  %v4168_v41 = vadd.f32 %v8477_v30, %v3899_v19  ;;  %v9081_v36 = vld [vmem:[#allocation69_spill] sm:$0xff]  ;;  %v9082_v37 = vld [vmem:[#allocation52_spill] sm:$0xff] }
 0x3c8   : > { %v3852_v52 = vpop.f32.mrf.mxu1  ;;  %v3341_v61 = vadd.f32 %v9081_v36, %v9080_v25  ;;  %v3612_v5 = vadd.f32 %v9082_v37, %v3335_v15 }
 0x3c9   : > { %4206 = vst [vmem:[#allocation4 + $0x40] sm:$0xff] %v4190_v3  ;;  %v4169_v13 = vadd.f32 %v8485_v17, %v3900_v63  ;;  %v3901_v34 = vadd.f32 %v3852_v52, %v3606_v43  ;;  %v3343_v3 = vadd.f32 %v9084_v49, %v9083_v32 }
 0x3ca   : > { %v3854_v27 = vpop.f32.mrf.mxu1 }
 0x3cb   : > { %v4191_v45 = vmax.f32 %v4168_v41, %v4169_v13  ;;  %v3902_v4 = vadd.f32 %v3854_v27, %v3607_v18  ;;  %v4170_v2 = vadd.f32 %v8497_v21, %v3901_v34  ;;  %v3337_v21 = vadd.f32 %v9079_v28, %v9078_v20  ;;  %v9086_v18 = vld [vmem:[#allocation60_spill] sm:$0xff]  ;;  %v9088_v13 = vld [vmem:[#allocation54_spill] sm:$0xff]  ;;  %v4143_v27 = vpop.f32.mrf.mxu0 }
 0x3cc   : > { %v3856_v44 = vpop.f32.mrf.mxu1  ;;  %v3345_v8 = vadd.f32 %v9087_v50, %v9086_v18  ;;  %v3614_v34 = vadd.f32 %v9088_v13, %v3341_v61  ;;  %v3615_v10 = vadd.f32 %v9089_v46, %v3343_v3  ;;  %v4470_v28 = vld [vmem:[#allocation4 + $0x4] ss:$16 sm:$0x3]  ;;  %v6232_v46 = vld [vmem:[%s8813_s5 + $0x138] sm:$0xff]  }
 0x3cd   : > { %4207 = vst [vmem:[#allocation4 + $0x48] sm:$0xff] %v4191_v45  ;;  %v4171_v30 = vadd.f32 %v8505_v1, %v3902_v4  ;;  %v3903_v17 = vadd.f32 %v3856_v44, %v3608_v31  ;;  %v9090_v45 = vld [vmem:[#allocation57_spill] sm:$0xff]  ;;  %v9091_v4 = vld [vmem:[#allocation28_spill] sm:$0xff] }
 0x3ce   : > { %v3858_v51 = vpop.f32.mrf.mxu1  ;;  %v3347_v54 = vadd.f32 %v9091_v4, %v9090_v45  ;;  %v9092_v44 = vld [vmem:[#allocation21_spill] sm:$0xff]  ;;  %v6233_v45 = vld [vmem:[%s8813_s5 + $0x30] sm:$0xff]   ;;  %v9094_v4 = vmov 0.0  }
 0x3cf   : > { %v4192_v23 = vmax.f32 %v4170_v2, %v4171_v30  ;;  %v3904_v26 = vadd.f32 %v3858_v51, %v3609_v9  ;;  %v4172_v1 = vadd.f32 %v8517_v11, %v3903_v17  ;;  %v9085_v11 = vld [vmem:[#allocation18_spill] sm:$0xff]  ;;  %v3616_v2 = vadd.f32 %v9092_v44, %v3345_v8  ;;  %v4145_v30 = vpop.f32.mrf.mxu0 }
 0x3d0   : > { %v3862_v33 = vpop.f32.mrf.mxu1  ;;  %v3617_v60 = vadd.f32 %v9093_v6, %v3347_v54  ;;  %v6234_v54 = vld [vmem:[%s8813_s5 + $0x130] sm:$0xff]  }
 0x3d1   : > { %4208 = vst [vmem:[#allocation4 + $0x50] sm:$0xff] %v4192_v23  ;;  %v4173_v39 = vadd.f32 %v4127_v14, %v3904_v26  ;;  %v3905_v35 = vadd.f32 %v3862_v33, %v3610_v42  ;;  %v3613_v14 = vadd.f32 %v9085_v11, %v3337_v21  ;;  %v4147_v47 = vpop.f32.mrf.mxu0  ;;  %v4258_v33 = vld [vmem:[#allocation4 + $0x2] ss:$16 sm:$0xc] }
 0x3d2   : > { %v3864_v29 = vpop.f32.mrf.mxu1  ;;  %v4471_v21 = vld [vmem:[#allocation4 + $0x4] ss:$16 sm:$0xc]  ;;  %v4223_v44 = vld [vmem:[#allocation4 + $0x1] ss:$16 sm:$0xc] }
 0x3d3   : > { %v4193_v19 = vmax.f32 %v4172_v1, %v4173_v39  ;;  %v3906_v62 = vadd.f32 %v3864_v29, %v3611_v12  ;;  %v4174_v56 = vadd.f32 %v4131_v59, %v3905_v35  ;;  %v4266_v12 = vld [vmem:[#allocation4 + $0x3] ss:$16 sm:$0xc]  ;;  %v4478_v1 = vld [vmem:[#allocation4 + $0x5] ss:$16 sm:$0x3] }
 0x3d4   : > { %v3866_v63 = vpop.f32.mrf.mxu1  ;;  %v4479_v39 = vld [vmem:[#allocation4 + $0x5] ss:$16 sm:$0xc]  ;;  %v4267_v36 = vor.u32 %v4266_v12, %v4265_v24 }
 0x3d5   : > { %4209 = vst [vmem:[#allocation4 + $0x58] sm:$0xff] %v4193_v19  ;;  %v4175_v43 = vadd.f32 %v4133_v38, %v3906_v62  ;;  %v3907_v52 = vadd.f32 %v3866_v63, %v3612_v5  ;;  %v4472_v62 = vor.u32 %v4471_v21, %v4470_v28  ;;  %v4480_v37 = vor.u32 %v4479_v39, %v4478_v1  ;;  %v6239_v28 = vld [vmem:[%s8813_s5 + $0x18] sm:$0xff]  }
 0x3d6   : > { %v3868_v16 = vpop.f32.mrf.mxu1  ;;  %v6240_v39 = vld [vmem:[%s8813_s5 + $0x118] sm:$0xff]  }
 0x3d7   : > { %v4194_v55 = vmax.f32 %v4174_v56, %v4175_v43  ;;  %v3908_v41 = vadd.f32 %v3868_v16, %v3613_v14  ;;  %v4176_v59 = vadd.f32 %v4135_v57, %v3907_v52  ;;  %v8578_v14 = vld [vmem:[%s8812_s4] ss:$0 sm:$0xff] }
 0x3d8   : > { %v3872_v53 = vpop.f32.mrf.mxu1  ;;  %v4260_v35 = vld [vmem:[#allocation4 + $0x2] ss:$16 sm:$0x30]  ;;  %v4268_v29 = vld [vmem:[#allocation4 + $0x3] ss:$16 sm:$0x30] }
 0x3d9   : > { %4210 = vst [vmem:[#allocation4 + $0x60] sm:$0xff] %v4194_v55  ;;  %v4177_v38 = vadd.f32 %v4137_v48, %v3908_v41  ;;  %v3909_v31 = vadd.f32 %v3872_v53, %v3614_v34  ;;  %v4257_v48 = vld [vmem:[#allocation4 + $0x2] ss:$16 sm:$0x3]  ;;  %v6231_v34 = vld [vmem:[%s8813_s5 + $0x38] sm:$0xff]  }
 0x3da   : > { %v3874_v22 = vpop.f32.mrf.mxu1  ;;  %v4259_v25 = vor.u32 %v4258_v33, %v4257_v48  ;;  %v4473_v61 = vld [vmem:[#allocation4 + $0x4] ss:$16 sm:$0x30]  ;;  %v4481_v19 = vld [vmem:[#allocation4 + $0x5] ss:$16 sm:$0x30] }
 0x3db   : > { %v4195_v0 = vmax.f32 %v4176_v59, %v4177_v38  ;;  %v3910_v58 = vadd.f32 %v3874_v22, %v3615_v10  ;;  %v4178_v7 = vadd.f32 %v4141_v40, %v3909_v31  ;;  %v4269_v40 = vor.u32 %v4268_v29, %v4267_v36  ;;  %v6235_v59 = vld [vmem:[%s8813_s5 + $0x28] sm:$0xff]   ;;  %v6237_v31 = vld [vmem:[%s8813_s5 + $0x20] sm:$0xff]  }
 0x3dc   : > { %v3876_v17 = vpop.f32.mrf.mxu1  ;;  %v4261_v5 = vor.u32 %v4260_v35, %v4259_v25  ;;  %v4474_v3 = vor.u32 %v4473_v61, %v4472_v62  ;;  %v4482_v63 = vor.u32 %v4481_v19, %v4480_v37  ;;  %v6236_v38 = vld [vmem:[%s8813_s5 + $0x128] sm:$0xff]   ;;  %v4214_v22 = vld [vmem:[#allocation4] ss:$16 sm:$0x3] }
 0x3dd   : > { %4211 = vst [vmem:[#allocation4 + $0x68] sm:$0xff] %v4195_v0  ;;  %v4179_v9 = vadd.f32 %v4143_v27, %v3910_v58  ;;  %v3911_v51 = vadd.f32 %v3876_v17, %v3616_v2  ;;  %v4215_v0 = vld [vmem:[#allocation4] ss:$16 sm:$0xc] }
 0x3de   : > { %v3878_v15 = vpop.f32.mrf.mxu1  ;;  %v4222_v58 = vld [vmem:[#allocation4 + $0x1] ss:$16 sm:$0x3]  ;;  %v4723_v17 = vld [vmem:[#allocation4 + $0x8] ss:$16 sm:$0xc] }
 0x3df   : > { %v4196_v23 = vmax.f32 %v4178_v7, %v4179_v9  ;;  %v3912_v26 = vadd.f32 %v3878_v15, %v3617_v60  ;;  %v4180_v57 = vadd.f32 %v4145_v30, %v3911_v51  ;;  %v6238_v2 = vld [vmem:[%s8813_s5 + $0x120] sm:$0xff]   ;;  %v4722_v30 = vld [vmem:[#allocation4 + $0x8] ss:$16 sm:$0x3]  ;;  %v4216_v60 = vor.u32 %v4215_v0, %v4214_v22  ;;  %v6241_v61 = vld [vmem:[%s8813_s5 + $0x10] sm:$0xff]  }
 0x3e0   : > { %v4730_v7 = vld [vmem:[#allocation4 + $0x9] ss:$16 sm:$0x3]  ;;  %v4217_v51 = vld [vmem:[#allocation4] ss:$16 sm:$0x30]  ;;  %v4224_v15 = vor.u32 %v4223_v44, %v4222_v58 }
 0x3e1   : > { %4212 = vst [vmem:[#allocation4 + $0x70] sm:$0xff] %v4196_v23  ;;  %v4181_v42 = vadd.f32 %v4147_v47, %v3912_v26  ;;  %v4731_v9 = vld [vmem:[#allocation4 + $0x9] ss:$16 sm:$0xc]  ;;  %v4218_v33 = vor.u32 %v4217_v51, %v4216_v60  ;;  %v6242_v19 = vld [vmem:[%s8813_s5 + $0x110] sm:$0xff]   ;;  %v6258_v60 = vld [vmem:[%s8815_s7 + $0x20] sm:$0xff]  }
 0x3e2   : > { %v4225_v6 = vld [vmem:[#allocation4 + $0x1] ss:$16 sm:$0x30]  ;;  %v4725_v23 = vld [vmem:[#allocation4 + $0x8] ss:$16 sm:$0x30]  ;;  %v4732_v48 = vor.u32 %v4731_v9, %v4730_v7 }
 0x3e3   : > { %v4197_v20 = vmax.f32 %v4180_v57, %v4181_v42  ;;  %v4733_v26 = vld [vmem:[#allocation4 + $0x9] ss:$16 sm:$0x30]  ;;  %v4724_v42 = vor.u32 %v4723_v17, %v4722_v30  ;;  %v4226_v24 = vor.u32 %v4225_v6, %v4224_v15  ;;  %v6252_v58 = vld [vmem:[%s8813_s5 + $0xd0] sm:$0xff]   ;;  %v6254_v17 = vld [vmem:[%s8813_s5 + $0xc0] sm:$0xff]  }
 0x3e4   : > { %v4734_v1 = vor.u32 %v4733_v26, %v4732_v48  ;;  %v6256_v51 = vld [vmem:[%s8815_s7 + $0x30] sm:$0xff]   ;;  %v6257_v6 = vld [vmem:[%s8815_s7 + $0x28] sm:$0xff]   ;;  %v6259_v15 = vld [vmem:[%s8815_s7 + $0x18] sm:$0xff]  }
 0x3e5   : > { %4213 = vst [vmem:[#allocation4 + $0x78] sm:$0x3] %v4197_v20  ;;  %v4726_v21 = vor.u32 %v4725_v23, %v4724_v42  ;;  %v6260_v23 = vld [vmem:[%s8815_s7 + $0x10] sm:$0xff]   ;;  %v6261_v26 = vld [vmem:[%s8815_s7 + $0x8] sm:$0xff]  }
 0x3e6   : > { %v6264_v42 = vld [vmem:[%s8817_s9 + $0x30] sm:$0xff]   ;;  %v6265_v48 = vld [vmem:[%s8817_s9 + $0x28] sm:$0xff]  }
 0x3e8   : > { %v4262_v32 = vld [vmem:[#allocation4 + $0x2] ss:$16 sm:$0xc0]  ;;  %v4270_v49 = vld [vmem:[#allocation4 + $0x3] ss:$16 sm:$0xc0] }
 0x3e9   : > { %v4263_v56 = vor.u32 %v4262_v32, %v4261_v5  ;;  %v4271_v43 = vor.u32 %v4270_v49, %v4269_v40  ;;  %v4475_v52 = vld [vmem:[#allocation4 + $0x4] ss:$16 sm:$0xc0]  ;;  %v4483_v11 = vld [vmem:[#allocation4 + $0x5] ss:$16 sm:$0xc0] }
 0x3ea   : > { %v4476_v16 = vor.u32 %v4475_v52, %v4474_v3  ;;  %v4484_v18 = vor.u32 %v4483_v11, %v4482_v63  ;;  %v4219_v47 = vld [vmem:[#allocation4] ss:$16 sm:$0xc0]  ;;  %v4227_v57 = vld [vmem:[#allocation4 + $0x1] ss:$16 sm:$0xc0] }
 0x3eb   : > { %v4272_v50 = vmax.f32 %v4263_v56, %v4271_v43  ;;  %v4220_v35 = vor.u32 %v4219_v47, %v4218_v33  ;;  %v4228_v29 = vor.u32 %v4227_v57, %v4226_v24  ;;  %v6243_v5 = vld [vmem:[%s8813_s5 + $0x8] sm:$0xff]   ;;  %v6245_v3 = vld [vmem:[%s8813_s5] sm:$0xff]   ;;  %v6247_v52 = vld [vmem:[%s8813_s5 + $0xf8] sm:$0xff]  }
 0x3ec   : > { %v4485_v8 = vmax.f32 %v4476_v16, %v4484_v18  ;;  %v4727_v12 = vld [vmem:[#allocation4 + $0x8] ss:$16 sm:$0xc0]  ;;  %v4735_v20 = vld [vmem:[#allocation4 + $0x9] ss:$16 sm:$0xc0] }
 0x3ed   : > { %v4273_v55 = vadd.f32 %v8578_v14, %v4272_v50  ;;  %v4728_v25 = vor.u32 %v4727_v12, %v4726_v21  ;;  %v4736_v36 = vor.u32 %v4735_v20, %v4734_v1  ;;  %v4229_v62 = vmax.f32 %v4220_v35, %v4228_v29  ;;  %v6244_v40 = vld [vmem:[%s8813_s5 + $0x108] sm:$0xff]   ;;  %v6246_v63 = vld [vmem:[%s8813_s5 + $0x100] sm:$0xff]   ;;  %v6248_v18 = vld [vmem:[%s8813_s5 + $0xf0] sm:$0xff]  }
 0x3ee   : > { %v4486_v41 = vadd.f32 %v8578_v14, %v4485_v8  ;;  %v6249_v50 = vld [vmem:[%s8813_s5 + $0xe8] sm:$0xff]   ;;  %v6250_v8 = vld [vmem:[%s8813_s5 + $0xe0] sm:$0xff]   ;;  %v6263_v57 = vld [vmem:[%s8817_s9 + $0x38] sm:$0xff]  }
 0x3ef   : > { %v4274_v13 = vmax.f32 %v4273_v55, 0.0  ;;  %v4737_v37 = vmax.f32 %v4728_v25, %v4736_v36  ;;  %v4237_v32 = vadd.f32 %v8578_v14, %v4229_v62  ;;  %v4597_v55 = vld [vmem:[#allocation4 + $0x6] ss:$16 sm:$0xc]  ;;  %v6267_v24 = vld [vmem:[%s8817_s9 + $0x18] sm:$0xff]  }
 0x3f0   : > { %v4487_v27 = vmax.f32 %v4486_v41, 0.0  ;;  %v4605_v41 = vld [vmem:[#allocation4 + $0x7] ss:$16 sm:$0xc] }
 0x3f1   : > { %v4275_v53 = vpack.c.bf16 %v4274_v13, %v4274_v13  ;;  %v4738_v49 = vadd.f32 %v8578_v14, %v4737_v37  ;;  %v4238_v56 = vmax.f32 %v4237_v32, 0.0  ;;  %v4596_v13 = vld [vmem:[#allocation4 + $0x6] ss:$16 sm:$0x3] }
 0x3f2   : > { %v4488_v10 = vpack.c.bf16 %v4487_v27, %v4487_v27  ;;  %v4599_v27 = vld [vmem:[#allocation4 + $0x6] ss:$16 sm:$0x30] }
 0x3f3   : > { %5808 = vmatmul.mubr.bf16.vlgmr.msra.gmra.mxu1 %v4275_v53  ;;  %v4739_v43 = vmax.f32 %v4738_v49, 0.0  ;;  %v4239_v11 = vpack.c.bf16 %v4238_v56, %v4238_v56  ;;  %v4607_v53 = vld [vmem:[#allocation4 + $0x7] ss:$16 sm:$0x30] }
 0x3f4   : > { %5812 = vmatpush3.bf16.msra.mxu1 %v6231_v34  ;;  %5848 = vmatmul.mubr.bf16.vlgmr.msra.gmra.mxu0 %v4488_v10  ;;  %v4604_v34 = vld [vmem:[#allocation4 + $0x7] ss:$16 sm:$0x3] }
 0x3f5   : > { %5872 = vmatpush3.bf16.msra.mxu0 %v6232_v46  ;;  %5813 = vmatprep.subr.bf16.mxu1 %v9094_v4  ;;  %v4740_v16 = vpack.c.bf16 %v4739_v43, %v4739_v43  ;;  %v4598_v46 = vor.u32 %v4597_v55, %v4596_v13  ;;  %v4606_v10 = vor.u32 %v4605_v41, %v4604_v34  ;;  %v6262_v47 = vld [vmem:[%s8815_s7] sm:$0xff]   ;;  %v6268_v12 = vld [vmem:[%s8817_s9 + $0x10] sm:$0xff]   ;;  %v6269_v41 = vld [vmem:[%s8817_s9 + $0x8] sm:$0xff]  }
 0x3f6   : > { %5873 = vmatprep.subr.bf16.mxu0 %v9094_v4  ;;  %5827 = vmatprep.mubr.msk.bf16.mxu1 %vm6351_vm5, %v9094_v4  ;;  %v6266_v33 = vld [vmem:[%s8817_s9 + $0x20] sm:$0xff]  }
 0x3f7   : > { %5887 = vmatprep.mubr.msk.bf16.mxu0 %vm6351_vm5, %v9094_v4  ;;  %v5648_v43 = vld [vmem:[%s8814_s6] ss:$0 sm:$0xff] }
 0x3f8   : > { %5814 = vmatpush3.bf16.msra.mxu1 %v6233_v45  ;;  %v4601_v45 = vld [vmem:[#allocation4 + $0x6] ss:$16 sm:$0xc0]  ;;  %v5649_v34 = vld [vmem:[%s8816_s8] ss:$0 sm:$0xff] }
 0x3f9   : > { %5874 = vmatpush3.bf16.msra.mxu0 %v6234_v54  ;;  %5815 = vmatprep.subr.bf16.mxu1 %v9094_v4  ;;  %v4609_v54 = vld [vmem:[#allocation4 + $0x7] ss:$16 sm:$0xc0] }
 0x3fa   : > { %5875 = vmatprep.subr.bf16.mxu0 %v9094_v4  ;;  %v6270_v13 = vld [vmem:[%s8817_s9] sm:$0xff]  }
 0x3fc   : > { %5816 = vmatpush3.bf16.msra.mxu1 %v6235_v59  ;;  %v4600_v59 = vor.u32 %v4599_v27, %v4598_v46 }
 0x3fd   : > { %5876 = vmatpush3.bf16.msra.mxu0 %v6236_v38  ;;  %5817 = vmatprep.subr.bf16.mxu1 %v9094_v4  ;;  %v4608_v38 = vor.u32 %v4607_v53, %v4606_v10 }
 0x3fe   : > { %5877 = vmatprep.subr.bf16.mxu0 %v9094_v4  ;;  %v4602_v22 = vor.u32 %v4601_v45, %v4600_v59 }
 0x3ff   : > { %v4610_v0 = vor.u32 %v4609_v54, %v4608_v38 }
 0x400   : > { %5818 = vmatpush3.bf16.msra.mxu1 %v6237_v31  ;;  %v6251_v31 = vld [vmem:[%s8813_s5 + $0xd8] sm:$0xff]  }
 0x401   : > { %5878 = vmatpush3.bf16.msra.mxu0 %v6238_v2  ;;  %5819 = vmatprep.subr.bf16.mxu1 %v9094_v4  ;;  %v4611_v44 = vmax.f32 %v4602_v22, %v4610_v0  ;;  %v6253_v2 = vld [vmem:[%s8813_s5 + $0xc8] sm:$0xff]  }
 0x402   : > { %5879 = vmatprep.subr.bf16.mxu0 %v9094_v4 }
 0x403   : > { %v4612_v30 = vadd.f32 %v8578_v14, %v4611_v44  ;;  %v6255_v14 = vld [vmem:[%s8815_s7 + $0x38] sm:$0xff]  }
 0x404   : > { %5820 = vmatpush3.bf16.msra.mxu1 %v6239_v28 }
 0x405   : > { %5880 = vmatpush3.bf16.msra.mxu0 %v6240_v39  ;;  %5821 = vmatprep.subr.bf16.mxu1 %v9094_v4  ;;  %v4613_v7 = vmax.f32 %v4612_v30, 0.0 }
 0x406   : > { %5881 = vmatprep.subr.bf16.mxu0 %v9094_v4 }
 0x407   : > { %v4614_v9 = vpack.c.bf16 %v4613_v7, %v4613_v7 }
 0x408   : > { %5822 = vmatpush3.bf16.msra.mxu1 %v6241_v61 }
 0x409   : > { %5882 = vmatpush3.bf16.msra.mxu0 %v6242_v19  ;;  %5823 = vmatprep.subr.bf16.mxu1 %v9094_v4 }
 0x40a   : > { %5883 = vmatprep.subr.bf16.mxu0 %v9094_v4 }
 0x40c   : > { %5824 = vmatpush3.bf16.msra.mxu1 %v6243_v5 }
 0x40d   : > { %5884 = vmatpush3.bf16.msra.mxu0 %v6244_v40  ;;  %5825 = vmatprep.subr.bf16.mxu1 %v9094_v4 }
 0x40e   : > { %5885 = vmatprep.subr.bf16.mxu0 %v9094_v4 }
 0x410   : > { %5826 = vmatpush3.bf16.msra.mxu1 %v6245_v3 }
 0x411   : > { %5886 = vmatpush3.bf16.msra.mxu0 %v6246_v63  ;;  %5851 = vmatprep.subr.bf16.mxu1 %v9094_v4 }
 0x412   : > { %5911 = vmatprep.subr.bf16.mxu0 %v9094_v4 }
 0x413   : > { %5828 = vmatmul.mubr.bf16.vlgmr.msra.gmra.mxu1 %v4239_v11 }
 0x414   : > { %5888 = vmatmul.mubr.bf16.vlgmr.msra.gmra.mxu0 %v4740_v16  ;;  %5852 = vmatpush3.bf16.msra.mxu1 %v6247_v52 }
 0x415   : > { %5853 = vmatprep.subr.bf16.mxu1 %v9094_v4  ;;  %5867 = vmatprep.mubr.msk.bf16.mxu1 %vm6351_vm5, %v9094_v4 }
 0x416   : > { %5927 = vmatprep.mubr.msk.bf16.mxu0 %vm6351_vm5, %v9094_v4  ;;  %5912 = vmatpush3.bf16.msra.mxu0 %v6263_v57 }
 0x417   : > { %5913 = vmatprep.subr.bf16.mxu0 %v9094_v4 }
 0x418   : > { %5854 = vmatpush3.bf16.msra.mxu1 %v6248_v18 }
 0x419   : > { %5855 = vmatprep.subr.bf16.mxu1 %v9094_v4 }
 0x41a   : > { %5914 = vmatpush3.bf16.msra.mxu0 %v6264_v42 }
 0x41b   : > { %5915 = vmatprep.subr.bf16.mxu0 %v9094_v4 }
 0x41c   : > { %5856 = vmatpush3.bf16.msra.mxu1 %v6249_v50 }
 0x41d   : > { %5857 = vmatprep.subr.bf16.mxu1 %v9094_v4 }
 0x41e   : > { %5916 = vmatpush3.bf16.msra.mxu0 %v6265_v48 }
 0x41f   : > { %5917 = vmatprep.subr.bf16.mxu0 %v9094_v4 }
 0x420   : > { %5858 = vmatpush3.bf16.msra.mxu1 %v6250_v8 }
 0x421   : > { %5859 = vmatprep.subr.bf16.mxu1 %v9094_v4 }
 0x422   : > { %5918 = vmatpush3.bf16.msra.mxu0 %v6266_v33 }
 0x423   : > { %5919 = vmatprep.subr.bf16.mxu0 %v9094_v4 }
 0x424   : > { %5860 = vmatpush3.bf16.msra.mxu1 %v6251_v31 }
 0x425   : > { %5861 = vmatprep.subr.bf16.mxu1 %v9094_v4 }
 0x426   : > { %5920 = vmatpush3.bf16.msra.mxu0 %v6267_v24 }
 0x427   : > { %5921 = vmatprep.subr.bf16.mxu0 %v9094_v4 }
 0x428   : > { %5862 = vmatpush3.bf16.msra.mxu1 %v6252_v58 }
 0x429   : > { %5863 = vmatprep.subr.bf16.mxu1 %v9094_v4 }
 0x42a   : > { %5922 = vmatpush3.bf16.msra.mxu0 %v6268_v12 }
 0x42b   : > { %5923 = vmatprep.subr.bf16.mxu0 %v9094_v4 }
 0x42c   : > { %5864 = vmatpush3.bf16.msra.mxu1 %v6253_v2 }
 0x42d   : > { %5865 = vmatprep.subr.bf16.mxu1 %v9094_v4 }
 0x42e   : > { %5924 = vmatpush3.bf16.msra.mxu0 %v6269_v41 }
 0x42f   : > { %5925 = vmatprep.subr.bf16.mxu0 %v9094_v4 }
 0x430   : > { %5866 = vmatpush3.bf16.msra.mxu1 %v6254_v17 }
 0x431   : > { %5891 = vmatprep.subr.bf16.mxu1 %v9094_v4 }
 0x432   : > { %5926 = vmatpush3.bf16.msra.mxu0 %v6270_v13 }
 0x433   : > { %5868 = vmatmul.mubr.bf16.vlgmr.msra.gmra.mxu1 %v4614_v9 }
 0x434   : > { %5907 = vmatprep.mubr.msk.bf16.mxu1 %vm6351_vm5, %v9094_v4  ;;  %5892 = vmatpush3.bf16.msra.mxu1 %v6255_v14 }
 0x435   : > { %5893 = vmatprep.subr.bf16.mxu1 %v9094_v4 }
 0x438   : > { %5894 = vmatpush3.bf16.msra.mxu1 %v6256_v51 }
 0x439   : > { %5895 = vmatprep.subr.bf16.mxu1 %v9094_v4 }
 0x43c   : > { %5896 = vmatpush3.bf16.msra.mxu1 %v6257_v6 }
 0x43d   : > { %5897 = vmatprep.subr.bf16.mxu1 %v9094_v4 }
 0x440   : > { %5898 = vmatpush3.bf16.msra.mxu1 %v6258_v60 }
 0x441   : > { %5899 = vmatprep.subr.bf16.mxu1 %v9094_v4 }
 0x444   : > { %5900 = vmatpush3.bf16.msra.mxu1 %v6259_v15 }
 0x445   : > { %5901 = vmatprep.subr.bf16.mxu1 %v9094_v4 }
 0x448   : > { %5902 = vmatpush3.bf16.msra.mxu1 %v6260_v23 }
 0x449   : > { %5903 = vmatprep.subr.bf16.mxu1 %v9094_v4 }
 0x44c   : > { %5904 = vmatpush3.bf16.msra.mxu1 %v6261_v26 }
 0x44d   : > { %5905 = vmatprep.subr.bf16.mxu1 %v9094_v4  ;;  %v5658_v4 = vld [vmem:[%s8818_s10] ss:$0 sm:$0xff] }
 0x450   : > { %5906 = vmatpush3.bf16.msra.mxu1 %v6262_v47 }
 0x4b3   : > { %v4375_v20 = vpop.f32.mrf.mxu1 }
 0x4b4   : > { %v4588_v28 = vpop.f32.mrf.mxu0 }
 0x4b5   : > { %v5809_v21 = vpop.f32.mrf.mxu1 }
 0x4b6   : > { %v5849_v1 = vpop.f32.mrf.mxu0 }
 0x4b7   : > { %v4378_v39 = vpop.f32.mrf.mxu1 }
 0x4b8   : > { %v4591_v35 = vpop.f32.mrf.mxu0 }
 0x4b9   : > { %v5810_v29 = vpop.f32.mrf.mxu1 }
 0x4ba   : > { %v5850_v25 = vpop.f32.mrf.mxu0 }
 0x4d3   : > { %v4463_v36 = vpop.f32.mrf.mxu1 }
 0x4d4   : > { %v4840_v61 = vpop.f32.mrf.mxu0  ;;  %v4464_v49 = vadd.f32 %v4463_v36, %v4375_v20 }
 0x4d5   : > { %v5829_v19 = vpop.f32.mrf.mxu1 }
 0x4d6   : > { %v5889_v62 = vpop.f32.mrf.mxu0  ;;  %v4594_v3 = vadd.f32 %v4588_v28, %v4464_v49 }
 0x4d7   : > { %v4466_v37 = vpop.f32.mrf.mxu1 }
 0x4d8   : > { %v4843_v5 = vpop.f32.mrf.mxu0 }
 0x4d9   : > { %v5830_v40 = vpop.f32.mrf.mxu1 }
 0x4da   : > { %v5890_v32 = vpop.f32.mrf.mxu0 }
 0x4f3   : > { %v4714_v63 = vpop.f32.mrf.mxu1 }
 0x4f4   : > { %v4720_v56 = vadd.f32 %v4714_v63, %v4594_v3 }
 0x4f5   : > { %v5869_v52 = vpop.f32.mrf.mxu1 }
 0x4f6   : > { %v4846_v11 = vadd.f32 %v4840_v61, %v4720_v56 }
 0x4f7   : > { %v4717_v16 = vpop.f32.mrf.mxu1 }
 0x4f8   : > { %v4854_v18 = vadd.f32 %v5648_v43, %v4846_v11 }
 0x4f9   : > { %v5870_v50 = vpop.f32.mrf.mxu1 }
 0x4fa   : > { %v4855_v8 = vmax.f32 %v4854_v18, 0.0 }
 0x4fc   : > { %v4856_v55 = vpack.c.bf16 %v4855_v8, %v4855_v8 }
 0x4fe   : > { %5908 = vmatmul.mubr.bf16.vlgmr.msra.gmra.mxu1 %v4856_v55 }
 0x5be   : > { %v4962_v27 = vpop.f32.mrf.mxu1 }
 0x5bf   : > { %v4963_v53 = vadd.f32 %v5649_v34, %v4962_v27 }
 0x5c0   : > { %v5909_v46 = vpop.f32.mrf.mxu1 }
 0x5c1   : > { %v4968_v10 = vmax.f32 %v4963_v53, 0.0 }
 0x5c2   : > { %v4965_v45 = vpop.f32.mrf.mxu1 }
 0x5c3   : > { %v4969_v54 = vpack.c.bf16 %v4968_v10, %v4968_v10 }
 0x5c4   : > { %v5910_v59 = vpop.f32.mrf.mxu1 }
 0x5c5   : > { %5928 = vmatmul.mubr.bf16.vlgmr.msra.gmra.mxu0 %v4969_v54 }
 0x685   : > { %v5075_v38 = vpop.f32.mrf.mxu0 }
 0x686   : > { %v5076_v31 = vadd.f32 %v5658_v4, %v5075_v38 }
 0x687   : > { %v5929_v22 = vpop.f32.mrf.mxu0 }
 0x688   : > { %5081 = vst [vmem:[%s380_s22] sm:$0xff] %v5076_v31 }
 0x689   : > { %v5078_v0 = vpop.f32.mrf.mxu0 }
 0x68a   : > { %6300 = shalt.err (!%p6297_p3)
}
 0x68b   : > { %s6301_s15 = scalar_lea.hbm %s8767_s24, 128  ;;  %s6305_s22 = scalar_lea.hbm %s8819_s11, 256 }
 0x68c   : > { %p6302_p4 = scmp.ne.s32.totalorder %s8767_s24, %s6301_s15  ;;  %p6306_p9 = scmp.lt.s32.totalorder %s8767_s24, %s8819_s11 }
 0x68d   : > { %p6307_p10 = scmp.lt.s32.totalorder %s6305_s22, %s6301_s15 }
 0x68e   : > { %p6303_p7 = pnand %p6302_p4, %p6451_p5 }
 0x68f   : > { %p6308_p11 = por %p6307_p10, %p6306_p9 }
 0x690   : > { %p6304_p8 = pneg %p6303_p7 }
 0x692   : > { %p6309_p12 = pnand %p6308_p11, %p6304_p8 }
 0x694   : > { %6312 = shalt.err (!%p6309_p12)
}
 0x695   : > { %5931 = dma.vmem_to_hbm [thread:$0]  (%p6451_p5), %s8769_s19, 128, %s8767_s24, %s5083_s30   ;;  %v5930_v58 = vpop.f32.mrf.mxu0 }
 0x696 PF: > { %p5937_p13 = scmp.ge.s32.totalorder %s6347_s20, 2  ;;  %s5108_s13 = sand.u32 1, %s6335_s17  }
 0x697   : > { %s5109_s21 = scalar_lea.sflag [#allocation6], %s5108_s13 }
 0x698   : > { %p5934_p0 = pnand %p5937_p13, %p6455_p6 }
 0x69a   : > { %p5935_p1 = pneg %p5934_p0 }
 0x69c   : > { %6330 = dma.done.wait (%p5935_p1), %s5109_s21, 128  }
 0x69d   : > { %6332 = vsyncadd (%p5935_p1), %s5109_s21, 4294967168  ;;  %s9095_s26 = sld [smem:[#allocation8_spill]]  ;;  %p21_p2 = scmp.ge.s32.totalorder %s6438_s23, 4  }
 0x69e   : > { %s9096_s19 = sld [smem:[#allocation9_spill]]  ;;  %s9097_s17 = smov %s6339_s18 }
 0x69f   : > { %s9099_s20 = smov %s6438_s23  ;;  %23 = sbr.rel (!%p21_p2) target bundleno = 3 (0x3), region = 151 }
 0x6a3   : > { %s9098_s18 = smov %s9095_s26 }
 0x6a4   :  { %5114 = vsyncpa [#allocation6], 1 }
 0x6a5   :  { %5116 = vsyncpa [#allocation6 + $0x1], 1 }

</bundles_post_ra>
